<compile_context>
chip_gen: v7x
topology: tpu7x:2x2x1
jax: 0.10.0
libtpu: 0.0.40
codegen_flags: <defaults>
</compile_context>

<pallas_src>
import functools

import jax
import jax.numpy as jnp
from jax import lax
from jax.experimental import pallas as pl
from jax.experimental.pallas import tpu as pltpu


def _incept5a_kernel(xee_ref, xeo_ref, xoe_ref, xoo_ref, w_ref, scale_ref,
                     shift_ref, conv_ref, pool_ref, *, NB, Ho, Wo, Cin, Cout):
    # xee_ref : (NB, Ho+1, Wo+1, Cin) bf16   even input rows, even input cols
    # xeo_ref : (NB, Ho+1, Wo,   Cin) bf16   even rows, odd cols
    # xoe_ref : (NB, Ho,   Wo+1, Cin) bf16   odd rows,  even cols
    # xoo_ref : (NB, Ho,   Wo,   Cin) bf16   odd rows,  odd cols
    # w_ref   : (9*Cin, Cout)         bf16   row = (kh*3 + kw)*Cin + ci
    # scale_ref, shift_ref : (1, Cout) f32   folded BatchNorm
    # conv_ref: (NB, Ho, Wo, Cout)           conv + BN + ReLU branch
    # pool_ref: (NB, Ho, Wo, Cin)            3x3 / stride-2 max-pool branch

    # Output (r, c) reads input (2r + kh, 2c + kw).  With rows/cols
    # de-interleaved in the wrapper, every (kh, kw) tap is one contiguous
    # (NB, Ho, Wo, Cin) slab with a *static* start -> unstrided loads only.
    def slab(src, r0, c0):
        return src[:, pl.ds(r0, Ho), pl.ds(c0, Wo), :]

    taps = [
        slab(xee_ref, 0, 0), slab(xeo_ref, 0, 0), slab(xee_ref, 0, 1),  # kh=0
        slab(xoe_ref, 0, 0), slab(xoo_ref, 0, 0), slab(xoe_ref, 0, 1),  # kh=1
        slab(xee_ref, 1, 0), slab(xeo_ref, 1, 0), slab(xee_ref, 1, 1),  # kh=2
    ]

    # branch2: max-pool = elementwise max over the nine taps (exact in bf16),
    # one whole-tile store.
    pool = taps[0]
    for t in taps[1:]:
        pool = jnp.maximum(pool, t)
    pool_ref[...] = pool.astype(pool_ref.dtype)

    # branch1: 3x3 stride-2 conv as nine accumulating MXU matmuls, f32 acc.
    # No im2col buffer -> no vector stores in the hot loop.
    M = NB * Ho * Wo
    acc = None
    for t, tap in enumerate(taps):
        part = jnp.dot(tap.reshape(M, Cin),
                       w_ref[pl.ds(t * Cin, Cin), :],
                       preferred_element_type=jnp.float32)
        acc = part if acc is None else acc + part

    y = jnp.maximum(acc * scale_ref[...] + shift_ref[...], 0.0)  # BN + ReLU
    conv_ref[...] = y.reshape(NB, Ho, Wo, Cout).astype(conv_ref.dtype)


def _pick_batch_fold(n, m_img, in_bytes_per_img, target=256,
                     max_in_bytes=6 * 2**20):
    """Fold NB batch images into one step so the matmul M = NB*Ho*Wo reaches
    MXU height, while keeping the per-step input footprint small."""
    if m_img >= target:
        return 1
    best = 1
    for d in range(1, n + 1):
        if n % d or d * in_bytes_per_img > max_in_bytes:
            continue
        best = d
        if d * m_img >= target:
            break
    return best


def incept_block5a(x_nchw, w_oihw, gamma, beta, running_mean, running_var,
                   bn_eps=1e-5):
    """InceptBlock5a forward. x_nchw: (N, 192, H, W) -> (N, 384, Ho, Wo)."""
    N, Cin, H, W = x_nchw.shape
    Cout, Cin_w, KH, KW = w_oihw.shape
    assert Cin_w == Cin and (KH, KW) == (3, 3)
    Ho = (H - KH) // 2 + 1
    Wo = (W - KW) // 2 + 1

    in_elems_per_img = ((Ho + 1) * (Wo + 1) + (Ho + 1) * Wo
                        + Ho * (Wo + 1) + Ho * Wo) * Cin
    NB = _pick_batch_fold(N, Ho * Wo, in_elems_per_img * 2)
    grid = (N // NB,)

    # --- wrapper-side glue (plain XLA): NHWC, bf16, de-interleave rows/cols ---
    x_nhwc = jnp.transpose(x_nchw, (0, 2, 3, 1)).astype(jnp.bfloat16)
    x_e = x_nhwc[:, 0:2 * Ho + 1:2]        # (N, Ho+1, W, Cin) even rows
    x_o = x_nhwc[:, 1:2 * Ho + 1:2]        # (N, Ho,   W, Cin) odd rows
    x_ee = x_e[:, :, 0:2 * Wo + 1:2]       # (N, Ho+1, Wo+1, Cin)
    x_eo = x_e[:, :, 1:2 * Wo + 1:2]       # (N, Ho+1, Wo,   Cin)
    x_oe = x_o[:, :, 0:2 * Wo + 1:2]       # (N, Ho,   Wo+1, Cin)
    x_oo = x_o[:, :, 1:2 * Wo + 1:2]       # (N, Ho,   Wo,   Cin)

    # weights: (Cout, Cin, KH, KW) -> (KH*KW*Cin, Cout), row = (kh*3+kw)*Cin+ci
    w2d = jnp.transpose(w_oihw, (2, 3, 1, 0)).reshape(KH * KW * Cin, Cout)
    w2d = w2d.astype(jnp.bfloat16)

    # fold inference BatchNorm into a per-channel affine, applied in f32
    scale = (gamma.astype(jnp.float32)
             / jnp.sqrt(running_var.astype(jnp.float32) + bn_eps))
    shift = beta.astype(jnp.float32) - running_mean.astype(jnp.float32) * scale
    scale2d = scale.reshape(1, Cout)
    shift2d = shift.reshape(1, Cout)

    kernel = functools.partial(_incept5a_kernel, NB=NB, Ho=Ho, Wo=Wo,
                               Cin=Cin, Cout=Cout)

    def img_spec(h, w):
        return pl.BlockSpec((NB, h, w, Cin), lambda b: (b, 0, 0, 0))

    in_specs = [
        img_spec(Ho + 1, Wo + 1),                                  # x_ee
        img_spec(Ho + 1, Wo),                                      # x_eo
        img_spec(Ho, Wo + 1),                                      # x_oe
        img_spec(Ho, Wo),                                          # x_oo
        # grid-invariant weight / BN blocks: constant index_map -> no re-DMA
        pl.BlockSpec((KH * KW * Cin, Cout), lambda b: (0, 0)),
        pl.BlockSpec((1, Cout), lambda b: (0, 0)),
        pl.BlockSpec((1, Cout), lambda b: (0, 0)),
    ]
    out_specs = (
        pl.BlockSpec((NB, Ho, Wo, Cout), lambda b: (b, 0, 0, 0)),  # conv branch
        pl.BlockSpec((NB, Ho, Wo, Cin), lambda b: (b, 0, 0, 0)),   # pool branch
    )
    out_shape = (
        jax.ShapeDtypeStruct((N, Ho, Wo, Cout), x_nchw.dtype),
        jax.ShapeDtypeStruct((N, Ho, Wo, Cin), x_nchw.dtype),
    )

    # explicit VMEM budget (double-buffered blocks + f32 accum), v7x-safe cap
    per_step = (2 * NB * in_elems_per_img * 2          # 4 input blocks, bf16
                + 2 * KH * KW * Cin * Cout * 2         # weights, bf16
                + 2 * 2 * Cout * 4                     # scale + shift
                + 2 * NB * Ho * Wo * (Cout + Cin) * 4  # both output blocks
                + NB * Ho * Wo * Cout * 4)             # f32 accumulator value
    vmem_limit = int(min(40 * 2**20, max(8 * 2**20, 2 * per_step)))

    flops = 2 * N * Ho * Wo * KH * KW * Cin * Cout
    bytes_accessed = (N * in_elems_per_img * 2                       # inputs
                      + KH * KW * Cin * Cout * 2 + 2 * Cout * 4      # weights/BN
                      + N * Ho * Wo * (Cout + Cin)
                      * x_nchw.dtype.itemsize)                       # outputs

    conv_nhwc, pool_nhwc = pl.pallas_call(
        kernel,
        out_shape=out_shape,
        grid=grid,
        in_specs=in_specs,
        out_specs=out_specs,
        compiler_params=pltpu.CompilerParams(
            dimension_semantics=("parallel",),
            vmem_limit_bytes=vmem_limit),
        cost_estimate=pl.CostEstimate(flops=int(flops), transcendentals=0,
                                      bytes_accessed=int(bytes_accessed)),
    )(x_ee, x_eo, x_oe, x_oo, w2d, scale2d, shift2d)

    # channel concat + NCHW transpose outside the kernel keeps each branch's
    # in-kernel store lane-dense (drop the transpose if the consumer is NHWC)
    out_nhwc = jnp.concatenate([conv_nhwc, pool_nhwc], axis=-1)
    return jnp.transpose(out_nhwc, (0, 3, 1, 2))


def _reference(x, w, gamma, beta, mean, var, eps):
    # The kernel intentionally runs its data path in bf16 (perf guidance), so
    # the reference applies the same input/weight quantization and keeps the
    # accumulation / BN math in f32.
    xs = x.astype(jnp.bfloat16).astype(jnp.float32)
    ws = w.astype(jnp.bfloat16).astype(jnp.float32)
    y = lax.conv_general_dilated(xs, ws, (2, 2), "VALID",
                                 dimension_numbers=("NCHW", "OIHW", "NCHW"),
                                 precision=lax.Precision.HIGHEST)
    s = gamma / jnp.sqrt(var + eps)
    y = y * s[None, :, None, None] + (beta - mean * s)[None, :, None, None]
    y = jnp.maximum(y, 0.0)
    p = lax.reduce_window(xs, -jnp.inf, lax.max,
                          (1, 1, 3, 3), (1, 1, 2, 2), "VALID")
    return jnp.concatenate([y, p], axis=1)


if __name__ == "__main__":
    key = jax.random.PRNGKey(0)
    k1, k2, k3, k4, k5, k6 = jax.random.split(key, 6)

    # in_channels is fixed at 192 by the module; keep batch / spatial small.
    N, Cin, H, W = 2, 192, 17, 17
    Cout = 192
    bn_eps = 1e-5

    x = jax.random.normal(k1, (N, Cin, H, W), jnp.float32)
    w = jax.random.normal(k2, (Cout, Cin, 3, 3), jnp.float32) * 0.05
    gamma = 1.0 + 0.1 * jax.random.normal(k3, (Cout,), jnp.float32)
    beta = 0.1 * jax.random.normal(k4, (Cout,), jnp.float32)
    running_mean = 0.1 * jax.random.normal(k5, (Cout,), jnp.float32)
    running_var = jnp.abs(jax.random.normal(k6, (Cout,), jnp.float32)) + 0.5

    out = incept_block5a(x, w, gamma, beta, running_mean, running_var, bn_eps)
    out = jax.block_until_ready(out)

    Ho = (H - 3) // 2 + 1
    Wo = (W - 3) // 2 + 1
    assert out.shape == (N, Cout + Cin, Ho, Wo), out.shape

    ref = _reference(x, w, gamma, beta, running_mean, running_var, bn_eps)
    max_err = float(jnp.max(jnp.abs(out - ref)))
    assert jnp.allclose(out, ref, rtol=2e-2, atol=2e-2), max_err

    print("KERNEL_OK")
</pallas_src>

<mosaic_0001>
module attributes {stable_mosaic.version = 11 : i64} {
  func.func @_incept5a_kernel(%arg0: i32, %arg1: memref<2x9x9x192xbf16, #tpu.memory_space<vmem>>, %arg2: memref<2x9x8x192xbf16, #tpu.memory_space<vmem>>, %arg3: memref<2x8x9x192xbf16, #tpu.memory_space<vmem>>, %arg4: memref<2x8x8x192xbf16, #tpu.memory_space<vmem>>, %arg5: memref<1728x192xbf16, #tpu.memory_space<vmem>>, %arg6: memref<1x192xf32, #tpu.memory_space<vmem>>, %arg7: memref<1x192xf32, #tpu.memory_space<vmem>>, %arg8: memref<2x8x8x192xf32, #tpu.memory_space<vmem>>, %arg9: memref<2x8x8x192xf32, #tpu.memory_space<vmem>>) attributes {dimension_semantics = [#tpu.dimension_semantics<parallel>], iteration_bounds = array<i64: 1>, scalar_prefetch = 0 : i64, scratch_operands = 0 : i64, tpu.core_type = #tpu.core_type<tc>, window_params = [{transform_indices = @transform_0, window_bounds = array<i64: 2, 9, 9, 192>}, {transform_indices = @transform_1, window_bounds = array<i64: 2, 9, 8, 192>}, {transform_indices = @transform_2, window_bounds = array<i64: 2, 8, 9, 192>}, {transform_indices = @transform_3, window_bounds = array<i64: 2, 8, 8, 192>}, {pipeline_mode = #tpu.pipeline_mode<synchronous>, transform_indices = @transform_4, window_bounds = array<i64: 1728, 192>}, {pipeline_mode = #tpu.pipeline_mode<synchronous>, transform_indices = @transform_5, window_bounds = array<i64: 1, 192>}, {pipeline_mode = #tpu.pipeline_mode<synchronous>, transform_indices = @transform_6, window_bounds = array<i64: 1, 192>}, {transform_indices = @transform_7, window_bounds = array<i64: 2, 8, 8, 192>}, {transform_indices = @transform_8, window_bounds = array<i64: 2, 8, 8, 192>}]} {
    %c0 = arith.constant 0 : index
    %c0_0 = arith.constant 0 : index
    %c0_1 = arith.constant 0 : index
    %c0_2 = arith.constant 0 : index
    %0 = vector.load %arg1[%c0, %c0_0, %c0_1, %c0_2] : memref<2x9x9x192xbf16, #tpu.memory_space<vmem>>, vector<2x8x8x192xbf16>
    %c0_3 = arith.constant 0 : index
    %c0_4 = arith.constant 0 : index
    %c0_5 = arith.constant 0 : index
    %c0_6 = arith.constant 0 : index
    %1 = vector.load %arg2[%c0_3, %c0_4, %c0_5, %c0_6] : memref<2x9x8x192xbf16, #tpu.memory_space<vmem>>, vector<2x8x8x192xbf16>
    %c0_7 = arith.constant 0 : index
    %c0_8 = arith.constant 0 : index
    %c1 = arith.constant 1 : index
    %c0_9 = arith.constant 0 : index
    %2 = vector.load %arg1[%c0_7, %c0_8, %c1, %c0_9] : memref<2x9x9x192xbf16, #tpu.memory_space<vmem>>, vector<2x8x8x192xbf16>
    %c0_10 = arith.constant 0 : index
    %c0_11 = arith.constant 0 : index
    %c0_12 = arith.constant 0 : index
    %c0_13 = arith.constant 0 : index
    %3 = vector.load %arg3[%c0_10, %c0_11, %c0_12, %c0_13] : memref<2x8x9x192xbf16, #tpu.memory_space<vmem>>, vector<2x8x8x192xbf16>
    %c0_14 = arith.constant 0 : index
    %c0_15 = arith.constant 0 : index
    %c0_16 = arith.constant 0 : index
    %c0_17 = arith.constant 0 : index
    %4 = vector.load %arg4[%c0_14, %c0_15, %c0_16, %c0_17] : memref<2x8x8x192xbf16, #tpu.memory_space<vmem>>, vector<2x8x8x192xbf16>
    %c0_18 = arith.constant 0 : index
    %c0_19 = arith.constant 0 : index
    %c1_20 = arith.constant 1 : index
    %c0_21 = arith.constant 0 : index
    %5 = vector.load %arg3[%c0_18, %c0_19, %c1_20, %c0_21] : memref<2x8x9x192xbf16, #tpu.memory_space<vmem>>, vector<2x8x8x192xbf16>
    %c0_22 = arith.constant 0 : index
    %c1_23 = arith.constant 1 : index
    %c0_24 = arith.constant 0 : index
    %c0_25 = arith.constant 0 : index
    %6 = vector.load %arg1[%c0_22, %c1_23, %c0_24, %c0_25] : memref<2x9x9x192xbf16, #tpu.memory_space<vmem>>, vector<2x8x8x192xbf16>
    %c0_26 = arith.constant 0 : index
    %c1_27 = arith.constant 1 : index
    %c0_28 = arith.constant 0 : index
    %c0_29 = arith.constant 0 : index
    %7 = vector.load %arg2[%c0_26, %c1_27, %c0_28, %c0_29] : memref<2x9x8x192xbf16, #tpu.memory_space<vmem>>, vector<2x8x8x192xbf16>
    %c0_30 = arith.constant 0 : index
    %c1_31 = arith.constant 1 : index
    %c1_32 = arith.constant 1 : index
    %c0_33 = arith.constant 0 : index
    %8 = vector.load %arg1[%c0_30, %c1_31, %c1_32, %c0_33] : memref<2x9x9x192xbf16, #tpu.memory_space<vmem>>, vector<2x8x8x192xbf16>
    %9 = arith.maximumf %0, %1 : vector<2x8x8x192xbf16>
    %10 = arith.maximumf %9, %2 : vector<2x8x8x192xbf16>
    %11 = arith.maximumf %10, %3 : vector<2x8x8x192xbf16>
    %12 = arith.maximumf %11, %4 : vector<2x8x8x192xbf16>
    %13 = arith.maximumf %12, %5 : vector<2x8x8x192xbf16>
    %14 = arith.maximumf %13, %6 : vector<2x8x8x192xbf16>
    %15 = arith.maximumf %14, %7 : vector<2x8x8x192xbf16>
    %16 = arith.maximumf %15, %8 : vector<2x8x8x192xbf16>
    %17 = arith.extf %16 : vector<2x8x8x192xbf16> to vector<2x8x8x192xf32>
    %c0_34 = arith.constant 0 : index
    %c0_35 = arith.constant 0 : index
    %c0_36 = arith.constant 0 : index
    %c0_37 = arith.constant 0 : index
    %18 = vector.load %arg9[%c0_34, %c0_35, %c0_36, %c0_37] : memref<2x8x8x192xf32, #tpu.memory_space<vmem>>, vector<2x8x8x192xf32>
    tpu.vector_store %arg9[%c0_34, %c0_35, %c0_36, %c0_37], %17 {strides = array<i32>} : memref<2x8x8x192xf32, #tpu.memory_space<vmem>>, vector<2x8x8x192xf32>,
    %19 = vector.shape_cast %0 : vector<2x8x8x192xbf16> to vector<128x192xbf16>
    %c0_38 = arith.constant 0 : index
    %c0_39 = arith.constant 0 : index
    %20 = vector.load %arg5[%c0_38, %c0_39] : memref<1728x192xbf16, #tpu.memory_space<vmem>>, vector<192x192xbf16>
    %cst = arith.constant dense<0.000000e+00> : vector<128x192xf32>
    %21 = tpu.matmul %19, %20, %cst {dimension_numbers = #tpu.dot_dimension_numbers<[1], [0], [0], [1], [0, 0, 1, 1], [], []>} : vector<128x192xbf16>, vector<192x192xbf16>, vector<128x192xf32> -> vector<128x192xf32>
    %22 = vector.shape_cast %1 : vector<2x8x8x192xbf16> to vector<128x192xbf16>
    %c192 = arith.constant 192 : index
    %c0_40 = arith.constant 0 : index
    %23 = vector.load %arg5[%c192, %c0_40] : memref<1728x192xbf16, #tpu.memory_space<vmem>>, vector<192x192xbf16>
    %cst_41 = arith.constant dense<0.000000e+00> : vector<128x192xf32>
    %24 = tpu.matmul %22, %23, %cst_41 {dimension_numbers = #tpu.dot_dimension_numbers<[1], [0], [0], [1], [0, 0, 1, 1], [], []>} : vector<128x192xbf16>, vector<192x192xbf16>, vector<128x192xf32> -> vector<128x192xf32>
    %25 = arith.addf %21, %24 : vector<128x192xf32>
    %26 = vector.shape_cast %2 : vector<2x8x8x192xbf16> to vector<128x192xbf16>
    %c384 = arith.constant 384 : index
    %c0_42 = arith.constant 0 : index
    %27 = vector.load %arg5[%c384, %c0_42] : memref<1728x192xbf16, #tpu.memory_space<vmem>>, vector<192x192xbf16>
    %cst_43 = arith.constant dense<0.000000e+00> : vector<128x192xf32>
    %28 = tpu.matmul %26, %27, %cst_43 {dimension_numbers = #tpu.dot_dimension_numbers<[1], [0], [0], [1], [0, 0, 1, 1], [], []>} : vector<128x192xbf16>, vector<192x192xbf16>, vector<128x192xf32> -> vector<128x192xf32>
    %29 = arith.addf %25, %28 : vector<128x192xf32>
    %30 = vector.shape_cast %3 : vector<2x8x8x192xbf16> to vector<128x192xbf16>
    %c576 = arith.constant 576 : index
    %c0_44 = arith.constant 0 : index
    %31 = vector.load %arg5[%c576, %c0_44] : memref<1728x192xbf16, #tpu.memory_space<vmem>>, vector<192x192xbf16>
    %cst_45 = arith.constant dense<0.000000e+00> : vector<128x192xf32>
    %32 = tpu.matmul %30, %31, %cst_45 {dimension_numbers = #tpu.dot_dimension_numbers<[1], [0], [0], [1], [0, 0, 1, 1], [], []>} : vector<128x192xbf16>, vector<192x192xbf16>, vector<128x192xf32> -> vector<128x192xf32>
    %33 = arith.addf %29, %32 : vector<128x192xf32>
    %34 = vector.shape_cast %4 : vector<2x8x8x192xbf16> to vector<128x192xbf16>
    %c768 = arith.constant 768 : index
    %c0_46 = arith.constant 0 : index
    %35 = vector.load %arg5[%c768, %c0_46] : memref<1728x192xbf16, #tpu.memory_space<vmem>>, vector<192x192xbf16>
    %cst_47 = arith.constant dense<0.000000e+00> : vector<128x192xf32>
    %36 = tpu.matmul %34, %35, %cst_47 {dimension_numbers = #tpu.dot_dimension_numbers<[1], [0], [0], [1], [0, 0, 1, 1], [], []>} : vector<128x192xbf16>, vector<192x192xbf16>, vector<128x192xf32> -> vector<128x192xf32>
    %37 = arith.addf %33, %36 : vector<128x192xf32>
    %38 = vector.shape_cast %5 : vector<2x8x8x192xbf16> to vector<128x192xbf16>
    %c960 = arith.constant 960 : index
    %c0_48 = arith.constant 0 : index
    %39 = vector.load %arg5[%c960, %c0_48] : memref<1728x192xbf16, #tpu.memory_space<vmem>>, vector<192x192xbf16>
    %cst_49 = arith.constant dense<0.000000e+00> : vector<128x192xf32>
    %40 = tpu.matmul %38, %39, %cst_49 {dimension_numbers = #tpu.dot_dimension_numbers<[1], [0], [0], [1], [0, 0, 1, 1], [], []>} : vector<128x192xbf16>, vector<192x192xbf16>, vector<128x192xf32> -> vector<128x192xf32>
    %41 = arith.addf %37, %40 : vector<128x192xf32>
    %42 = vector.shape_cast %6 : vector<2x8x8x192xbf16> to vector<128x192xbf16>
    %c1152 = arith.constant 1152 : index
    %c0_50 = arith.constant 0 : index
    %43 = vector.load %arg5[%c1152, %c0_50] : memref<1728x192xbf16, #tpu.memory_space<vmem>>, vector<192x192xbf16>
    %cst_51 = arith.constant dense<0.000000e+00> : vector<128x192xf32>
    %44 = tpu.matmul %42, %43, %cst_51 {dimension_numbers = #tpu.dot_dimension_numbers<[1], [0], [0], [1], [0, 0, 1, 1], [], []>} : vector<128x192xbf16>, vector<192x192xbf16>, vector<128x192xf32> -> vector<128x192xf32>
    %45 = arith.addf %41, %44 : vector<128x192xf32>
    %46 = vector.shape_cast %7 : vector<2x8x8x192xbf16> to vector<128x192xbf16>
    %c1344 = arith.constant 1344 : index
    %c0_52 = arith.constant 0 : index
    %47 = vector.load %arg5[%c1344, %c0_52] : memref<1728x192xbf16, #tpu.memory_space<vmem>>, vector<192x192xbf16>
    %cst_53 = arith.constant dense<0.000000e+00> : vector<128x192xf32>
    %48 = tpu.matmul %46, %47, %cst_53 {dimension_numbers = #tpu.dot_dimension_numbers<[1], [0], [0], [1], [0, 0, 1, 1], [], []>} : vector<128x192xbf16>, vector<192x192xbf16>, vector<128x192xf32> -> vector<128x192xf32>
    %49 = arith.addf %45, %48 : vector<128x192xf32>
    %50 = vector.shape_cast %8 : vector<2x8x8x192xbf16> to vector<128x192xbf16>
    %c1536 = arith.constant 1536 : index
    %c0_54 = arith.constant 0 : index
    %51 = vector.load %arg5[%c1536, %c0_54] : memref<1728x192xbf16, #tpu.memory_space<vmem>>, vector<192x192xbf16>
    %cst_55 = arith.constant dense<0.000000e+00> : vector<128x192xf32>
    %52 = tpu.matmul %50, %51, %cst_55 {dimension_numbers = #tpu.dot_dimension_numbers<[1], [0], [0], [1], [0, 0, 1, 1], [], []>} : vector<128x192xbf16>, vector<192x192xbf16>, vector<128x192xf32> -> vector<128x192xf32>
    %53 = arith.addf %49, %52 : vector<128x192xf32>
    %c0_56 = arith.constant 0 : index
    %c0_57 = arith.constant 0 : index
    %54 = vector.load %arg6[%c0_56, %c0_57] : memref<1x192xf32, #tpu.memory_space<vmem>>, vector<1x192xf32>
    %55 = vector.broadcast %54 : vector<1x192xf32> to vector<128x192xf32>
    %56 = arith.mulf %53, %55 : vector<128x192xf32>
    %c0_58 = arith.constant 0 : index
    %c0_59 = arith.constant 0 : index
    %57 = vector.load %arg7[%c0_58, %c0_59] : memref<1x192xf32, #tpu.memory_space<vmem>>, vector<1x192xf32>
    %58 = vector.broadcast %57 : vector<1x192xf32> to vector<128x192xf32>
    %59 = arith.addf %56, %58 : vector<128x192xf32>
    %cst_60 = arith.constant 0.000000e+00 : f32
    %60 = vector.broadcast %cst_60 : f32 to vector<128x192xf32>
    %61 = arith.maximumf %59, %60 : vector<128x192xf32>
    %62 = vector.shape_cast %61 : vector<128x192xf32> to vector<2x8x8x192xf32>
    %c0_61 = arith.constant 0 : index
    %c0_62 = arith.constant 0 : index
    %c0_63 = arith.constant 0 : index
    %c0_64 = arith.constant 0 : index
    %63 = vector.load %arg8[%c0_61, %c0_62, %c0_63, %c0_64] : memref<2x8x8x192xf32, #tpu.memory_space<vmem>>, vector<2x8x8x192xf32>
    tpu.vector_store %arg8[%c0_61, %c0_62, %c0_63, %c0_64], %62 {strides = array<i32>} : memref<2x8x8x192xf32, #tpu.memory_space<vmem>>, vector<2x8x8x192xf32>,
    return
  }
  func.func @transform_0(%arg0: i32) -> (i32, i32, i32, i32) {
    %c0_i32 = arith.constant 0 : i32
    %c0_i32_0 = arith.constant 0 : i32
    %c0_i32_1 = arith.constant 0 : i32
    %c0_i32_2 = arith.constant 0 : i32
    return %arg0, %c0_i32, %c0_i32_0, %c0_i32_1 : i32, i32, i32, i32
  }
  func.func @transform_1(%arg0: i32) -> (i32, i32, i32, i32) {
    %c0_i32 = arith.constant 0 : i32
    %c0_i32_0 = arith.constant 0 : i32
    %c0_i32_1 = arith.constant 0 : i32
    %c0_i32_2 = arith.constant 0 : i32
    return %arg0, %c0_i32, %c0_i32_0, %c0_i32_1 : i32, i32, i32, i32
  }
  func.func @transform_2(%arg0: i32) -> (i32, i32, i32, i32) {
    %c0_i32 = arith.constant 0 : i32
    %c0_i32_0 = arith.constant 0 : i32
    %c0_i32_1 = arith.constant 0 : i32
    %c0_i32_2 = arith.constant 0 : i32
    return %arg0, %c0_i32, %c0_i32_0, %c0_i32_1 : i32, i32, i32, i32
  }
  func.func @transform_3(%arg0: i32) -> (i32, i32, i32, i32) {
    %c0_i32 = arith.constant 0 : i32
    %c0_i32_0 = arith.constant 0 : i32
    %c0_i32_1 = arith.constant 0 : i32
    %c0_i32_2 = arith.constant 0 : i32
    return %arg0, %c0_i32, %c0_i32_0, %c0_i32_1 : i32, i32, i32, i32
  }
  func.func @transform_4(%arg0: i32) -> (i32, i32) {
    %c0_i32 = arith.constant 0 : i32
    %c0_i32_0 = arith.constant 0 : i32
    %c0_i32_1 = arith.constant 0 : i32
    return %c0_i32, %c0_i32_0 : i32, i32
  }
  func.func @transform_5(%arg0: i32) -> (i32, i32) {
    %c0_i32 = arith.constant 0 : i32
    %c0_i32_0 = arith.constant 0 : i32
    %c0_i32_1 = arith.constant 0 : i32
    return %c0_i32, %c0_i32_0 : i32, i32
  }
  func.func @transform_6(%arg0: i32) -> (i32, i32) {
    %c0_i32 = arith.constant 0 : i32
    %c0_i32_0 = arith.constant 0 : i32
    %c0_i32_1 = arith.constant 0 : i32
    return %c0_i32, %c0_i32_0 : i32, i32
  }
  func.func @transform_7(%arg0: i32) -> (i32, i32, i32, i32) {
    %c0_i32 = arith.constant 0 : i32
    %c0_i32_0 = arith.constant 0 : i32
    %c0_i32_1 = arith.constant 0 : i32
    %c0_i32_2 = arith.constant 0 : i32
    return %arg0, %c0_i32, %c0_i32_0, %c0_i32_1 : i32, i32, i32, i32
  }
  func.func @transform_8(%arg0: i32) -> (i32, i32, i32, i32) {
    %c0_i32 = arith.constant 0 : i32
    %c0_i32_0 = arith.constant 0 : i32
    %c0_i32_1 = arith.constant 0 : i32
    %c0_i32_2 = arith.constant 0 : i32
    return %arg0, %c0_i32, %c0_i32_0, %c0_i32_1 : i32, i32, i32, i32
  }
}

</mosaic_0001>

<bundles_post_ra>
// kernel: tpu_custom_call.1
= control target key start
LH: loop header
LB: loop body
LE: loop exit
PB: predicated region body
PF: predicated region fallthrough
CT: control target
= control target key end

     0   :  { %14 = vsyncpa [#allocation3], 0  ;;  %vm193_vm0 = vsmask.f32 3328  ;;  %vm194_vm1 = vsmask.f32 7440  ;;  %s8822_s0 = inlined_call_operand.vmem [shape: bf16[2,9,9,192], index: 0, kind: input, shape index: {}]   ;;  %s8823_s1 = inlined_call_operand.vmem [shape: bf16[2,9,8,192], index: 1, kind: input, shape index: {}]   ;;  %s8824_s2 = inlined_call_operand.vmem [shape: bf16[2,8,9,192], index: 2, kind: input, shape index: {}]   ;;  %s8825_s3 = inlined_call_operand.vmem [shape: bf16[2,8,8,192], index: 3, kind: input, shape index: {}]   ;;  %s8826_s4 = inlined_call_operand.vmem [shape: bf16[1728,192], index: 4, kind: input, shape index: {}]   ;;  %s8827_s5 = inlined_call_operand.vmem [shape: f32[1,192], index: 5, kind: input, shape index: {}]   ;;  %s8828_s6 = inlined_call_operand.vmem [shape: f32[1,192], index: 6, kind: input, shape index: {}]   ;;  %s8829_s7 = inlined_call_operand.hbm [shape: f32[2,8,8,192], index: 7, kind: output, shape index: {0}]   ;;  %s8830_s8 = inlined_call_operand.hbm [shape: f32[2,8,8,192], index: 8, kind: output, shape index: {1}]  }
   0x1   :  { %v5394_v0 = vld [vmem:[%s8826_s4 + $0xc4] ss:$8 sps:$4 sm:$0xff]   ;;  %v5398_v2 = vld [vmem:[%s8826_s4 + $0xc0] ss:$8 sps:$4 sm:$0xff]   ;;  %v5400_v4 = vld [vmem:[%s8826_s4 + $0xd4] ss:$8 sps:$4 sm:$0xff]  }
   0x2   :  { %v5396_v1 = vld [vmem:[%s8826_s4 + $0x304] ss:$8 sps:$4 sm:$0xff]   ;;  %1357 = vmatprep.subr.bf16.mxu1 %v5394_v0  ;;  %v5399_v3 = vld [vmem:[%s8826_s4 + $0x300] ss:$8 sps:$4 sm:$0xff]   ;;  %v5402_v5 = vld [vmem:[%s8826_s4 + $0x314] ss:$8 sps:$4 sm:$0xff]  }
   0x3   :  { %2793 = vmatprep.subr.bf16.mxu0 %v5396_v1  ;;  %1358 = vmatpush1.bf16.msra.mxu1 %v5398_v2  ;;  %v5404_v6 = vld [vmem:[%s8826_s4 + $0xd0] ss:$8 sps:$4 sm:$0xff]   ;;  %v5406_v8 = vld [vmem:[%s8826_s4 + $0xe4] ss:$8 sps:$4 sm:$0xff]   ;;  %v5410_v10 = vld [vmem:[%s8826_s4 + $0xe0] ss:$8 sps:$4 sm:$0xff]  }
   0x4   :  { %2794 = vmatpush1.bf16.msra.mxu0 %v5399_v3  ;;  %1359 = vmatprep.subr.bf16.mxu1 %v5400_v4  ;;  %v5405_v7 = vld [vmem:[%s8826_s4 + $0x310] ss:$8 sps:$4 sm:$0xff]   ;;  %v5408_v9 = vld [vmem:[%s8826_s4 + $0x324] ss:$8 sps:$4 sm:$0xff]   ;;  %v5411_v11 = vld [vmem:[%s8826_s4 + $0x320] ss:$8 sps:$4 sm:$0xff]  }
   0x5   :  { %2795 = vmatprep.subr.bf16.mxu0 %v5402_v5  ;;  %v5412_v12 = vld [vmem:[%s8826_s4 + $0xf4] ss:$8 sps:$4 sm:$0xff]   ;;  %v5416_v14 = vld [vmem:[%s8826_s4 + $0xf0] ss:$8 sps:$4 sm:$0xff]   ;;  %v5418_v16 = vld [vmem:[%s8826_s4 + $0x104] ss:$8 sps:$4 sm:$0xff]  }
   0x6   :  { %v5414_v13 = vld [vmem:[%s8826_s4 + $0x334] ss:$8 sps:$4 sm:$0xff]   ;;  %v5417_v15 = vld [vmem:[%s8826_s4 + $0x330] ss:$8 sps:$4 sm:$0xff]   ;;  %v5420_v17 = vld [vmem:[%s8826_s4 + $0x344] ss:$8 sps:$4 sm:$0xff]  }
   0x7   :  { %1360 = vmatpush1.bf16.msra.mxu1 %v5404_v6  ;;  %v5422_v18 = vld [vmem:[%s8826_s4 + $0x100] ss:$8 sps:$4 sm:$0xff]   ;;  %v5424_v20 = vld [vmem:[%s8826_s4 + $0x114] ss:$8 sps:$4 sm:$0xff]   ;;  %v5428_v22 = vld [vmem:[%s8826_s4 + $0x110] ss:$8 sps:$4 sm:$0xff]  }
   0x8   :  { %2796 = vmatpush1.bf16.msra.mxu0 %v5405_v7  ;;  %1361 = vmatprep.subr.bf16.mxu1 %v5406_v8  ;;  %v5423_v19 = vld [vmem:[%s8826_s4 + $0x340] ss:$8 sps:$4 sm:$0xff]   ;;  %v5426_v21 = vld [vmem:[%s8826_s4 + $0x354] ss:$8 sps:$4 sm:$0xff]   ;;  %v5429_v23 = vld [vmem:[%s8826_s4 + $0x350] ss:$8 sps:$4 sm:$0xff]  }
   0x9   :  { %2797 = vmatprep.subr.bf16.mxu0 %v5408_v9  ;;  %v5430_v24 = vld [vmem:[%s8826_s4 + $0x124] ss:$8 sps:$4 sm:$0xff]   ;;  %v5434_v26 = vld [vmem:[%s8826_s4 + $0x120] ss:$8 sps:$4 sm:$0xff]   ;;  %v5436_v28 = vld [vmem:[%s8826_s4 + $0x134] ss:$8 sps:$4 sm:$0xff]  }
   0xa   :  { %v5432_v25 = vld [vmem:[%s8826_s4 + $0x364] ss:$8 sps:$4 sm:$0xff]   ;;  %v5435_v27 = vld [vmem:[%s8826_s4 + $0x360] ss:$8 sps:$4 sm:$0xff]   ;;  %v5438_v29 = vld [vmem:[%s8826_s4 + $0x374] ss:$8 sps:$4 sm:$0xff]  }
   0xb   :  { %1362 = vmatpush1.bf16.msra.mxu1 %v5410_v10  ;;  %v5440_v30 = vld [vmem:[%s8826_s4 + $0x130] ss:$8 sps:$4 sm:$0xff]   ;;  %v5442_v32 = vld [vmem:[%s8826_s4 + $0x144] ss:$8 sps:$4 sm:$0xff]   ;;  %v5446_v34 = vld [vmem:[%s8826_s4 + $0x140] ss:$8 sps:$4 sm:$0xff]  }
   0xc   :  { %2798 = vmatpush1.bf16.msra.mxu0 %v5411_v11  ;;  %1363 = vmatprep.subr.bf16.mxu1 %v5412_v12  ;;  %v5441_v31 = vld [vmem:[%s8826_s4 + $0x370] ss:$8 sps:$4 sm:$0xff]   ;;  %v5444_v33 = vld [vmem:[%s8826_s4 + $0x384] ss:$8 sps:$4 sm:$0xff]   ;;  %v5447_v35 = vld [vmem:[%s8826_s4 + $0x380] ss:$8 sps:$4 sm:$0xff]  }
   0xd   :  { %2799 = vmatprep.subr.bf16.mxu0 %v5414_v13  ;;  %v5448_v36 = vld [vmem:[%s8826_s4 + $0x154] ss:$8 sps:$4 sm:$0xff]   ;;  %v6047_v38 = vld [vmem:[%s8822_s0] sm:$0xff]  ;;  %vm1061_vm2 = vcmask 523264   ;;  %v6062_v41 = vld [vmem:[%s8823_s1 + $0x8] sm:$0xff] }
   0xe   :  { %v5450_v37 = vld [vmem:[%s8826_s4 + $0x394] ss:$8 sps:$4 sm:$0xff]   ;;  %v6057_v40 = vld [vmem:[%s8823_s1] sm:$0xff]  ;;  %v63_v42 = vld [vmem:[%s8822_s0 + $0x8] sm:$0x11]  ;;  %v197_v45 = vshrl.u32 %v6047_v38, 16 }
   0xf   :  { %1364 = vmatpush1.bf16.msra.mxu1 %v5416_v14  ;;  %v6052_v39 = vld [vmem:[%s8822_s0 + $0x10] sm:$0xff]  ;;  %v64_v43 = vld [vmem:[%s8822_s0 + $0x18] sm:$0x11]  ;;  %v177_v44 = vmax.bf16 %v6057_v40, %v6047_v38  ;;  %v200_v48 = vshll.u32 %v6047_v38, 16  ;;  %v206_v49 = vshll.u32 %v63_v42, 16  ;;  %v6084_v51 = vld [vmem:[%s8824_s2] sm:$0xff]  ;;  %v4679_v57 = vcombine.high %v6057_v40, %v6062_v41 }
  0x10   :  { %2800 = vmatpush1.bf16.msra.mxu0 %v5417_v15  ;;  %1365 = vmatprep.subr.bf16.mxu1 %v5418_v16  ;;  %8944 = vst [vmem:[#allocation8_spill] sm:$0xff] %v6052_v39  ;;  %v5452_v46 = vld [vmem:[%s8826_s4 + $0x150] ss:$8 sps:$4 sm:$0xff]   ;;  %v211_v50 = vshrl.u32 %v6052_v39, 16  ;;  %v5454_v52 = vld [vmem:[%s8826_s4 + $0x164] ss:$8 sps:$4 sm:$0xff]   ;;  %v178_v0 = vmax.bf16 %v6062_v41, %v6052_v39  ;;  %vm6139_vm3 = vmor %vm193_vm0, %vm194_vm1 }
  0x11   :  { %2801 = vmatprep.subr.bf16.mxu0 %v5420_v17  ;;  %v5453_v47 = vld [vmem:[%s8826_s4 + $0x390] ss:$8 sps:$4 sm:$0xff]   ;;  %v5456_v53 = vld [vmem:[%s8826_s4 + $0x3a4] ss:$8 sps:$4 sm:$0xff]   ;;  %v199_v54 = vrot.slane %v197_v45, 4  ;;  %v214_v55 = vshll.u32 %v6052_v39, 16  ;;  %4718 = vmatprep.mubr.msk.bf16.mxu1 %vm1061_vm2, %v4679_v57 }
  0x12   :  { %v220_v56 = vshll.u32 %v64_v43, 16  ;;  %v6098_v58 = vld [vmem:[%s8824_s2 + $0x10] sm:$0xff]  ;;  %v202_v59 = vrot.slane %v200_v48, 5  ;;  %v213_v60 = vrot.slane %v211_v50, 4  ;;  %v6103_v61 = vld [vmem:[%s8825_s3] sm:$0xff]  ;;  %v485_v63 = vshrl.u32 %v6084_v51, 16 }
  0x13   :  { %1366 = vmatpush1.bf16.msra.mxu1 %v5422_v18  ;;  %v111_v62 = vld [vmem:[%s8824_s2 + $0x8] sm:$0x11]  ;;  %v208_v1 = vrot.slane %v206_v49, 5  ;;  %v216_v2 = vrot.slane %v214_v55, 5  ;;  %v112_v4 = vld [vmem:[%s8824_s2 + $0x18] sm:$0x11] }
  0x14   :  { %2802 = vmatpush1.bf16.msra.mxu0 %v5423_v19  ;;  %1367 = vmatprep.subr.bf16.mxu1 %v5424_v20  ;;  %v6114_v3 = vld [vmem:[%s8825_s3 + $0x8] sm:$0xff]  ;;  %v488_v5 = vshll.u32 %v6084_v51, 16  ;;  %v203_v6 = vor.u32 %v202_v59, %v199_v54  ;;  %v487_v7 = vrot.slane %v485_v63, 4  ;;  %v499_v8 = vshrl.u32 %v6098_v58, 16  ;;  %v5460_v20 = vld [vmem:[%s8826_s4 + $0x174] ss:$8 sps:$4 sm:$0xff]  }
  0x15   :  { %2803 = vmatprep.subr.bf16.mxu0 %v5426_v21  ;;  %v502_v9 = vshll.u32 %v6098_v58, 16  ;;  %v5458_v10 = vld [vmem:[%s8826_s4 + $0x160] ss:$8 sps:$4 sm:$0xff]   ;;  %v217_v11 = vor.u32 %v216_v2, %v213_v60  ;;  %v222_v12 = vrot.slane %v220_v56, 5  ;;  %v494_v14 = vshll.u32 %v111_v62, 16  ;;  %v6175_v45 = vld [vmem:[%s8823_s1 + $0x10] sm:$0xff] }
  0x16   :  { %v490_v13 = vrot.slane %v488_v5, 5  ;;  %v5459_v15 = vld [vmem:[%s8826_s4 + $0x3a0] ss:$8 sps:$4 sm:$0xff]   ;;  %v204_v16 = vrot.slane %v203_v6, 4  ;;  %v501_v17 = vrot.slane %v499_v8, 4  ;;  %v4871_v19 = vcombine.high %v6103_v61, %v6114_v3  ;;  %v98_v55 = vld [vmem:[%s8825_s3 + $0x18] sm:$0xff] }
  0x17   :  { %1368 = vmatpush1.bf16.msra.mxu1 %v5428_v22  ;;  %v504_v18 = vrot.slane %v502_v9, 5  ;;  %v5462_v21 = vld [vmem:[%s8826_s4 + $0x3b4] ss:$8 sps:$4 sm:$0xff]   ;;  %v5469_v48 = vld [vmem:[%s8826_s4] ss:$8 sps:$4 sm:$0xff]   ;;  %v4870_v54 = vcombine.low %v6103_v61, %v6114_v3 }
  0x18   :  { %2804 = vmatpush1.bf16.msra.mxu0 %v5429_v23  ;;  %1369 = vmatprep.subr.bf16.mxu1 %v5430_v24  ;;  %v218_v23 = vrot.slane %v217_v11, 4  ;;  %v491_v24 = vor.u32 %v490_v13, %v487_v7  ;;  %v5473_v49 = vld [vmem:[%s8826_s4 + $0x3c0] ss:$8 sps:$4 sm:$0xff]   ;;  %v6233_v62 = vld [vmem:[%s8822_s0 + $0x50] sm:$0xff]  ;;  %v5488_v7 = vld [vmem:[%s8826_s4 + $0x24] ss:$8 sps:$4 sm:$0xff]  }
  0x19   :  { %2805 = vmatprep.subr.bf16.mxu0 %v5432_v25  ;;  %v508_v25 = vshll.u32 %v112_v4, 16  ;;  %4910 = vmatprep.mubr.msk.bf16.mxu0 %vm1061_vm2, %v4871_v19  ;;  %v6238_v63 = vld [vmem:[%s8823_s1 + $0x20] sm:$0xff]  ;;  %v5476_v5 = vld [vmem:[%s8826_s4 + $0x10] ss:$8 sps:$4 sm:$0xff]   ;;  %v5497_v19 = vld [vmem:[%s8826_s4 + $0x34] ss:$8 sps:$4 sm:$0xff]  }
  0x1a   :  { %8949 = vst [vmem:[#allocation11_spill] sm:$0xff] %v6238_v63  ;;  %v5479_v6 = vld [vmem:[%s8826_s4 + $0x3d0] ss:$8 sps:$4 sm:$0xff]   ;;  %v5491_v8 = vld [vmem:[%s8826_s4 + $0x3e4] ss:$8 sps:$4 sm:$0xff]  }
  0x1b   :  { %1370 = vmatpush1.bf16.msra.mxu1 %v5434_v26  ;;  %v5464_v26 = vld [vmem:[%s8826_s4 + $0x170] ss:$8 sps:$4 sm:$0xff]   ;;  %v510_v43 = vrot.slane %v508_v25, 5  ;;  %v99_v9 = vld [vmem:[%s8825_s3 + $0x20] sm:$0xff] }
  0x1c   :  { %2806 = vmatpush1.bf16.msra.mxu0 %v5435_v27  ;;  %1371 = vmatprep.subr.bf16.mxu1 %v5436_v28  ;;  %v6148_v27 = vsel %vm6139_vm3, %v204_v16, %v208_v1  ;;  %v505_v28 = vor.u32 %v504_v18, %v501_v17  ;;  %v5486_v13 = vld [vmem:[%s8826_s4 + $0x20] ss:$8 sps:$4 sm:$0xff]   ;;  %v6287_v16 = vld [vmem:[%s8823_s1 + $0x30] sm:$0xff] }
  0x1d   :  { %2807 = vmatprep.subr.bf16.mxu0 %v5438_v29  ;;  %8947 = vst [vmem:[#allocation9_spill] sm:$0xff] %v6148_v27  ;;  %v5465_v29 = vld [vmem:[%s8826_s4 + $0x3b0] ss:$8 sps:$4 sm:$0xff]   ;;  %8951 = vst [vmem:[#allocation13_spill] sm:$0xff] %v6287_v16 }
  0x1e   :  { %v506_v42 = vrot.slane %v505_v28, 4  ;;  %v5499_v28 = vld [vmem:[%s8826_s4 + $0x3f0] ss:$8 sps:$4 sm:$0xff]  }
  0x1f   :  { %1372 = vmatpush1.bf16.msra.mxu1 %v5440_v30  ;;  %v6156_v30 = vsel %vm6139_vm3, %v218_v23, %v222_v12 }
  0x20   :  { %2808 = vmatpush1.bf16.msra.mxu0 %v5441_v31  ;;  %1373 = vmatprep.subr.bf16.mxu1 %v5442_v32  ;;  %8948 = vst [vmem:[#allocation10_spill] sm:$0xff] %v6156_v30  ;;  %v436_v31 = vmax.bf16 %v6148_v27, %v177_v44  ;;  %v437_v32 = vmax.bf16 %v6156_v30, %v178_v0  ;;  %v6170_v44 = vld [vmem:[%s8822_s0 + $0x30] sm:$0xff]  ;;  %v6243_v0 = vld [vmem:[%s8823_s1 + $0x28] sm:$0xff] }
  0x21   :  { %2809 = vmatprep.subr.bf16.mxu0 %v5444_v33  ;;  %v492_v33 = vrot.slane %v491_v24, 4  ;;  %v6224_v59 = vsel %vm6139_vm3, %v506_v42, %v510_v43  ;;  %8950 = vst [vmem:[#allocation12_spill] sm:$0xff] %v6243_v0  ;;  %v4683_v17 = vcombine.high %v6238_v63, %v6243_v0  ;;  %v5501_v24 = vld [vmem:[%s8826_s4 + $0x3f4] ss:$8 sps:$4 sm:$0xff]   ;;  %v5505_v42 = vld [vmem:[%s8826_s4 + $0x400] ss:$8 sps:$4 sm:$0xff]  }
  0x23   :  { %1374 = vmatpush1.bf16.msra.mxu1 %v5446_v34  ;;  %v496_v34 = vrot.slane %v494_v14, 5  ;;  %v5489_v14 = vld [vmem:[%s8826_s4 + $0x3e0] ss:$8 sps:$4 sm:$0xff]  }
  0x24   :  { %2810 = vmatpush1.bf16.msra.mxu0 %v5447_v35  ;;  %1375 = vmatprep.subr.bf16.mxu1 %v5448_v36  ;;  %v5471_v35 = vld [vmem:[%s8826_s4 + $0x4] ss:$8 sps:$4 sm:$0xff]  }
  0x25   :  { %2811 = vmatprep.subr.bf16.mxu0 %v5450_v37  ;;  %v5475_v36 = vld [vmem:[%s8826_s4 + $0x3c4] ss:$8 sps:$4 sm:$0xff]   ;;  %v452_v37 = vmax.bf16 %v436_v31, %v6084_v51  ;;  %v97_v51 = vld [vmem:[%s8825_s3 + $0x10] sm:$0xff]  ;;  %v6209_v57 = vsel %vm6139_vm3, %v492_v33, %v496_v34  ;;  %v102_v33 = vld [vmem:[%s8825_s3 + $0x38] sm:$0xff]  ;;  %v4682_v34 = vcombine.low %v6238_v63, %v6243_v0 }
  0x26   :  { %v4873_v2 = vcombine.high %v97_v51, %v98_v55  ;;  %v4872_v12 = vcombine.low %v97_v51, %v98_v55  ;;  %v5507_v31 = vld [vmem:[%s8826_s4 + $0x404] ss:$8 sps:$4 sm:$0xff]   ;;  %v5515_v51 = vld [vmem:[%s8826_s4 + $0x410] ss:$8 sps:$4 sm:$0xff]  }
  0x27   :  { %1376 = vmatpush1.bf16.msra.mxu1 %v5452_v46  ;;  %v6180_v46 = vld [vmem:[%s8823_s1 + $0x18] sm:$0xff]  ;;  %v6368_v55 = vld [vmem:[%s8825_s3 + $0x40] sm:$0xff] }
  0x28   :  { %2812 = vmatpush1.bf16.msra.mxu0 %v5453_v47  ;;  %1377 = vmatprep.subr.bf16.mxu1 %v5454_v52  ;;  %v453_v47 = vmax.bf16 %v437_v32, %v6098_v58  ;;  %v6195_v52 = vmax.bf16 %v452_v37, %v6103_v61  ;;  %v6220_v58 = vld [vmem:[%s8822_s0 + $0x40] sm:$0xff]  ;;  %v4681_v61 = vcombine.high %v6175_v45, %v6180_v46  ;;  %v101_v32 = vld [vmem:[%s8825_s3 + $0x30] sm:$0xff] }
  0x29   :  { %2813 = vmatprep.subr.bf16.mxu0 %v5456_v53  ;;  %v4678_v53 = vcombine.low %v6057_v40, %v6062_v41  ;;  %v5478_v40 = vld [vmem:[%s8826_s4 + $0x14] ss:$8 sps:$4 sm:$0xff]   ;;  %v4680_v11 = vcombine.low %v6175_v45, %v6180_v46  ;;  %v4877_v43 = vcombine.high %v101_v32, %v102_v33 }
  0x2a   :  { %v6205_v56 = vmax.bf16 %v453_v47, %v6114_v3  ;;  %v5481_v41 = vld [vmem:[%s8826_s4 + $0x3d4] ss:$8 sps:$4 sm:$0xff]   ;;  %v724_v60 = vmax.bf16 %v6209_v57, %v6195_v52  ;;  %v5564_v52 = vld [vmem:[%s8826_s4 + $0xb0] ss:$8 sps:$4 sm:$0xff]  }
  0x2b   :  { %1378 = vmatpush1.bf16.msra.mxu1 %v5458_v10  ;;  %v100_v10 = vld [vmem:[%s8825_s3 + $0x28] sm:$0xff]  ;;  %v5514_v47 = vld [vmem:[%s8826_s4 + $0x54] ss:$8 sps:$4 sm:$0xff]  }
  0x2c   :  { %2814 = vmatpush1.bf16.msra.mxu0 %v5459_v15  ;;  %1379 = vmatprep.subr.bf16.mxu1 %v5460_v20  ;;  %v725_v1 = vmax.bf16 %v6224_v59, %v6205_v56  ;;  %v6282_v15 = vld [vmem:[%s8822_s0 + $0x60] sm:$0xff]  ;;  %v4875_v18 = vcombine.high %v99_v9, %v100_v10  ;;  %v6297_v20 = vld [vmem:[%s8822_s0 + $0x70] sm:$0xff] }
  0x2d   :  { %2815 = vmatprep.subr.bf16.mxu0 %v5462_v21  ;;  %v6302_v21 = vld [vmem:[%s8823_s1 + $0x38] sm:$0xff]  ;;  %v6584_v56 = vld [vmem:[%s8822_s0 + $0x90] sm:$0xff] }
  0x2e   :  { %8952 = vst [vmem:[#allocation14_spill] sm:$0xff] %v6302_v21  ;;  %v4685_v37 = vcombine.high %v6287_v16, %v6302_v21 }
  0x2f   :  { %1380 = vmatpush1.bf16.msra.mxu1 %v5464_v26  ;;  %v5495_v26 = vld [vmem:[%s8826_s4 + $0x30] ss:$8 sps:$4 sm:$0xff]  }
  0x30   :  { %2816 = vmatpush1.bf16.msra.mxu0 %v5465_v29  ;;  %1686 = vmatprep.subr.bf16.mxu1 %v5471_v35  ;;  %v5504_v29 = vld [vmem:[%s8826_s4 + $0x44] ss:$8 sps:$4 sm:$0xff]   ;;  %v4874_v35 = vcombine.low %v99_v9, %v100_v10  ;;  %v5521_v9 = vld [vmem:[%s8826_s4 + $0x60] ss:$8 sps:$4 sm:$0xff]  }
  0x31   :  { %3162 = vmatprep.subr.bf16.mxu0 %v5475_v36  ;;  %v5502_v36 = vld [vmem:[%s8826_s4 + $0x40] ss:$8 sps:$4 sm:$0xff]  }
  0x32   :  { %1390 = vmatmul.mubr.bf16.vlgmr.msra.gmra.mrb[0].mxu1 %v4678_v53  ;;  %v6357_v53 = vld [vmem:[%s8823_s1 + $0x48] sm:$0xff] }
  0x33   :  { %2826 = vmatmul.mubr.bf16.vlgmr.msra.gmra.mrb[0].mxu0 %v4870_v54  ;;  %1687 = vmatpush1.bf16.msra.mxu1 %v5469_v48  ;;  %v5517_v48 = vld [vmem:[%s8826_s4 + $0x414] ss:$8 sps:$4 sm:$0xff]   ;;  %8953 = vst [vmem:[#allocation15_spill] sm:$0xff] %v6357_v53  ;;  %v5525_v10 = vld [vmem:[%s8826_s4 + $0x420] ss:$8 sps:$4 sm:$0xff]  }
  0x34   :  { %3163 = vmatpush1.bf16.msra.mxu0 %v5473_v49  ;;  %1688 = vmatprep.subr.bf16.mxu1 %v5478_v40  ;;  %v5512_v49 = vld [vmem:[%s8826_s4 + $0x50] ss:$8 sps:$4 sm:$0xff]   ;;  %v6373_v40 = vld [vmem:[%s8825_s3 + $0x48] sm:$0xff] }
  0x35   :  { %3164 = vmatprep.subr.bf16.mxu0 %v5481_v41  ;;  %4719 = vmatprep.mubr.msk.bf16.mxu1 %vm1061_vm2, %v4681_v61  ;;  %v6362_v54 = vld [vmem:[%s8823_s1 + $0x50] sm:$0xff]  ;;  %v5523_v41 = vld [vmem:[%s8826_s4 + $0x64] ss:$8 sps:$4 sm:$0xff]  }
  0x36   :  { %4911 = vmatprep.mubr.msk.bf16.mxu0 %vm1061_vm2, %v4873_v2  ;;  %8954 = vst [vmem:[#allocation16_spill] sm:$0xff] %v6362_v54  ;;  %v5527_v61 = vld [vmem:[%s8826_s4 + $0x424] ss:$8 sps:$4 sm:$0xff]   ;;  %v4684_v2 = vcombine.low %v6287_v16, %v6302_v21  ;;  %v8974_v21 = vcombine.high %v6047_v38, %v6052_v39 }
  0x37   :  { %1689 = vmatpush1.bf16.msra.mxu1 %v5476_v5  ;;  %v4876_v5 = vcombine.low %v101_v32, %v102_v33  ;;  %v6444_v32 = vld [vmem:[%s8825_s3 + $0x58] sm:$0xff]  ;;  %v117_v16 = vld [vmem:[%s8824_s2 + $0x68] sm:$0x11] }
  0x38   :  { %3165 = vmatpush1.bf16.msra.mxu0 %v5479_v6  ;;  %1690 = vmatprep.subr.bf16.mxu1 %v5488_v7  ;;  %v6386_v6 = vld [vmem:[%s8822_s0 + $0x20] sm:$0xff]  ;;  %v4687_v7 = vcombine.high %v6357_v53, %v6362_v54 }
  0x39   :  { %3166 = vmatprep.subr.bf16.mxu0 %v5491_v8  ;;  %v4879_v8 = vcombine.high %v6368_v55, %v6373_v40 }
  0x3a   :  { %1400 = vmatmul.mubr.bf16.gmra.mrb[4].mxu1 %v4680_v11  ;;  %v6401_v11 = vld [vmem:[%s8822_s0 + $0xe0] sm:$0xff] }
  0x3b   :  { %2836 = vmatmul.mubr.bf16.gmra.mrb[4].mxu0 %v4872_v12  ;;  %1691 = vmatpush1.bf16.msra.mxu1 %v5486_v13  ;;  %8955 = vst [vmem:[#allocation17_spill] sm:$0xff] %v6401_v11  ;;  %v6406_v12 = vld [vmem:[%s8823_s1 + $0x70] sm:$0xff]  ;;  %v225_v13 = vshrl.u32 %v6386_v6, 16 }
  0x3c   :  { %3167 = vmatpush1.bf16.msra.mxu0 %v5489_v14  ;;  %4720 = vmatprep.mubr.msk.bf16.mxu1 %vm1061_vm2, %v4683_v17  ;;  %8956 = vst [vmem:[#allocation18_spill] sm:$0xff] %v6406_v12  ;;  %v228_v14 = vshll.u32 %v6386_v6, 16  ;;  %v5530_v17 = vld [vmem:[%s8826_s4 + $0x74] ss:$8 sps:$4 sm:$0xff]  }
  0x3d   :  { %4912 = vmatprep.mubr.msk.bf16.mxu0 %vm1061_vm2, %v4875_v18  ;;  %1692 = vmatprep.subr.bf16.mxu1 %v5497_v19  ;;  %v5533_v18 = vld [vmem:[%s8826_s4 + $0x434] ss:$8 sps:$4 sm:$0xff]   ;;  %v227_v33 = vrot.slane %v225_v13, 4 }
  0x3e   :  { %3168 = vmatprep.subr.bf16.mxu0 %v5501_v24  ;;  %v5528_v24 = vld [vmem:[%s8826_s4 + $0x70] ss:$8 sps:$4 sm:$0xff]  }
  0x3f   :  { %1693 = vmatpush1.bf16.msra.mxu1 %v5495_v26  ;;  %v5531_v26 = vld [vmem:[%s8826_s4 + $0x430] ss:$8 sps:$4 sm:$0xff]  }
  0x40   :  { %3169 = vmatpush1.bf16.msra.mxu0 %v5499_v28  ;;  %1694 = vmatprep.subr.bf16.mxu1 %v5504_v29  ;;  %v6427_v28 = vld [vmem:[%s8823_s1 + $0x58] sm:$0xff]  ;;  %v6432_v29 = vld [vmem:[%s8823_s1 + $0x60] sm:$0xff] }
  0x41   :  { %3170 = vmatprep.subr.bf16.mxu0 %v5507_v31  ;;  %8957 = vst [vmem:[#allocation19_spill] sm:$0xff] %v6427_v28  ;;  %8958 = vst [vmem:[#allocation20_spill] sm:$0xff] %v6432_v29  ;;  %v6439_v31 = vld [vmem:[%s8825_s3 + $0x50] sm:$0xff] }
  0x42   :  { %1410 = vmatmul.mubr.bf16.gmra.mrb[8].mxu1 %v4682_v34  ;;  %v230_v34 = vrot.slane %v228_v14, 5  ;;  %v4880_v25 = vcombine.low %v6439_v31, %v6444_v32 }
  0x43   :  { %2846 = vmatmul.mubr.bf16.gmra.mrb[8].mxu0 %v4874_v35  ;;  %4721 = vmatprep.mubr.msk.bf16.mxu1 %vm1061_vm2, %v4685_v37  ;;  %v239_v35 = vshrl.u32 %v6170_v44, 16  ;;  %v5543_v37 = vld [vmem:[%s8826_s4 + $0x444] ss:$8 sps:$4 sm:$0xff]  }
  0x44   :  { %1695 = vmatpush1.bf16.msra.mxu1 %v5502_v36  ;;  %4913 = vmatprep.mubr.msk.bf16.mxu0 %vm1061_vm2, %v4877_v43  ;;  %v5540_v36 = vld [vmem:[%s8826_s4 + $0x84] ss:$8 sps:$4 sm:$0xff]   ;;  %v4686_v43 = vcombine.low %v6357_v53, %v6362_v54  ;;  %v116_v54 = vld [vmem:[%s8824_s2 + $0x58] sm:$0x11] }
  0x45   :  { %3171 = vmatpush1.bf16.msra.mxu0 %v5505_v42  ;;  %1696 = vmatprep.subr.bf16.mxu1 %v5514_v47  ;;  %v242_v42 = vshll.u32 %v6170_v44, 16  ;;  %v4878_v47 = vcombine.low %v6368_v55, %v6373_v40  ;;  %v6476_v55 = vld [vmem:[%s8823_s1 + $0x78] sm:$0xff]  ;;  %v241_v13 = vrot.slane %v239_v35, 4  ;;  %v4688_v35 = vcombine.low %v6427_v28, %v6432_v29 }
  0x46   :  { %3172 = vmatprep.subr.bf16.mxu0 %v5517_v48  ;;  %v5538_v48 = vld [vmem:[%s8826_s4 + $0x80] ss:$8 sps:$4 sm:$0xff]   ;;  %8960 = vst [vmem:[#allocation22_spill] sm:$0xff] %v6476_v55  ;;  %v5549_v40 = vld [vmem:[%s8826_s4 + $0x94] ss:$8 sps:$4 sm:$0xff]   ;;  %v564_v53 = vshll.u32 %v116_v54, 16 }
  0x47   :  { %v244_v14 = vrot.slane %v242_v42, 5  ;;  %v6613_v42 = vld [vmem:[%s8824_s2 + $0x20] sm:$0xff] }
  0x48   :  { %1697 = vmatpush1.bf16.msra.mxu1 %v5512_v49  ;;  %v4689_v49 = vcombine.high %v6427_v28, %v6432_v29  ;;  %8965 = vst [vmem:[#allocation27_spill] sm:$0xff] %v6613_v42  ;;  %v5581_v29 = vld [vmem:[%s8826_s4 + $0x490] ss:$8 sps:$4 sm:$0xff]  }
  0x49   :  { %3173 = vmatpush1.bf16.msra.mxu0 %v5515_v51  ;;  %1698 = vmatprep.subr.bf16.mxu1 %v5523_v41  ;;  %v4881_v51 = vcombine.high %v6439_v31, %v6444_v32  ;;  %v5541_v41 = vld [vmem:[%s8826_s4 + $0x440] ss:$8 sps:$4 sm:$0xff]   ;;  %v245_v19 = vor.u32 %v244_v14, %v241_v13  ;;  %v284_v13 = vshll.u32 %v6282_v15, 16  ;;  %v6565_v14 = vmax.bf16 %v724_v60, %v6052_v39 }
  0x4a   :  { %3174 = vmatprep.subr.bf16.mxu0 %v5527_v61  ;;  %1420 = vmatmul.mubr.bf16.gmra.mrb[12].mxu1 %v4684_v2  ;;  %v6471_v61 = vld [vmem:[%s8822_s0 + $0xf0] sm:$0xff]  ;;  %v6484_v2 = vld [vmem:[%s8822_s0 + $0x100] sm:$0xff]  ;;  %v6571_v31 = vmax.bf16 %v6386_v6, %v725_v1 }
  0x4b   :  { %2856 = vmatmul.mubr.bf16.gmra.mrb[12].mxu0 %v4876_v5  ;;  %4722 = vmatprep.mubr.msk.bf16.mxu1 %vm1061_vm2, %v4687_v7  ;;  %8959 = vst [vmem:[#allocation21_spill] sm:$0xff] %v6471_v61  ;;  %v6489_v5 = vld [vmem:[%s8823_s1 + $0x80] sm:$0xff]  ;;  %8963 = vst [vmem:[#allocation25_spill] sm:$0xff] %v6565_v14  ;;  %v5566_v1 = vld [vmem:[%s8826_s4 + $0xb4] ss:$8 sps:$4 sm:$0xff]   ;;  %v6596_v3 = vrot.slane %v245_v19, 4 }
  0x4c   :  { %4914 = vmatprep.mubr.msk.bf16.mxu0 %vm1061_vm2, %v4879_v8  ;;  %1699 = vmatpush1.bf16.msra.mxu1 %v5521_v9  ;;  %8961 = vst [vmem:[#allocation23_spill] sm:$0xff] %v6489_v5  ;;  %v5553_v8 = vld [vmem:[%s8826_s4 + $0x454] ss:$8 sps:$4 sm:$0xff]   ;;  %v256_v9 = vshll.u32 %v6220_v58, 16  ;;  %8964 = vst [vmem:[#allocation26_spill] sm:$0xff] %v6571_v31 }
  0x4d   :  { %3175 = vmatpush1.bf16.msra.mxu0 %v5525_v10  ;;  %1700 = vmatprep.subr.bf16.mxu1 %v5530_v17  ;;  %v231_v10 = vor.u32 %v230_v34, %v227_v33  ;;  %v6501_v17 = vld [vmem:[%s8823_s1 + $0x68] sm:$0xff]  ;;  %v5547_v33 = vld [vmem:[%s8826_s4 + $0x90] ss:$8 sps:$4 sm:$0xff]  }
  0x4e   :  { %3176 = vmatprep.subr.bf16.mxu0 %v5533_v18  ;;  %8962 = vst [vmem:[#allocation24_spill] sm:$0xff] %v6501_v17  ;;  %v6506_v18 = vld [vmem:[%s8825_s3 + $0x60] sm:$0xff]  ;;  %v4691_v23 = vcombine.high %v6501_v17, %v6406_v12  ;;  %v258_v60 = vrot.slane %v256_v9, 5  ;;  %v6618_v19 = vld [vmem:[%s8824_s2 + $0x30] sm:$0xff]  ;;  %v295_v9 = vshrl.u32 %v6297_v20, 16 }
  0x4f   :  { %v6545_v7 = vrot.slane %v231_v10, 4  ;;  %v5554_v32 = vld [vmem:[%s8826_s4 + $0xa0] ss:$8 sps:$4 sm:$0xff]   ;;  %8966 = vst [vmem:[#allocation28_spill] sm:$0xff] %v6618_v19  ;;  %v530_v34 = vshll.u32 %v6618_v19, 16 }
  0x50   :  { %1701 = vmatpush1.bf16.msra.mxu1 %v5528_v24  ;;  %v4690_v24 = vcombine.low %v6501_v17, %v6406_v12  ;;  %v297_v31 = vrot.slane %v295_v9, 4  ;;  %v8982_v17 = vcombine.low %v6209_v57, %v6224_v59 }
  0x51   :  { %3177 = vmatpush1.bf16.msra.mxu0 %v5531_v26  ;;  %1702 = vmatprep.subr.bf16.mxu1 %v5540_v36  ;;  %v6515_v26 = vld [vmem:[%s8825_s3 + $0x68] sm:$0xff]  ;;  %v267_v36 = vshrl.u32 %v6233_v62, 16  ;;  %v532_v30 = vrot.slane %v530_v34, 5  ;;  %v6705_v34 = vld [vmem:[%s8822_s0 + $0xb0] sm:$0xff] }
  0x52   :  { %3178 = vmatprep.subr.bf16.mxu0 %v5543_v37  ;;  %1430 = vmatmul.mubr.bf16.gmra.mrb[16].mxu1 %v4686_v43  ;;  %v253_v37 = vshrl.u32 %v6220_v58, 16  ;;  %v5551_v43 = vld [vmem:[%s8826_s4 + $0x450] ss:$8 sps:$4 sm:$0xff]   ;;  %v4883_v10 = vcombine.high %v6506_v18, %v6515_v26 }
  0x53   :  { %2866 = vmatmul.mubr.bf16.gmra.mrb[16].mxu0 %v4878_v47  ;;  %4723 = vmatprep.mubr.msk.bf16.mxu1 %vm1061_vm2, %v4689_v49  ;;  %v5556_v47 = vld [vmem:[%s8826_s4 + $0xa4] ss:$8 sps:$4 sm:$0xff]   ;;  %v6598_v50 = vrot.slane %v267_v36, 4  ;;  %v6677_v49 = vld [vmem:[%s8824_s2 + $0x50] sm:$0xff] }
  0x54   :  { %4915 = vmatprep.mubr.msk.bf16.mxu0 %vm1061_vm2, %v4881_v51  ;;  %1703 = vmatpush1.bf16.msra.mxu1 %v5538_v48  ;;  %v5559_v48 = vld [vmem:[%s8826_s4 + $0x464] ss:$8 sps:$4 sm:$0xff]   ;;  %v6558_v4 = vrot.slane %v253_v37, 4  ;;  %v5557_v37 = vld [vmem:[%s8826_s4 + $0x460] ss:$8 sps:$4 sm:$0xff]   ;;  %v527_v51 = vshrl.u32 %v6618_v19, 16 }
  0x55   :  { %3179 = vmatpush1.bf16.msra.mxu0 %v5541_v41  ;;  %1704 = vmatprep.subr.bf16.mxu1 %v5549_v40  ;;  %v270_v40 = vshll.u32 %v6233_v62, 16  ;;  %v298_v41 = vshll.u32 %v6297_v20, 16  ;;  %8968 = vst [vmem:[#allocation30_spill] sm:$0xff] %v6677_v49 }
  0x56   :  { %3180 = vmatprep.subr.bf16.mxu0 %v5553_v8  ;;  %v281_v8 = vshrl.u32 %v6282_v15, 16 }
  0x58   :  { %1705 = vmatpush1.bf16.msra.mxu1 %v5547_v33  ;;  %v5569_v33 = vld [vmem:[%s8826_s4 + $0x474] ss:$8 sps:$4 sm:$0xff]   ;;  %v6622_v36 = vrot.slane %v281_v8, 4  ;;  %v5577_v8 = vld [vmem:[%s8826_s4 + $0x484] ss:$8 sps:$4 sm:$0xff]  }
  0x59   :  { %3181 = vmatpush1.bf16.msra.mxu0 %v5551_v43  ;;  %1706 = vmatprep.subr.bf16.mxu1 %v5556_v47  ;;  %v6603_v47 = vld [vmem:[%s8825_s3 + $0x70] sm:$0xff]  ;;  %v6628_v43 = vld [vmem:[%s8822_s0 + $0xa0] sm:$0xff] }
  0x5a   :  { %3182 = vmatprep.subr.bf16.mxu0 %v5559_v48  ;;  %1440 = vmatmul.mubr.bf16.gmra.mrb[20].mxu1 %v4688_v35  ;;  %v6608_v48 = vld [vmem:[%s8825_s3 + $0x78] sm:$0xff]  ;;  %v272_v35 = vrot.slane %v270_v40, 5  ;;  %v259_v40 = vor.u32 %v258_v60, %v6558_v4  ;;  %v4693_v60 = vcombine.high %v6476_v55, %v6489_v5 }
  0x5b   :  { %2876 = vmatmul.mubr.bf16.gmra.mrb[20].mxu0 %v4880_v25  ;;  %4724 = vmatprep.mubr.msk.bf16.mxu1 %vm1061_vm2, %v4691_v23  ;;  %v286_v25 = vrot.slane %v284_v13, 5  ;;  %v5567_v23 = vld [vmem:[%s8826_s4 + $0x470] ss:$8 sps:$4 sm:$0xff]   ;;  %v4882_v13 = vcombine.low %v6506_v18, %v6515_v26  ;;  %v300_v18 = vrot.slane %v298_v41, 5 }
  0x5c   :  { %4916 = vmatprep.mubr.msk.bf16.mxu0 %vm1061_vm2, %v4883_v10  ;;  %1707 = vmatpush1.bf16.msra.mxu1 %v5554_v32  ;;  %v5574_v10 = vld [vmem:[%s8826_s4 + $0x184] ss:$8 sps:$4 sm:$0xff]   ;;  %v513_v32 = vshrl.u32 %v6613_v42, 16  ;;  %v273_v4 = vor.u32 %v272_v35, %v6598_v50  ;;  %v6686_v14 = vrot.slane %v259_v40, 4  ;;  %v114_v41 = vld [vmem:[%s8824_s2 + $0x38] sm:$0x11] }
  0x5d   :  { %3183 = vmatpush1.bf16.msra.mxu0 %v5557_v37  ;;  %1708 = vmatprep.subr.bf16.mxu1 %v5566_v1  ;;  %v516_v37 = vshll.u32 %v6613_v42, 16  ;;  %v4885_v1 = vcombine.high %v6603_v47, %v6608_v48  ;;  %v113_v50 = vld [vmem:[%s8824_s2 + $0x28] sm:$0x11]  ;;  %v287_v12 = vor.u32 %v286_v25, %v6622_v36  ;;  %v555_v40 = vshrl.u32 %v6677_v49, 16 }
  0x5e   :  { %3184 = vmatprep.subr.bf16.mxu0 %v5569_v33  ;;  %v6672_v33 = vld [vmem:[%s8824_s2 + $0x40] sm:$0xff]  ;;  %v558_v25 = vshll.u32 %v6677_v49, 16  ;;  %v6698_v36 = vrot.slane %v273_v4, 4 }
  0x5f   :  { %8967 = vst [vmem:[#allocation29_spill] sm:$0xff] %v6672_v33  ;;  %v518_v9 = vrot.slane %v516_v37, 5  ;;  %v541_v26 = vshrl.u32 %v6672_v33, 16  ;;  %v544_v35 = vshll.u32 %v6672_v33, 16  ;;  %v323_v37 = vshrl.u32 %v6628_v43, 16 }
  0x60   :  { %1709 = vmatpush1.bf16.msra.mxu1 %v5564_v52  ;;  %v515_v52 = vrot.slane %v513_v32, 4  ;;  %8969 = vst [vmem:[#allocation31_spill] sm:$0xff] %v6698_v36  ;;  %v6711_v32 = vrot.slane %v287_v12, 4  ;;  %v560_v12 = vrot.slane %v558_v25, 5 }
  0x61   :  { %3185 = vmatpush1.bf16.msra.mxu0 %v5567_v23  ;;  %2023 = vmatprep.subr.bf16.mxu1 %v5574_v10  ;;  %v529_v23 = vrot.slane %v527_v51, 4  ;;  %v309_v51 = vshrl.u32 %v6584_v56, 16  ;;  %v4692_v10 = vcombine.low %v6476_v55, %v6489_v5  ;;  %v115_v5 = vld [vmem:[%s8824_s2 + $0x48] sm:$0x11]  ;;  %v543_v55 = vrot.slane %v541_v26, 4 }
  0x62   :  { %3547 = vmatprep.subr.bf16.mxu0 %v5577_v8  ;;  %1450 = vmatmul.mubr.bf16.gmra.mrb[24].mxu1 %v4690_v24  ;;  %v301_v8 = vor.u32 %v300_v18, %v297_v31  ;;  %v312_v24 = vshll.u32 %v6584_v56, 16  ;;  %8970 = vst [vmem:[#allocation32_spill] sm:$0xff] %v6711_v32  ;;  %v6717_v31 = vld [vmem:[%s8822_s0 + $0xc0] sm:$0xff]  ;;  %v519_v4 = vor.u32 %v518_v9, %v515_v52  ;;  %v536_v18 = vshll.u32 %v114_v41, 16 }
  0x63   :  { %2886 = vmatmul.mubr.bf16.gmra.mrb[24].mxu0 %v4882_v13  ;;  %4725 = vmatprep.mubr.msk.bf16.mxu1 %vm1061_vm2, %v4693_v60  ;;  %v4884_v13 = vcombine.low %v6603_v47, %v6608_v48  ;;  %v522_v60 = vshll.u32 %v113_v50, 16  ;;  %v546_v27 = vrot.slane %v544_v35, 5  ;;  %v557_v47 = vrot.slane %v555_v40, 4 }
  0x64   :  { %4917 = vmatprep.mubr.msk.bf16.mxu0 %vm1061_vm2, %v4885_v1  ;;  %v533_v1 = vor.u32 %v532_v30, %v529_v23  ;;  %v6730_v30 = vld [vmem:[%s8824_s2 + $0x60] sm:$0xff]  ;;  %v6732_v50 = vrot.slane %v301_v8, 4  ;;  %v311_v41 = vrot.slane %v309_v51, 4  ;;  %v314_v52 = vrot.slane %v312_v24, 5  ;;  %v6742_v8 = vld [vmem:[%s8824_s2 + $0x70] sm:$0xff] }
  0x65   :  { %8971 = vst [vmem:[#allocation33_spill] sm:$0xff] %v6730_v30  ;;  %v326_v35 = vshll.u32 %v6628_v43, 16  ;;  %v337_v9 = vshrl.u32 %v6705_v34, 16  ;;  %v340_v23 = vshll.u32 %v6705_v34, 16  ;;  %v520_v40 = vrot.slane %v519_v4, 4  ;;  %8973 = vst [vmem:[#allocation35_spill] sm:$0xff] %v6742_v8 }
  0x66   :  { %8972 = vst [vmem:[#allocation34_spill] sm:$0xff] %v6732_v50  ;;  %v524_v25 = vrot.slane %v522_v60, 5  ;;  %v538_v48 = vrot.slane %v536_v18, 5  ;;  %v550_v28 = vshll.u32 %v115_v5, 16  ;;  %v534_v51 = vrot.slane %v533_v1, 4 }
  0x67   :  { %v547_v24 = vor.u32 %v546_v27, %v543_v55  ;;  %v561_v26 = vor.u32 %v560_v12, %v557_v47  ;;  %v8975_v4 = vcombine.high %v6209_v57, %v6224_v59  ;;  %v569_v5 = vshrl.u32 %v6730_v30, 16  ;;  %v5575_v18 = vld [vmem:[%s8826_s4 + $0x480] ss:$8 sps:$4 sm:$0xff]   ;;  %v118_v50 = vld [vmem:[%s8824_s2 + $0x78] sm:$0x11] }
  0x68   :  { %v572_v60 = vshll.u32 %v6730_v30, 16  ;;  %v583_v27 = vshrl.u32 %v6742_v8, 16  ;;  %v586_v54 = vshll.u32 %v6742_v8, 16  ;;  %v328_v55 = vrot.slane %v326_v35, 5  ;;  %v5580_v35 = vld [vmem:[%s8826_s4 + $0x194] ss:$8 sps:$4 sm:$0xff]  }
  0x69   :  { %v351_v1 = vshrl.u32 %v6717_v31, 16  ;;  %v6765_v47 = vsel %vm6139_vm3, %v520_v40, %v524_v25  ;;  %v339_v12 = vrot.slane %v337_v9, 4  ;;  %v6780_v40 = vsel %vm6139_vm3, %v534_v51, %v538_v48  ;;  %v5588_v57 = vld [vmem:[%s8826_s4 + $0x1a4] ss:$8 sps:$4 sm:$0xff]  }
  0x6a   :  { %1460 = vmatmul.mubr.bf16.gmra.mrb[28].mxu1 %v4692_v10  ;;  %v315_v10 = vor.u32 %v314_v52, %v311_v41  ;;  %8976 = vst [vmem:[#allocation36_spill] sm:$0xff] %v6765_v47  ;;  %v342_v41 = vrot.slane %v340_v23, 5  ;;  %v6770_v52 = vld [vmem:[%s8822_s0 + $0xd0] sm:$0xff]  ;;  %8977 = vst [vmem:[#allocation37_spill] sm:$0xff] %v6780_v40  ;;  %v562_v9 = vrot.slane %v561_v26, 4  ;;  %v566_v23 = vrot.slane %v564_v53, 5 }
  0x6b   :  { %2896 = vmatmul.mubr.bf16.gmra.mrb[28].mxu0 %v4884_v13  ;;  %4766 = vmatprep.mubr.msk.bf16.mxu1 %vm1061_vm2, %v8974_v21  ;;  %v325_v13 = vrot.slane %v323_v37, 4  ;;  %v5572_v21 = vld [vmem:[%s8826_s4 + $0x180] ss:$8 sps:$4 sm:$0xff]   ;;  %v552_v37 = vrot.slane %v550_v28, 5  ;;  %v548_v28 = vrot.slane %v547_v24, 4  ;;  %v571_v32 = vrot.slane %v569_v5, 4 }
  0x6c   :  { %4958 = vmatprep.mubr.msk.bf16.mxu0 %vm1061_vm2, %v8975_v4  ;;  %v5583_v4 = vld [vmem:[%s8826_s4 + $0x494] ss:$8 sps:$4 sm:$0xff]   ;;  %v574_v0 = vrot.slane %v572_v60, 5  ;;  %v585_v53 = vrot.slane %v583_v27, 4  ;;  %v588_v51 = vrot.slane %v586_v54, 5  ;;  %v6797_v24 = vld [vmem:[%s8824_s2 + $0x80] sm:$0xff]  ;;  %v4921_v60 = vcombine.high %v6765_v47, %v6780_v40 }
  0x6d   :  { %8978 = vst [vmem:[#allocation38_spill] sm:$0xff] %v6797_v24  ;;  %v6799_v25 = vrot.slane %v315_v10, 4  ;;  %v5578_v5 = vld [vmem:[%s8826_s4 + $0x190] ss:$8 sps:$4 sm:$0xff]   ;;  %v329_v27 = vor.u32 %v328_v55, %v325_v13  ;;  %v343_v54 = vor.u32 %v342_v41, %v339_v12  ;;  %v6811_v48 = vrot.slane %v351_v1, 4 }
  0x6e   :  { %v6809_v26 = vld [vmem:[%s8824_s2 + $0x90] sm:$0xff]  ;;  %v8981_v10 = vcombine.low %v6047_v38, %v6052_v39  ;;  %v6828_v13 = vsel %vm6139_vm3, %v562_v9, %v566_v23  ;;  %v578_v55 = vshll.u32 %v117_v16, 16  ;;  %v354_v38 = vshll.u32 %v6717_v31, 16  ;;  %v5591_v16 = vld [vmem:[%s8826_s4 + $0x4a4] ss:$8 sps:$4 sm:$0xff]  }
  0x6f   :  { %8979 = vst [vmem:[#allocation39_spill] sm:$0xff] %v6799_v25  ;;  %8980 = vst [vmem:[#allocation40_spill] sm:$0xff] %v6809_v26  ;;  %v6824_v25 = vsel %vm6139_vm3, %v548_v28, %v552_v37  ;;  %v575_v59 = vor.u32 %v574_v0, %v571_v32  ;;  %v597_v1 = vshrl.u32 %v6797_v24, 16  ;;  %v600_v37 = vshll.u32 %v6797_v24, 16  ;;  %v6844_v0 = vld [vmem:[%s8824_s2 + $0xa0] sm:$0xff] }
  0x70   :  { %8983 = vst [vmem:[#allocation41_spill] sm:$0xff] %v6824_v25  ;;  %8984 = vst [vmem:[#allocation42_spill] sm:$0xff] %v6828_v13  ;;  %v589_v12 = vor.u32 %v588_v51, %v585_v53  ;;  %v5586_v41 = vld [vmem:[%s8826_s4 + $0x1a0] ss:$8 sps:$4 sm:$0xff]   ;;  %v6860_v28 = vrot.slane %v343_v54, 4  ;;  %v365_v9 = vshrl.u32 %v6770_v52, 16  ;;  %v4920_v23 = vcombine.low %v6765_v47, %v6780_v40 }
  0x71   :  { %8985 = vst [vmem:[#allocation43_spill] sm:$0xff] %v6844_v0  ;;  %v5589_v53 = vld [vmem:[%s8826_s4 + $0x4a0] ss:$8 sps:$4 sm:$0xff]   ;;  %v4923_v51 = vcombine.high %v6824_v25, %v6828_v13  ;;  %v6875_v54 = vrot.slane %v354_v38, 5  ;;  %v602_v39 = vrot.slane %v600_v37, 5  ;;  %v368_v40 = vshll.u32 %v6770_v52, 16 }
  0x72   :  { %1719 = vmatmul.mubr.bf16.vlgmr.msra.gmra.mrb[0].mxu1 %v8981_v10  ;;  %8988 = vst [vmem:[#allocation45_spill] sm:$0xff] %v6860_v28  ;;  %v5596_v10 = vld [vmem:[%s8826_s4 + $0x1b4] ss:$8 sps:$4 sm:$0xff]   ;;  %v590_v28 = vrot.slane %v589_v12, 4  ;;  %v5594_v12 = vld [vmem:[%s8826_s4 + $0x1b0] ss:$8 sps:$4 sm:$0xff]  }
  0x73   :  { %3195 = vmatmul.mubr.bf16.vlgmr.msra.gmra.mrb[0].mxu0 %v8982_v17  ;;  %2024 = vmatpush1.bf16.msra.mxu1 %v5572_v21  ;;  %v592_v17 = vshll.u32 %v118_v50, 16  ;;  %v611_v21 = vshrl.u32 %v6809_v26, 16  ;;  %v8986_v50 = vcombine.high %v6386_v6, %v6170_v44  ;;  %v379_v47 = vshrl.u32 %v6401_v11, 16 }
  0x74   :  { %3548 = vmatpush1.bf16.msra.mxu0 %v5575_v18  ;;  %2025 = vmatprep.subr.bf16.mxu1 %v5580_v35  ;;  %v614_v18 = vshll.u32 %v6809_v26, 16  ;;  %v119_v35 = vld [vmem:[%s8824_s2 + $0x88] sm:$0x11]  ;;  %v357_v36 = vor.u32 %v6875_v54, %v6811_v48 }
  0x75   :  { %3549 = vmatprep.subr.bf16.mxu0 %v5583_v4  ;;  %4767 = vmatprep.mubr.msk.bf16.mxu1 %vm1061_vm2, %v8986_v50  ;;  %v6858_v4 = vrot.slane %v329_v27, 4  ;;  %v6873_v27 = vld [vmem:[%s8824_s2 + $0xb0] sm:$0xff]  ;;  %v576_v50 = vrot.slane %v575_v59, 4  ;;  %v594_v32 = vrot.slane %v592_v17, 5  ;;  %v628_v17 = vshll.u32 %v6844_v0, 16 }
  0x76   :  { %4959 = vmatprep.mubr.msk.bf16.mxu0 %vm1061_vm2, %v4921_v60  ;;  %v580_v60 = vrot.slane %v578_v55, 5  ;;  %8989 = vst [vmem:[#allocation46_spill] sm:$0xff] %v6873_v27  ;;  %v599_v55 = vrot.slane %v597_v1, 4  ;;  %v616_v38 = vrot.slane %v614_v18, 5  ;;  %v5599_v59 = vld [vmem:[%s8826_s4 + $0x4b4] ss:$8 sps:$4 sm:$0xff]  }
  0x77   :  { %8987 = vst [vmem:[#allocation44_spill] sm:$0xff] %v6858_v4  ;;  %2026 = vmatpush1.bf16.msra.mxu1 %v5578_v5  ;;  %v120_v5 = vld [vmem:[%s8824_s2 + $0x98] sm:$0x11]  ;;  %v625_v4 = vshrl.u32 %v6844_v0, 16  ;;  %v639_v1 = vshrl.u32 %v6873_v27, 16  ;;  %v6903_v18 = vrot.slane %v365_v9, 4  ;;  %v8992_v9 = vcombine.high %v6220_v58, %v6233_v62 }
  0x78   :  { %3550 = vmatpush1.bf16.msra.mxu0 %v5581_v29  ;;  %2027 = vmatprep.subr.bf16.mxu1 %v5588_v57  ;;  %v613_v29 = vrot.slane %v611_v21, 4  ;;  %v642_v57 = vshll.u32 %v6873_v27, 16  ;;  %v606_v37 = vshll.u32 %v119_v35, 16  ;;  %v620_v63 = vshll.u32 %v120_v5, 16  ;;  %v5600_v54 = vld [vmem:[%s8826_s4 + $0x1c0] ss:$8 sps:$4 sm:$0xff]  }
  0x79   :  { %3551 = vmatprep.subr.bf16.mxu0 %v5591_v16  ;;  %v8990_v16 = vcombine.low %v6386_v6, %v6170_v44  ;;  %8991 = vst [vmem:[#allocation47_spill] sm:$0xff] %v6903_v18  ;;  %v6925_v35 = vsel %vm6139_vm3, %v576_v50, %v580_v60  ;;  %v6929_v48 = vsel %vm6139_vm3, %v590_v28, %v594_v32  ;;  %v630_v5 = vrot.slane %v628_v17, 5  ;;  %v5603_v32 = vld [vmem:[%s8826_s4 + $0x4c0] ss:$8 sps:$4 sm:$0xff]   ;;  %v122_v28 = vld [vmem:[%s8824_s2 + $0xb8] sm:$0x11] }
  0x7a   :  { %8993 = vst [vmem:[#allocation48_spill] sm:$0xff] %v6925_v35  ;;  %8994 = vst [vmem:[#allocation49_spill] sm:$0xff] %v6929_v48  ;;  %v644_v60 = vrot.slane %v642_v57, 5  ;;  %v4922_v50 = vcombine.low %v6824_v25, %v6828_v13  ;;  %v608_v17 = vrot.slane %v606_v37, 5  ;;  %v6956_v57 = vld [vmem:[%s8824_s2 + $0xc0] sm:$0xff] }
  0x7b   :  { %1729 = vmatmul.mubr.bf16.gmra.mrb[4].mxu1 %v8990_v16  ;;  %3205 = vmatmul.mubr.bf16.gmra.mrb[4].mxu0 %v4920_v23  ;;  %v5597_v16 = vld [vmem:[%s8826_s4 + $0x4b0] ss:$8 sps:$4 sm:$0xff]   ;;  %v603_v23 = vor.u32 %v602_v39, %v599_v55  ;;  %v5605_v39 = vld [vmem:[%s8826_s4 + $0x4c4] ss:$8 sps:$4 sm:$0xff]   ;;  %v627_v55 = vrot.slane %v625_v4, 4  ;;  %8996 = vst [vmem:[#allocation51_spill] sm:$0xff] %v6956_v57 }
  0x7c   :  { %2028 = vmatpush1.bf16.msra.mxu1 %v5586_v41  ;;  %3552 = vmatpush1.bf16.msra.mxu0 %v5589_v53  ;;  %v5602_v41 = vld [vmem:[%s8826_s4 + $0x1c4] ss:$8 sps:$4 sm:$0xff]   ;;  %v617_v53 = vor.u32 %v616_v38, %v613_v29  ;;  %v6949_v29 = vrot.slane %v368_v40, 5  ;;  %v4925_v38 = vcombine.high %v6925_v35, %v6929_v48  ;;  %v6961_v40 = vld [vmem:[%s8824_s2 + $0xd0] sm:$0xff]  ;;  %v653_v13 = vshrl.u32 %v6956_v57, 16 }
  0x7d   :  { %4768 = vmatprep.mubr.msk.bf16.mxu1 %vm1061_vm2, %v8992_v9  ;;  %4960 = vmatprep.mubr.msk.bf16.mxu0 %vm1061_vm2, %v4923_v51  ;;  %v121_v51 = vld [vmem:[%s8824_s2 + $0xa8] sm:$0x11]  ;;  %v641_v9 = vrot.slane %v639_v1, 4  ;;  %v622_v1 = vrot.slane %v620_v63, 5  ;;  %8997 = vst [vmem:[#allocation52_spill] sm:$0xff] %v6961_v40  ;;  %v8999_v63 = vcombine.low %v6220_v58, %v6233_v62 }
  0x7e   :  { %2029 = vmatprep.subr.bf16.mxu1 %v5596_v10  ;;  %3553 = vmatprep.subr.bf16.mxu0 %v5599_v59  ;;  %8995 = vst [vmem:[#allocation50_spill] sm:$0xff] %v6949_v29  ;;  %v604_v59 = vrot.slane %v603_v23, 4  ;;  %v618_v10 = vrot.slane %v617_v53, 4  ;;  %v634_v21 = vshll.u32 %v121_v51, 16  ;;  %v5608_v37 = vld [vmem:[%s8826_s4 + $0x1d0] ss:$8 sps:$4 sm:$0xff]  }
  0x7f   :  { %v5613_v23 = vld [vmem:[%s8826_s4 + $0x4d4] ss:$8 sps:$4 sm:$0xff]   ;;  %v648_v53 = vshll.u32 %v122_v28, 16  ;;  %v6976_v51 = vrot.slane %v357_v36, 4  ;;  %v5618_v4 = vld [vmem:[%s8826_s4 + $0x1e4] ss:$8 sps:$4 sm:$0xff]  }
  0x80   :  { %2030 = vmatpush1.bf16.msra.mxu1 %v5594_v12  ;;  %3554 = vmatpush1.bf16.msra.mxu0 %v5597_v16  ;;  %v5610_v16 = vld [vmem:[%s8826_s4 + $0x1d4] ss:$8 sps:$4 sm:$0xff]   ;;  %v5611_v12 = vld [vmem:[%s8826_s4 + $0x4d0] ss:$8 sps:$4 sm:$0xff]   ;;  %v670_v28 = vshll.u32 %v6961_v40, 16  ;;  %v7023_v36 = vsel %vm6139_vm3, %v618_v10, %v622_v1  ;;  %v655_v25 = vrot.slane %v653_v13, 4 }
  0x81   :  { %2031 = vmatprep.subr.bf16.mxu1 %v5602_v41  ;;  %3555 = vmatprep.subr.bf16.mxu0 %v5605_v39  ;;  %v631_v41 = vor.u32 %v630_v5, %v627_v55  ;;  %v645_v39 = vor.u32 %v644_v60, %v641_v9  ;;  %8998 = vst [vmem:[#allocation53_spill] sm:$0xff] %v6976_v51  ;;  %v656_v55 = vshll.u32 %v6956_v57, 16  ;;  %v5621_v60 = vld [vmem:[%s8826_s4 + $0x4e4] ss:$8 sps:$4 sm:$0xff]   ;;  %v636_v51 = vrot.slane %v634_v21, 5 }
  0x82   :  { %v9000_v9 = vcombine.high %v6282_v15, %v6297_v20  ;;  %v7007_v5 = vld [vmem:[%s8824_s2] sm:$0xff]  ;;  %v123_v18 = vld [vmem:[%s8824_s2 + $0xc8] sm:$0x11]  ;;  %v650_v10 = vrot.slane %v648_v53, 5  ;;  %v5624_v13 = vld [vmem:[%s8826_s4 + $0x1f4] ss:$8 sps:$4 sm:$0xff]  }
  0x83   :  { %1739 = vmatmul.mubr.bf16.gmra.mrb[8].mxu1 %v8999_v63  ;;  %3215 = vmatmul.mubr.bf16.gmra.mrb[8].mxu0 %v4922_v50  ;;  %v667_v50 = vshrl.u32 %v6961_v40, 16  ;;  %v7002_v63 = vrot.slane %v379_v47, 4  ;;  %9002 = vst [vmem:[#allocation55_spill] sm:$0xff] %v7007_v5  ;;  %v7019_v47 = vsel %vm6139_vm3, %v604_v59, %v608_v17  ;;  %v632_v59 = vrot.slane %v631_v41, 4  ;;  %v7037_v21 = vld [vmem:[%s8824_s2 + $0xe0] sm:$0xff] }
  0x84   :  { %4769 = vmatprep.mubr.msk.bf16.mxu1 %vm1061_vm2, %v9000_v9  ;;  %2032 = vmatpush1.bf16.msra.mxu1 %v5600_v54  ;;  %v7012_v9 = vld [vmem:[%s8824_s2 + $0x10] sm:$0xff]  ;;  %v124_v54 = vld [vmem:[%s8824_s2 + $0xd8] sm:$0x11]  ;;  %v646_v17 = vrot.slane %v645_v39, 4  ;;  %9004 = vst [vmem:[#allocation57_spill] sm:$0xff] %v7037_v21  ;;  %v4927_v41 = vcombine.high %v7019_v47, %v7023_v36  ;;  %v662_v39 = vshll.u32 %v123_v18, 16  ;;  %v9007_v18 = vcombine.low %v6282_v15, %v6297_v20 }
  0x85   :  { %9001 = vst [vmem:[#allocation54_spill] sm:$0xff] %v7002_v63  ;;  %9003 = vst [vmem:[#allocation56_spill] sm:$0xff] %v7012_v9  ;;  %4961 = vmatprep.mubr.msk.bf16.mxu0 %vm1061_vm2, %v4925_v38  ;;  %3556 = vmatpush1.bf16.msra.mxu0 %v5603_v32  ;;  %v382_v38 = vshll.u32 %v6401_v11, 16  ;;  %v4924_v32 = vcombine.low %v6925_v35, %v6929_v48  ;;  %v5616_v1 = vld [vmem:[%s8826_s4 + $0x1e0] ss:$8 sps:$4 sm:$0xff]   ;;  %v658_v48 = vrot.slane %v656_v55, 5 }
  0x86   :  { %2033 = vmatprep.subr.bf16.mxu1 %v5610_v16  ;;  %3557 = vmatprep.subr.bf16.mxu0 %v5613_v23  ;;  %v5619_v29 = vld [vmem:[%s8826_s4 + $0x4e0] ss:$8 sps:$4 sm:$0xff]   ;;  %v393_v16 = vshrl.u32 %v6471_v61, 16  ;;  %v669_v53 = vrot.slane %v667_v50, 4  ;;  %v672_v35 = vrot.slane %v670_v28, 5  ;;  %v7053_v11 = vld [vmem:[%s8824_s2 + $0xf0] sm:$0xff]  ;;  %v7073_v28 = vsel %vm6139_vm3, %v646_v17, %v650_v10 }
  0x87   :  { %9005 = vst [vmem:[#allocation58_spill] sm:$0xff] %v7053_v11  ;;  %v676_v55 = vshll.u32 %v124_v54, 16  ;;  %v684_v23 = vshll.u32 %v7037_v21, 16  ;;  %v7075_v54 = vrot.slane %v382_v38, 5  ;;  %v695_v50 = vshrl.u32 %v7053_v11, 16 }
  0x88   :  { %2034 = vmatpush1.bf16.msra.mxu1 %v5608_v37  ;;  %v681_v37 = vshrl.u32 %v7037_v21, 16  ;;  %v698_v17 = vshll.u32 %v7053_v11, 16  ;;  %v9008_v10 = vcombine.high %v6584_v56, %v6628_v43  ;;  %v125_v38 = vld [vmem:[%s8824_s2 + $0xe8] sm:$0x11]  ;;  %v7107_v9 = vrot.slane %v393_v16, 4 }
  0x89   :  { %3558 = vmatpush1.bf16.msra.mxu0 %v5611_v12  ;;  %2035 = vmatprep.subr.bf16.mxu1 %v5618_v4  ;;  %v5627_v4 = vld [vmem:[%s8826_s4 + $0x4f4] ss:$8 sps:$4 sm:$0xff]   ;;  %v7069_v12 = vsel %vm6139_vm3, %v632_v59, %v636_v51  ;;  %9006 = vst [vmem:[#allocation59_spill] sm:$0xff] %v7075_v54  ;;  %v5625_v51 = vld [vmem:[%s8826_s4 + $0x4f0] ss:$8 sps:$4 sm:$0xff]   ;;  %v659_v59 = vor.u32 %v658_v48, %v655_v25  ;;  %v664_v48 = vrot.slane %v662_v39, 5 }
  0x8a   :  { %3559 = vmatprep.subr.bf16.mxu0 %v5621_v60  ;;  %v5622_v60 = vld [vmem:[%s8826_s4 + $0x1f0] ss:$8 sps:$4 sm:$0xff]   ;;  %v5635_v25 = vld [vmem:[%s8826_s4 + $0x504] ss:$8 sps:$4 sm:$0xff]   ;;  %v678_v5 = vrot.slane %v676_v55, 5  ;;  %v683_v21 = vrot.slane %v681_v37, 4 }
  0x8b   :  { %1749 = vmatmul.mubr.bf16.gmra.mrb[12].mxu1 %v9007_v18  ;;  %3225 = vmatmul.mubr.bf16.gmra.mrb[12].mxu0 %v4924_v32  ;;  %v5632_v32 = vld [vmem:[%s8826_s4 + $0x204] ss:$8 sps:$4 sm:$0xff]   ;;  %v673_v18 = vor.u32 %v672_v35, %v669_v53  ;;  %v686_v11 = vrot.slane %v684_v23, 5  ;;  %v66_v35 = vld [vmem:[%s8822_s0 + $0x38] sm:$0x11]  ;;  %v4929_v53 = vcombine.high %v7069_v12, %v7073_v28  ;;  %v660_v55 = vrot.slane %v659_v59, 4 }
  0x8c   :  { %4770 = vmatprep.mubr.msk.bf16.mxu1 %vm1061_vm2, %v9008_v10  ;;  %4962 = vmatprep.mubr.msk.bf16.mxu0 %vm1061_vm2, %v4927_v41  ;;  %v65_v10 = vld [vmem:[%s8822_s0 + $0x28] sm:$0x11]  ;;  %v126_v16 = vld [vmem:[%s8824_s2 + $0xf8] sm:$0x11]  ;;  %v248_v41 = vshll.u32 %v66_v35, 16  ;;  %v697_v37 = vrot.slane %v695_v50, 4  ;;  %v4928_v35 = vcombine.low %v7069_v12, %v7073_v28 }
  0x8d   :  { %2036 = vmatpush1.bf16.msra.mxu1 %v5616_v1  ;;  %3560 = vmatpush1.bf16.msra.mxu0 %v5619_v29  ;;  %v234_v39 = vshll.u32 %v65_v10, 16  ;;  %v396_v1 = vshll.u32 %v6471_v61, 16  ;;  %v5630_v23 = vld [vmem:[%s8826_s4 + $0x200] ss:$8 sps:$4 sm:$0xff]   ;;  %v674_v26 = vrot.slane %v673_v18, 4  ;;  %v407_v61 = vshrl.u32 %v6484_v2, 16 }
  0x8e   :  { %2037 = vmatprep.subr.bf16.mxu1 %v5624_v13  ;;  %3561 = vmatprep.subr.bf16.mxu0 %v5627_v4  ;;  %v5633_v13 = vld [vmem:[%s8826_s4 + $0x500] ss:$8 sps:$4 sm:$0xff]   ;;  %v700_v4 = vrot.slane %v698_v17, 5  ;;  %v5640_v29 = vld [vmem:[%s8826_s4 + $0x214] ss:$8 sps:$4 sm:$0xff]   ;;  %v250_v24 = vrot.slane %v248_v41, 5  ;;  %v687_v63 = vor.u32 %v686_v11, %v683_v21  ;;  %v7165_v18 = vsel %vm6139_vm3, %v660_v55, %v664_v48 }
  0x8f   :  { %v236_v10 = vrot.slane %v234_v39, 5  ;;  %v690_v54 = vshll.u32 %v125_v38, 16  ;;  %v704_v8 = vshll.u32 %v126_v16, 16  ;;  %v67_v59 = vld [vmem:[%s8822_s0 + $0x48] sm:$0x11]  ;;  %9013 = vst [vmem:[#allocation61_spill] sm:$0xff] %v7165_v18  ;;  %v9015_v39 = vcombine.high %v6705_v34, %v6717_v31 }
  0x90   :  { %v68_v17 = vld [vmem:[%s8822_s0 + $0x58] sm:$0x11]  ;;  %v7151_v21 = vsel %vm6139_vm3, %v6596_v3, %v250_v24  ;;  %v701_v3 = vor.u32 %v700_v4, %v697_v37  ;;  %v7171_v41 = vrot.slane %v396_v1, 5  ;;  %v7180_v16 = vsel %vm6139_vm3, %v674_v26, %v678_v5 }
  0x91   :  { %2038 = vmatpush1.bf16.msra.mxu1 %v5622_v60  ;;  %3562 = vmatpush1.bf16.msra.mxu0 %v5625_v51  ;;  %v7137_v50 = vsel %vm6139_vm3, %v6545_v7, %v236_v10  ;;  %v5643_v11 = vld [vmem:[%s8826_s4 + $0x514] ss:$8 sps:$4 sm:$0xff]   ;;  %9009 = vst [vmem:[#allocation60_spill] sm:$0xff] %v7151_v21  ;;  %v9010_v7 = vmax.bf16 %v6386_v6, %v6175_v45  ;;  %v262_v51 = vshll.u32 %v67_v59, 16  ;;  %v276_v38 = vshll.u32 %v68_v17, 16 }
  0x92   :  { %2039 = vmatprep.subr.bf16.mxu1 %v5632_v32  ;;  %3563 = vmatprep.subr.bf16.mxu0 %v5635_v25  ;;  %v9011_v32 = vcombine.low %v6584_v56, %v6628_v43  ;;  %v9012_v25 = vcombine.low %v7019_v47, %v7023_v36  ;;  %v9014_v45 = vmax.bf16 %v6180_v46, %v6170_v44  ;;  %v5638_v48 = vld [vmem:[%s8826_s4 + $0x210] ss:$8 sps:$4 sm:$0xff]   ;;  %v692_v26 = vrot.slane %v690_v54, 5  ;;  %v5649_v10 = vld [vmem:[%s8826_s4 + $0x524] ss:$8 sps:$4 sm:$0xff]  }
  0x93   :  { %v438_v60 = vmax.bf16 %v7137_v50, %v9010_v7  ;;  %9016 = vst [vmem:[#allocation62_spill] sm:$0xff] %v7180_v16  ;;  %v5641_v44 = vld [vmem:[%s8826_s4 + $0x510] ss:$8 sps:$4 sm:$0xff]   ;;  %v264_v1 = vrot.slane %v262_v51, 5  ;;  %v278_v55 = vrot.slane %v276_v38, 5  ;;  %v706_v5 = vrot.slane %v704_v8, 5 }
  0x94   :  { %1759 = vmatmul.mubr.bf16.gmra.mrb[16].mxu1 %v9011_v32  ;;  %3235 = vmatmul.mubr.bf16.gmra.mrb[16].mxu0 %v9012_v25  ;;  %v439_v24 = vmax.bf16 %v7151_v21, %v9014_v45  ;;  %v688_v59 = vrot.slane %v687_v63, 4  ;;  %v9018_v54 = vld [vmem:[#allocation31_spill] sm:$0xff]  ;;  %v5644_v63 = vld [vmem:[%s8826_s4 + $0x220] ss:$8 sps:$4 sm:$0xff]   ;;  %v702_v17 = vrot.slane %v701_v3, 4  ;;  %v4931_v45 = vcombine.high %v7165_v18, %v7180_v16 }
  0x95   :  { %4771 = vmatprep.mubr.msk.bf16.mxu1 %vm1061_vm2, %v9015_v39  ;;  %4963 = vmatprep.mubr.msk.bf16.mxu0 %vm1061_vm2, %v4929_v53  ;;  %v454_v46 = vmax.bf16 %v438_v60, %v6613_v42  ;;  %v5646_v53 = vld [vmem:[%s8826_s4 + $0x224] ss:$8 sps:$4 sm:$0xff]   ;;  %v7206_v8 = vsel %vm6139_vm3, %v6686_v14, %v264_v1  ;;  %v9020_v60 = vld [vmem:[#allocation11_spill] sm:$0xff] }
  0x96   :  { %2040 = vmatpush1.bf16.msra.mxu1 %v5630_v23  ;;  %3564 = vmatpush1.bf16.msra.mxu0 %v5633_v13  ;;  %v455_v37 = vmax.bf16 %v439_v24, %v6618_v19  ;;  %v5816_v23 = vld [vmem:[%s8825_s3 + $0x10] sm:$0xff]  ;;  %9017 = vst [vmem:[#allocation63_spill] sm:$0xff] %v7206_v8  ;;  %v9021_v14 = vmax.bf16 %v9020_v60, %v6220_v58  ;;  %v9022_v38 = vld [vmem:[#allocation12_spill] sm:$0xff]  ;;  %v69_v3 = vld [vmem:[%s8822_s0 + $0x68] sm:$0x11] }
  0x97   :  { %2041 = vmatprep.subr.bf16.mxu1 %v5640_v29  ;;  %3565 = vmatprep.subr.bf16.mxu0 %v5643_v11  ;;  %v7201_v13 = vmax.bf16 %v5816_v23, %v454_v46  ;;  %v7211_v29 = vsel %vm6139_vm3, %v9018_v54, %v278_v55  ;;  %v5817_v11 = vld [vmem:[%s8825_s3 + $0x18] sm:$0xff]  ;;  %v9023_v32 = vmax.bf16 %v9022_v38, %v6233_v62  ;;  %v5647_v24 = vld [vmem:[%s8826_s4 + $0x520] ss:$8 sps:$4 sm:$0xff]   ;;  %v290_v39 = vshll.u32 %v69_v3, 16  ;;  %v9038_v46 = vld [vmem:[#allocation42_spill] sm:$0xff] }
  0x98   :  { %9019 = vst [vmem:[#allocation31_spill] sm:$0xff] %v7211_v29  ;;  %v7219_v7 = vmax.bf16 %v5817_v11, %v455_v37  ;;  %v440_v51 = vmax.bf16 %v7206_v8, %v9021_v14  ;;  %v70_v58 = vld [vmem:[%s8822_s0 + $0x78] sm:$0x11]  ;;  %v9024_v62 = vld [vmem:[#allocation36_spill] sm:$0xff]  ;;  %v7253_v60 = vsel %vm6139_vm3, %v688_v59, %v692_v26  ;;  %v7271_v26 = vsel %vm6139_vm3, %v702_v17, %v706_v5  ;;  %v5820_v17 = vld [vmem:[%s8825_s3 + $0x28] sm:$0xff] }
  0x99   :  { %v441_v25 = vmax.bf16 %v7211_v29, %v9023_v32  ;;  %v5654_v37 = vld [vmem:[%s8826_s4 + $0x234] ss:$8 sps:$4 sm:$0xff]   ;;  %v304_v11 = vshll.u32 %v70_v58, 16  ;;  %v5818_v14 = vld [vmem:[%s8822_s0 + $0x100] sm:$0xff]  ;;  %9027 = vst [vmem:[#allocation11_spill] sm:$0xff] %v7271_v26  ;;  %v9037_v32 = vld [vmem:[#allocation41_spill] sm:$0xff] }
  0x9a   :  { %2042 = vmatpush1.bf16.msra.mxu1 %v5638_v48  ;;  %3566 = vmatpush1.bf16.msra.mxu0 %v5641_v44  ;;  %v456_v23 = vmax.bf16 %v440_v51, %v6672_v33  ;;  %v5657_v48 = vld [vmem:[%s8826_s4 + $0x534] ss:$8 sps:$4 sm:$0xff]   ;;  %v292_v44 = vrot.slane %v290_v39, 5  ;;  %v410_v38 = vshll.u32 %v5818_v14, 16  ;;  %v9025_v51 = vld [vmem:[#allocation37_spill] sm:$0xff]  ;;  %v5819_v59 = vld [vmem:[%s8825_s3 + $0x20] sm:$0xff] }
  0x9b   :  { %v457_v54 = vmax.bf16 %v441_v25, %v6677_v49  ;;  %2043 = vmatprep.subr.bf16.mxu1 %v5646_v53  ;;  %3567 = vmatprep.subr.bf16.mxu0 %v5649_v10  ;;  %v9026_v53 = vcombine.low %v6705_v34, %v6717_v31  ;;  %v5652_v10 = vld [vmem:[%s8826_s4 + $0x230] ss:$8 sps:$4 sm:$0xff]   ;;  %v306_v3 = vrot.slane %v304_v11, 5  ;;  %v9030_v11 = vld [vmem:[#allocation32_spill] sm:$0xff]  ;;  %v9060_v19 = vld [vmem:[#allocation45_spill] sm:$0xff] }
  0x9c   :  { %3245 = vmatmul.mubr.bf16.gmra.mrb[20].mxu0 %v4928_v35  ;;  %v7279_v25 = vmax.bf16 %v5819_v59, %v456_v23  ;;  %v9028_v35 = vld [vmem:[#allocation17_spill] sm:$0xff]  ;;  %v5655_v5 = vld [vmem:[%s8826_s4 + $0x530] ss:$8 sps:$4 sm:$0xff]   ;;  %v7299_v14 = vsel %vm6139_vm3, %v9030_v11, %v292_v44  ;;  %v9068_v21 = vld [vmem:[#allocation20_spill] sm:$0xff] }
  0x9d   :  { %1769 = vmatmul.mubr.bf16.gmra.mrb[20].mxu1 %v9026_v53  ;;  %v9029_v39 = vcombine.high %v6770_v52, %v9028_v35  ;;  %4964 = vmatprep.mubr.msk.bf16.mxu0 %vm1061_vm2, %v4931_v45  ;;  %v7294_v23 = vmax.bf16 %v5820_v17, %v457_v54  ;;  %v71_v53 = vld [vmem:[%s8822_s0 + $0x98] sm:$0x11]  ;;  %v72_v45 = vld [vmem:[%s8822_s0 + $0xa8] sm:$0x11]  ;;  %v9034_v59 = vld [vmem:[#allocation14_spill] sm:$0xff] }
  0x9e   :  { %2044 = vmatpush1.bf16.msra.mxu1 %v5644_v63  ;;  %3568 = vmatpush1.bf16.msra.mxu0 %v5647_v24  ;;  %v5661_v54 = vld [vmem:[%s8826_s4 + $0x244] ss:$8 sps:$4 sm:$0xff]   ;;  %v318_v1 = vshll.u32 %v71_v53, 16  ;;  %v332_v4 = vshll.u32 %v72_v45, 16  ;;  %v4933_v63 = vcombine.high %v7253_v60, %v7271_v26  ;;  %v7334_v53 = vrot.slane %v407_v61, 4  ;;  %v9036_v61 = vld [vmem:[#allocation35_spill] sm:$0xff] }
  0x9f   :  { %4772 = vmatprep.mubr.msk.bf16.mxu1 %vm1061_vm2, %v9029_v39  ;;  %v9031_v39 = vld [vmem:[#allocation34_spill] sm:$0xff]  ;;  %v9032_v17 = vld [vmem:[#allocation13_spill] sm:$0xff]  ;;  %2045 = vmatprep.subr.bf16.mxu1 %v5654_v37 }
  0xa0   :  { %v7315_v44 = vsel %vm6139_vm3, %v9031_v39, %v306_v3  ;;  %v9033_v11 = vmax.bf16 %v9032_v17, %v6282_v15  ;;  %3569 = vmatprep.subr.bf16.mxu0 %v5657_v48  ;;  %v5665_v24 = vld [vmem:[%s8826_s4 + $0x544] ss:$8 sps:$4 sm:$0xff]   ;;  %v9035_v3 = vmax.bf16 %v9034_v59, %v6297_v20  ;;  %v7339_v37 = vld [vmem:[%s8822_s0 + $0x30] sm:$0xff]  ;;  %v320_v45 = vrot.slane %v318_v1, 5 }
  0xa1   :  { %v334_v17 = vrot.slane %v332_v4, 5  ;;  %v7349_v59 = vld [vmem:[%s8822_s0 + $0x40] sm:$0xff]  ;;  %v5821_v4 = vld [vmem:[%s8825_s3 + $0x30] sm:$0xff]  ;;  %v9063_v42 = vld [vmem:[#allocation57_spill] sm:$0xff] }
  0xa2   :  { %v442_v58 = vmax.bf16 %v7299_v14, %v9033_v11  ;;  %v443_v39 = vmax.bf16 %v7315_v44, %v9035_v3  ;;  %v7342_v11 = vrot.slane %v410_v38, 5  ;;  %2046 = vmatpush1.bf16.msra.mxu1 %v5652_v10  ;;  %3570 = vmatpush1.bf16.msra.mxu0 %v5655_v5  ;;  %v9039_v38 = vld [vmem:[#allocation39_spill] sm:$0xff]  ;;  %v9041_v55 = vld [vmem:[#allocation50_spill] sm:$0xff] }
  0xa3   :  { %v7364_v20 = vsel %vm6139_vm3, %v9039_v38, %v320_v45  ;;  %2408 = vmatprep.subr.bf16.mxu1 %v5661_v54  ;;  %3932 = vmatprep.subr.bf16.mxu0 %v5665_v24  ;;  %v7384_v45 = vld [vmem:[%s8822_s0 + $0x60] sm:$0xff] }
  0xa4   :  { %v458_v48 = vmax.bf16 %v442_v58, %v6730_v30  ;;  %v459_v3 = vmax.bf16 %v443_v39, %v9036_v61  ;;  %v9040_v39 = vld [vmem:[#allocation44_spill] sm:$0xff]  ;;  %v9042_v58 = vld [vmem:[#allocation47_spill] sm:$0xff]  ;;  %v9050_v30 = vld [vmem:[#allocation54_spill] sm:$0xff] }
  0xa5   :  { %v7369_v15 = vsel %vm6139_vm3, %v9040_v39, %v334_v17  ;;  %v9043_v10 = vor.u32 %v9041_v55, %v9042_v58  ;;  %v5822_v17 = vld [vmem:[%s8825_s3 + $0x38] sm:$0xff]  ;;  %v9047_v58 = vld [vmem:[#allocation16_spill] sm:$0xff] }
  0xa6   :  { %v7359_v1 = vmax.bf16 %v5821_v4, %v458_v48  ;;  %v7379_v48 = vld [vmem:[%s8822_s0 + $0x50] sm:$0xff]  ;;  %v7389_v4 = vmax.bf16 %v5822_v17, %v459_v3  ;;  %v9045_v55 = vld [vmem:[#allocation15_spill] sm:$0xff]  ;;  %v9048_v38 = vmax.bf16 %v9047_v58, %v6628_v43  ;;  %v9052_v17 = vcombine.low %v6770_v52, %v9028_v35 }
  0xa7   :  { %v7374_v5 = vrot.slane %v9043_v10, 4  ;;  %v9046_v54 = vmax.bf16 %v9045_v55, %v6584_v56  ;;  %v73_v10 = vld [vmem:[%s8822_s0 + $0xb8] sm:$0x11]  ;;  %v9053_v56 = vcombine.low %v7165_v18, %v7180_v16  ;;  %v9057_v55 = vld [vmem:[#allocation40_spill] sm:$0xff] }
  0xa8   :  { %9044 = vst [vmem:[#allocation12_spill] sm:$0xff] %v7389_v4  ;;  %v445_v39 = vmax.bf16 %v7369_v15, %v9048_v38  ;;  %v9049_v61 = vld [vmem:[#allocation59_spill] sm:$0xff]  ;;  %1779 = vmatmul.mubr.bf16.gmra.mrb[24].mxu1 %v9052_v17  ;;  %v9056_v17 = vld [vmem:[#allocation38_spill] sm:$0xff]  ;;  %v9078_v16 = vld [vmem:[#allocation8_spill] sm:$0xff] }
  0xa9   :  { %v7395_v24 = vmax.bf16 %v7364_v20, %v9046_v54  ;;  %v9051_v49 = vor.u32 %v9049_v61, %v9050_v30  ;;  %3255 = vmatmul.mubr.bf16.gmra.mrb[24].mxu0 %v9053_v56  ;;  %v74_v54 = vld [vmem:[%s8822_s0 + $0xc8] sm:$0x11]  ;;  %v346_v30 = vshll.u32 %v73_v10, 16  ;;  %v75_v56 = vld [vmem:[%s8822_s0 + $0xd8] sm:$0x11]  ;;  %v9069_v10 = vmax.bf16 %v9068_v21, %v6717_v31 }
  0xaa   :  { %v9054_v61 = vld [vmem:[#allocation21_spill] sm:$0xff]  ;;  %4965 = vmatprep.mubr.msk.bf16.mxu0 %vm1061_vm2, %v4933_v63  ;;  %v461_v43 = vmax.bf16 %v445_v39, %v9057_v55  ;;  %v360_v33 = vshll.u32 %v74_v54, 16  ;;  %v7445_v39 = vld [vmem:[%s8822_s0 + $0x70] sm:$0xff]  ;;  %v7450_v54 = vld [vmem:[%s8822_s0 + $0x80] sm:$0xff]  ;;  %v374_v18 = vshll.u32 %v75_v56, 16 }
  0xab   :  { %v386_v3 = vrot.slane %v9051_v49, 4  ;;  %v413_v49 = vor.u32 %v7342_v11, %v7334_v53  ;;  %v9055_v58 = vcombine.high %v9054_v61, %v6484_v2  ;;  %v348_v11 = vrot.slane %v346_v30, 5  ;;  %v76_v55 = vld [vmem:[%s8822_s0 + $0xe8] sm:$0x11] }
  0xac   :  { %v362_v30 = vrot.slane %v360_v33, 5  ;;  %v9064_v63 = vld [vmem:[#allocation53_spill] sm:$0xff]  ;;  %v388_v4 = vshll.u32 %v76_v55, 16  ;;  %v376_v21 = vrot.slane %v374_v18, 5  ;;  %v9073_v18 = vor.u32 %v7171_v41, %v7107_v9  ;;  %v5824_v9 = vld [vmem:[%s8825_s3 + $0x50] sm:$0xff] }
  0xad   :  { %4773 = vmatprep.mubr.msk.bf16.mxu1 %vm1061_vm2, %v9055_v58  ;;  %v9058_v58 = vld [vmem:[#allocation48_spill] sm:$0xff]  ;;  %v7459_v38 = vsel %vm6139_vm3, %v9060_v19, %v348_v11  ;;  %v9066_v19 = vld [vmem:[#allocation19_spill] sm:$0xff]  ;;  %v5823_v55 = vld [vmem:[%s8825_s3 + $0x48] sm:$0xff]  ;;  %v9079_v53 = vcombine.high %v9078_v16, %v6386_v6 }
  0xae   :  { %9061 = vst [vmem:[#allocation36_spill] sm:$0xff] %v7459_v38  ;;  %v7474_v29 = vsel %vm6139_vm3, %v9064_v63, %v362_v30  ;;  %v9067_v11 = vmax.bf16 %v9066_v19, %v6705_v34  ;;  %v9070_v63 = vmax.bf16 %v9024_v62, %v7201_v13  ;;  %v7497_v56 = vmax.bf16 %v5823_v55, %v461_v43  ;;  %v7502_v30 = vld [vmem:[%s8822_s0 + $0xa0] sm:$0xff]  ;;  %v7516_v19 = vld [vmem:[%s8822_s0 + $0xb0] sm:$0xff]  ;;  %v9075_v55 = vld [vmem:[#allocation9_spill] sm:$0xff] }
  0xaf   :  { %9065 = vst [vmem:[#allocation37_spill] sm:$0xff] %v7474_v29  ;;  %v447_v33 = vmax.bf16 %v7474_v29, %v9069_v10  ;;  %v390_v10 = vrot.slane %v388_v4, 5  ;;  %v9071_v13 = vcombine.low %v9054_v61, %v6484_v2  ;;  %v9072_v62 = vcombine.low %v7253_v60, %v7271_v26  ;;  %v5663_v43 = vld [vmem:[%s8826_s4 + $0x540] ss:$8 sps:$4 sm:$0xff]   ;;  %v5693_v29 = vld [vmem:[%s8826_s4 + $0x584] ss:$8 sps:$4 sm:$0xff]  }
  0xb0   :  { %v446_v8 = vmax.bf16 %v7459_v38, %v9067_v11  ;;  %v7492_v34 = vmax.bf16 %v7339_v37, %v9070_v63  ;;  %v400_v4 = vrot.slane %v9073_v18, 4  ;;  %v9074_v11 = vmax.bf16 %v9025_v51, %v7219_v7 }
  0xb1   :  { %1789 = vmatmul.mubr.bf16.gmra.mrb[28].mxu1 %v9071_v13  ;;  %3265 = vmatmul.mubr.bf16.gmra.mrb[28].mxu0 %v9072_v62  ;;  %v9076_v13 = vld [vmem:[#allocation10_spill] sm:$0xff]  ;;  %v7544_v7 = vsel %vm6139_vm3, %v7374_v5, %v376_v21  ;;  %v7548_v51 = vsel %vm6139_vm3, %v386_v3, %v390_v10 }
  0xb2   :  { %v462_v31 = vmax.bf16 %v446_v8, %v6844_v0  ;;  %v463_v8 = vmax.bf16 %v447_v33, %v6873_v27  ;;  %v7526_v63 = vmax.bf16 %v7349_v59, %v9074_v11  ;;  %v9077_v62 = vcombine.high %v9075_v55, %v9076_v13  ;;  %5006 = vmatprep.mubr.msk.bf16.mxu0 %vm1061_vm2, %v9079_v53  ;;  %v5825_v53 = vld [vmem:[%s8825_s3 + $0x58] sm:$0xff]  ;;  %v9084_v21 = vld [vmem:[#allocation18_spill] sm:$0xff] }
  0xb3   :  { %9080 = vst [vmem:[#allocation17_spill] sm:$0xff] %v7544_v7  ;;  %9081 = vst [vmem:[#allocation32_spill] sm:$0xff] %v7548_v51  ;;  %v414_v33 = vrot.slane %v413_v49, 4  ;;  %v77_v49 = vld [vmem:[%s8822_s0 + $0xf8] sm:$0x11] }
  0xb4   :  { %4814 = vmatprep.mubr.msk.bf16.mxu1 %vm1061_vm2, %v9077_v62  ;;  %v7539_v41 = vmax.bf16 %v5824_v9, %v462_v31  ;;  %v7555_v11 = vmax.bf16 %v5825_v53, %v463_v8  ;;  %v9082_v31 = vld [vmem:[#allocation24_spill] sm:$0xff]  ;;  %v9085_v9 = vmax.bf16 %v9084_v21, %v9028_v35  ;;  %v7580_v35 = vld [vmem:[%s8822_s0 + $0xd0] sm:$0xff]  ;;  %v78_v53 = vld [vmem:[%s8822_s0 + $0x108] sm:$0x11] }
  0xb5   :  { %v9083_v62 = vmax.bf16 %v9082_v31, %v6770_v52  ;;  %v7575_v52 = vld [vmem:[%s8822_s0 + $0xc0] sm:$0xff]  ;;  %v402_v31 = vshll.u32 %v77_v49, 16  ;;  %v416_v18 = vshll.u32 %v78_v53, 16  ;;  %v5671_v53 = vld [vmem:[%s8826_s4 + $0x554] ss:$8 sps:$4 sm:$0xff]  }
  0xb6   :  { %v449_v3 = vmax.bf16 %v7548_v51, %v9085_v9  ;;  %v5659_v21 = vld [vmem:[%s8826_s4 + $0x240] ss:$8 sps:$4 sm:$0xff]   ;;  %v9093_v9 = vcombine.low %v9075_v55, %v9076_v13  ;;  %v5666_v55 = vld [vmem:[%s8826_s4 + $0x250] ss:$8 sps:$4 sm:$0xff]   ;;  %v9113_v51 = vcombine.low %v7339_v37, %v7349_v59 }
  0xb7   :  { %v448_v5 = vmax.bf16 %v7544_v7, %v9083_v62  ;;  %v5826_v49 = vld [vmem:[%s8825_s3 + $0x40] sm:$0xff]  ;;  %v9086_v62 = vmax.bf16 %v7395_v24, %v9056_v17  ;;  %v404_v0 = vrot.slane %v402_v31, 5  ;;  %v418_v31 = vrot.slane %v416_v18, 5  ;;  %v9098_v13 = vld [vmem:[#allocation23_spill] sm:$0xff]  ;;  %v7812_v7 = vld [vmem:[%s8823_s1 + $0x50] sm:$0xff] }
  0xb8   :  { %v465_v10 = vmax.bf16 %v449_v3, %v6961_v40  ;;  %v5668_v3 = vld [vmem:[%s8826_s4 + $0x254] ss:$8 sps:$4 sm:$0xff]   ;;  %v7618_v24 = vld [vmem:[%s8822_s0 + $0xe0] sm:$0xff] }
  0xb9   :  { %v464_v8 = vmax.bf16 %v448_v5, %v6956_v57  ;;  %v476_v27 = vmax.bf16 %v5826_v49, %v9086_v62  ;;  %v9087_v62 = vmax.bf16 %v9037_v32, %v7279_v25  ;;  %v7633_v40 = vld [vmem:[%s8822_s0 + $0xf0] sm:$0xff]  ;;  %v7637_v18 = vsel %vm6139_vm3, %v400_v4, %v404_v0  ;;  %2056 = vmatmul.mubr.bf16.vlgmr.msra.gmra.mrb[0].mxu1 %v9093_v9 }
  0xba   :  { %9089 = vst [vmem:[#allocation13_spill] sm:$0xff] %v7637_v18  ;;  %v9090_v32 = vmax.bf16 %v9038_v46, %v7294_v23  ;;  %v9094_v0 = vcombine.low %v9078_v16, %v6386_v6  ;;  %v7661_v23 = vsel %vm6139_vm3, %v414_v33, %v418_v31  ;;  %v9096_v4 = vld [vmem:[#allocation22_spill] sm:$0xff]  ;;  %2409 = vmatpush1.bf16.msra.mxu1 %v5659_v21  ;;  %v5679_v21 = vld [vmem:[%s8826_s4 + $0x564] ss:$8 sps:$4 sm:$0xff]   ;;  %v885_v57 = vshrl.u32 %v7502_v30, 16 }
  0xbb   :  { %v7624_v49 = vmax.bf16 %v7379_v48, %v9087_v62  ;;  %v9091_v62 = vmax.bf16 %v9058_v58, %v7359_v1  ;;  %9095 = vst [vmem:[#allocation41_spill] sm:$0xff] %v7661_v23  ;;  %v9097_v1 = vmax.bf16 %v9096_v4, %v9054_v61  ;;  %v5669_v6 = vld [vmem:[%s8826_s4 + $0x550] ss:$8 sps:$4 sm:$0xff]   ;;  %v9099_v33 = vmax.bf16 %v9098_v13, %v6484_v2  ;;  %v5827_v31 = vld [vmem:[%s8825_s3 + $0x60] sm:$0xff]  ;;  %v7774_v16 = vld [vmem:[%s8823_s1 + $0x8] sm:$0xff] }
  0xbc   :  { %v7643_v25 = vmax.bf16 %v7384_v45, %v9090_v32  ;;  %3580 = vmatmul.mubr.bf16.vlgmr.msra.gmra.mrb[0].mxu0 %v9094_v0  ;;  %v732_v9 = vmax.bf16 %v7019_v47, %v476_v27  ;;  %2410 = vmatprep.subr.bf16.mxu1 %v5668_v3  ;;  %v7689_v32 = vmax.bf16 %v5827_v31, %v464_v8  ;;  %v9100_v47 = vld [vmem:[#allocation60_spill] sm:$0xff]  ;;  %v5828_v8 = vld [vmem:[%s8825_s3 + $0x68] sm:$0xff]  ;;  %v9103_v4 = vld [vmem:[#allocation58_spill] sm:$0xff]  ;;  %v887_v38 = vrot.slane %v885_v57, 4 }
  0xbd   :  { %9088 = vst [vmem:[#allocation34_spill] sm:$0xff] %v7624_v49  ;;  %v7649_v5 = vmax.bf16 %v7445_v39, %v9091_v62  ;;  %v450_v58 = vmax.bf16 %v7637_v18, %v9097_v1  ;;  %3933 = vmatpush1.bf16.msra.mxu0 %v5663_v43  ;;  %v451_v61 = vmax.bf16 %v7661_v23, %v9099_v33  ;;  %v5676_v43 = vld [vmem:[%s8826_s4 + $0x264] ss:$8 sps:$4 sm:$0xff]   ;;  %v7718_v13 = vld [vmem:[%s8822_s0 + $0x110] sm:$0xff]  ;;  %v5674_v33 = vld [vmem:[%s8826_s4 + $0x260] ss:$8 sps:$4 sm:$0xff]  }
  0xbe   :  { %3934 = vmatprep.subr.bf16.mxu0 %v5671_v53  ;;  %v9101_v3 = vcombine.high %v7137_v50, %v9100_v47  ;;  %v9102_v53 = vcombine.high %v7339_v37, %v7349_v59  ;;  %v7705_v62 = vmax.bf16 %v5828_v8, %v465_v10  ;;  %9104 = vst [vmem:[#allocation42_spill] sm:$0xff] %v7718_v13  ;;  %v5829_v10 = vld [vmem:[%s8825_s3 + $0x70] sm:$0xff]  ;;  %v7864_v57 = vld [vmem:[%s8823_s1 + $0x20] sm:$0xff] }
  0xbf   :  { %9092 = vst [vmem:[#allocation14_spill] sm:$0xff] %v7649_v5  ;;  %v466_v27 = vmax.bf16 %v450_v58, %v9063_v42  ;;  %v467_v1 = vmax.bf16 %v451_v61, %v9103_v4  ;;  %v7713_v58 = vld [vmem:[%s8822_s0 + $0x100] sm:$0xff]  ;;  %v9105_v61 = vld [vmem:[#allocation49_spill] sm:$0xff]  ;;  %v5830_v0 = vld [vmem:[%s8822_s0 + $0x10] sm:$0xff]  ;;  %2411 = vmatpush1.bf16.msra.mxu1 %v5666_v55  ;;  %v7750_v55 = vmax.bf16 %v7502_v30, %v732_v9 }
  0xc0   :  { %4815 = vmatprep.mubr.msk.bf16.mxu1 %vm1061_vm2, %v9101_v3  ;;  %5007 = vmatprep.mubr.msk.bf16.mxu0 %vm1061_vm2, %v9102_v53  ;;  %v9106_v3 = vld [vmem:[#allocation12_spill] sm:$0xff]  ;;  %v773_v2 = vshrl.u32 %v5830_v0, 16  ;;  %v9111_v46 = vld [vmem:[#allocation62_spill] sm:$0xff]  ;;  %v9112_v17 = vcombine.low %v7137_v50, %v9100_v47  ;;  %v9119_v42 = vld [vmem:[#allocation63_spill] sm:$0xff]  ;;  %v9122_v13 = vcombine.high %v7379_v48, %v7384_v45 }
  0xc1   :  { %v7725_v31 = vmax.bf16 %v5829_v10, %v466_v27  ;;  %v9107_v53 = vmax.bf16 %v9105_v61, %v9106_v3  ;;  %3935 = vmatpush1.bf16.msra.mxu0 %v5669_v6  ;;  %v5677_v27 = vld [vmem:[%s8826_s4 + $0x560] ss:$8 sps:$4 sm:$0xff]   ;;  %v5831_v61 = vld [vmem:[%s8825_s3 + $0x78] sm:$0xff]  ;;  %v776_v6 = vshll.u32 %v5830_v0, 16  ;;  %2412 = vmatprep.subr.bf16.mxu1 %v5676_v43  ;;  %v7794_v4 = vld [vmem:[%s8823_s1 + $0x10] sm:$0xff] }
  0xc2   :  { %v7747_v3 = vmax.bf16 %v5831_v61, %v467_v1  ;;  %3936 = vmatprep.subr.bf16.mxu0 %v5679_v21  ;;  %v9110_v10 = vld [vmem:[#allocation61_spill] sm:$0xff]  ;;  %v5832_v1 = vld [vmem:[%s8822_s0 + $0x20] sm:$0xff]  ;;  %v5681_v43 = vld [vmem:[%s8826_s4 + $0x270] ss:$8 sps:$4 sm:$0xff]   ;;  %2066 = vmatmul.mubr.bf16.gmra.mrb[4].mxu1 %v9112_v17  ;;  %9114 = vst [vmem:[#allocation50_spill] sm:$0xff] %v7794_v4  ;;  %v801_v4 = vshrl.u32 %v7339_v37, 16 }
  0xc3   :  { %v7731_v8 = vmax.bf16 %v7450_v54, %v9107_v53  ;;  %v5683_v53 = vld [vmem:[%s8826_s4 + $0x274] ss:$8 sps:$4 sm:$0xff]   ;;  %v787_v61 = vshrl.u32 %v5832_v1, 16  ;;  %v790_v9 = vshll.u32 %v5832_v1, 16  ;;  %v5685_v21 = vld [vmem:[%s8826_s4 + $0x570] ss:$8 sps:$4 sm:$0xff]   ;;  %2413 = vmatpush1.bf16.msra.mxu1 %v5674_v33 }
  0xc4   :  { %9109 = vst [vmem:[#allocation44_spill] sm:$0xff] %v7747_v3  ;;  %v5687_v0 = vld [vmem:[%s8826_s4 + $0x574] ss:$8 sps:$4 sm:$0xff]   ;;  %3590 = vmatmul.mubr.bf16.gmra.mrb[4].mxu0 %v9113_v51  ;;  %v9115_v1 = vld [vmem:[#allocation25_spill] sm:$0xff]  ;;  %v9116_v3 = vmax.bf16 %v7023_v36, %v7497_v56  ;;  %v9118_v56 = vmax.bf16 %v7069_v12, %v7539_v41  ;;  %2414 = vmatprep.subr.bf16.mxu1 %v5683_v53  ;;  %v899_v12 = vshrl.u32 %v7516_v19, 16  ;;  %v902_v51 = vshll.u32 %v7516_v19, 16 }
  0xc5   :  { %9108 = vst [vmem:[#allocation39_spill] sm:$0xff] %v7731_v8  ;;  %3937 = vmatpush1.bf16.msra.mxu0 %v5677_v27  ;;  %v5690_v17 = vld [vmem:[%s8826_s4 + $0x284] ss:$8 sps:$4 sm:$0xff]   ;;  %v7817_v36 = vld [vmem:[%s8823_s1 + $0x58] sm:$0xff]  ;;  %v775_v27 = vrot.slane %v773_v2, 4  ;;  %5008 = vmatprep.mubr.msk.bf16.mxu0 %vm1061_vm2, %v9122_v13  ;;  %v7840_v2 = vrot.slane %v787_v61, 4 }
  0xc6   :  { %v7802_v50 = vmax.bf16 %v7516_v19, %v9116_v3  ;;  %v7823_v33 = vmax.bf16 %v7575_v52, %v9118_v56  ;;  %v778_v3 = vrot.slane %v776_v6, 5  ;;  %v9120_v47 = vld [vmem:[#allocation31_spill] sm:$0xff]  ;;  %v888_v6 = vshll.u32 %v7502_v30, 16  ;;  %3938 = vmatprep.subr.bf16.mxu0 %v5687_v0  ;;  %v5688_v61 = vld [vmem:[%s8826_s4 + $0x280] ss:$8 sps:$4 sm:$0xff]  }
  0xc7   :  { %v9121_v26 = vcombine.high %v9119_v42, %v9120_v47  ;;  %v792_v56 = vrot.slane %v790_v9, 5  ;;  %v5691_v53 = vld [vmem:[%s8826_s4 + $0x580] ss:$8 sps:$4 sm:$0xff]   ;;  %2415 = vmatpush1.bf16.msra.mxu1 %v5681_v43  ;;  %v5698_v23 = vld [vmem:[%s8826_s4 + $0x294] ss:$8 sps:$4 sm:$0xff]   ;;  %v901_v18 = vrot.slane %v899_v12, 4 }
  0xc8   :  { %v890_v13 = vrot.slane %v888_v6, 5  ;;  %v7874_v0 = vld [vmem:[%s8823_s1 + $0x28] sm:$0xff]  ;;  %v779_v41 = vor.u32 %v778_v3, %v775_v27  ;;  %2416 = vmatprep.subr.bf16.mxu1 %v5690_v17  ;;  %v5701_v43 = vld [vmem:[%s8826_s4 + $0x594] ss:$8 sps:$4 sm:$0xff]   ;;  %v5696_v12 = vld [vmem:[%s8826_s4 + $0x290] ss:$8 sps:$4 sm:$0xff]  }
  0xc9   :  { %4816 = vmatprep.mubr.msk.bf16.mxu1 %vm1061_vm2, %v9121_v26  ;;  %v7846_v26 = vld [vmem:[%s8823_s1 + $0x18] sm:$0xff]  ;;  %3939 = vmatpush1.bf16.msra.mxu0 %v5685_v21  ;;  %9123 = vst [vmem:[#allocation47_spill] sm:$0xff] %v7874_v0  ;;  %v7886_v6 = vld [vmem:[%s8823_s1 + $0x30] sm:$0xff]  ;;  %v7909_v27 = vld [vmem:[%s8823_s1 + $0x40] sm:$0xff]  ;;  %v793_v9 = vor.u32 %v792_v56, %v7840_v2  ;;  %v904_v0 = vrot.slane %v902_v51, 5  ;;  %v804_v51 = vshll.u32 %v7339_v37, 16  ;;  %v9130_v56 = vmax.bf16 %v9110_v10, %v7689_v32 }
  0xca   :  { %3940 = vmatprep.subr.bf16.mxu0 %v5693_v29  ;;  %v7893_v17 = vld [vmem:[%s8823_s1 + $0x38] sm:$0xff]  ;;  %v9125_v29 = vmax.bf16 %v7073_v28, %v7555_v11  ;;  %9126 = vst [vmem:[#allocation16_spill] sm:$0xff] %v7909_v27  ;;  %v891_v49 = vor.u32 %v890_v13, %v887_v38  ;;  %v9127_v28 = vcombine.low %v9119_v42, %v9120_v47  ;;  %v803_v38 = vrot.slane %v801_v4, 4  ;;  %v5705_v47 = vld [vmem:[%s8826_s4 + $0x2a4] ss:$8 sps:$4 sm:$0xff]  }
  0xcb   :  { %9124 = vst [vmem:[#allocation15_spill] sm:$0xff] %v7893_v17  ;;  %v9128_v11 = vcombine.low %v7379_v48, %v7384_v45  ;;  %v9129_v42 = vcombine.high %v7299_v14, %v7315_v44  ;;  %2417 = vmatpush1.bf16.msra.mxu1 %v5688_v61  ;;  %v5709_v13 = vld [vmem:[%s8826_s4 + $0x5a4] ss:$8 sps:$4 sm:$0xff]   ;;  %v7940_v4 = vmax.bf16 %v7618_v24, %v9130_v56  ;;  %v780_v61 = vrot.slane %v779_v41, 4  ;;  %v4671_v21 = vld [vmem:[%s8822_s0 + $0xb8] sm:$0x11] }
  0xcc   :  { %v7899_v3 = vmax.bf16 %v7580_v35, %v9125_v29  ;;  %2076 = vmatmul.mubr.bf16.gmra.mrb[8].mxu1 %v9127_v28  ;;  %v5699_v29 = vld [vmem:[%s8826_s4 + $0x590] ss:$8 sps:$4 sm:$0xff]   ;;  %v9131_v37 = vmax.bf16 %v9111_v46, %v7705_v62  ;;  %v7959_v46 = vld [vmem:[%s8823_s1 + $0x60] sm:$0xff]  ;;  %v806_v62 = vrot.slane %v804_v51, 5  ;;  %v815_v41 = vshrl.u32 %v7349_v59, 16  ;;  %2418 = vmatprep.subr.bf16.mxu1 %v5698_v23 }
  0xcd   :  { %3600 = vmatmul.mubr.bf16.gmra.mrb[8].mxu0 %v9128_v11  ;;  %4817 = vmatprep.mubr.msk.bf16.mxu1 %vm1061_vm2, %v9129_v42  ;;  %v905_v11 = vor.u32 %v904_v0, %v901_v18  ;;  %v9132_v42 = vcombine.high %v7445_v39, %v7450_v54  ;;  %v7964_v18 = vld [vmem:[%s8823_s1 + $0x68] sm:$0xff]  ;;  %v7975_v0 = vld [vmem:[%s8823_s1 + $0x78] sm:$0xff]  ;;  %v794_v56 = vrot.slane %v793_v9, 4  ;;  %v818_v2 = vshll.u32 %v7349_v59, 16 }
  0xce   :  { %v7946_v28 = vmax.bf16 %v7633_v40, %v9131_v37  ;;  %3941 = vmatpush1.bf16.msra.mxu0 %v5691_v53  ;;  %v7970_v53 = vld [vmem:[%s8823_s1 + $0x70] sm:$0xff]  ;;  %v892_v37 = vrot.slane %v891_v49, 4  ;;  %v5703_v23 = vld [vmem:[%s8826_s4 + $0x2a0] ss:$8 sps:$4 sm:$0xff]   ;;  %v9133_v49 = vmax.bf16 %v7253_v60, %v7725_v31  ;;  %v4662_v59 = vld [vmem:[%s8822_s0 + $0x18] sm:$0x11]  ;;  %v807_v10 = vor.u32 %v806_v62, %v803_v38 }
  0xcf   :  { %5009 = vmatprep.mubr.msk.bf16.mxu0 %vm1061_vm2, %v9132_v42  ;;  %3942 = vmatprep.subr.bf16.mxu0 %v5701_v43  ;;  %v906_v42 = vrot.slane %v905_v11, 4  ;;  %v5707_v43 = vld [vmem:[%s8826_s4 + $0x5a0] ss:$8 sps:$4 sm:$0xff]   ;;  %v5712_v60 = vld [vmem:[%s8826_s4 + $0x2b4] ss:$8 sps:$4 sm:$0xff]   ;;  %v782_v31 = vshll.u32 %v4662_v59, 16  ;;  %v9137_v17 = vcombine.high %v7364_v20, %v7369_v15 }
  0xd0   :  { %v7992_v9 = vmax.bf16 %v7713_v58, %v9133_v49  ;;  %v4663_v11 = vld [vmem:[%s8822_s0 + $0x28] sm:$0x11]  ;;  %2419 = vmatpush1.bf16.msra.mxu1 %v5696_v12  ;;  %v8009_v8 = vrot.slane %v815_v41, 4  ;;  %v908_v38 = vshll.u32 %v4671_v21, 16  ;;  %v4664_v62 = vld [vmem:[%s8822_s0 + $0x38] sm:$0x11]  ;;  %v9135_v21 = vcombine.low %v7299_v14, %v7315_v44 }
  0xd1   :  { %v4670_v51 = vld [vmem:[%s8822_s0 + $0xa8] sm:$0x11]  ;;  %v796_v49 = vshll.u32 %v4663_v11, 16  ;;  %2420 = vmatprep.subr.bf16.mxu1 %v5705_v47  ;;  %v784_v47 = vrot.slane %v782_v31, 5  ;;  %v810_v27 = vshll.u32 %v4664_v62, 16  ;;  %v9136_v12 = vcombine.low %v7445_v39, %v7450_v54 }
  0xd2   :  { %9134 = vst [vmem:[#allocation59_spill] sm:$0xff] %v7992_v9  ;;  %v894_v32 = vshll.u32 %v4670_v51, 16  ;;  %3943 = vmatpush1.bf16.msra.mxu0 %v5699_v29  ;;  %v4665_v59 = vld [vmem:[%s8822_s0 + $0x48] sm:$0x11]  ;;  %v808_v51 = vrot.slane %v807_v10, 4  ;;  %v910_v9 = vrot.slane %v908_v38, 5 }
  0xd3   :  { %3944 = vmatprep.subr.bf16.mxu0 %v5709_v13  ;;  %v5715_v29 = vld [vmem:[%s8826_s4 + $0x5b4] ss:$8 sps:$4 sm:$0xff]   ;;  %v798_v41 = vrot.slane %v796_v49, 5  ;;  %v820_v5 = vrot.slane %v818_v2, 5  ;;  %v824_v10 = vshll.u32 %v4665_v59, 16  ;;  %v913_v13 = vshrl.u32 %v7575_v52, 16 }
  0xd4   :  { %v896_v11 = vrot.slane %v894_v32, 5  ;;  %2086 = vmatmul.mubr.bf16.gmra.mrb[12].mxu1 %v9135_v21  ;;  %v9138_v32 = vcombine.high %v7502_v30, %v7516_v19  ;;  %v8041_v14 = vsel %vm6139_vm3, %v780_v61, %v784_v47  ;;  %v812_v31 = vrot.slane %v810_v27, 5  ;;  %v5713_v61 = vld [vmem:[%s8826_s4 + $0x5b0] ss:$8 sps:$4 sm:$0xff]   ;;  %v5720_v62 = vld [vmem:[%s8826_s4 + $0x2c4] ss:$8 sps:$4 sm:$0xff]  }
  0xd5   :  { %3610 = vmatmul.mubr.bf16.gmra.mrb[12].mxu0 %v9136_v12  ;;  %4818 = vmatprep.mubr.msk.bf16.mxu1 %vm1061_vm2, %v9137_v17  ;;  %v8045_v44 = vsel %vm6139_vm3, %v794_v56, %v798_v41  ;;  %v5710_v17 = vld [vmem:[%s8826_s4 + $0x2b0] ss:$8 sps:$4 sm:$0xff]   ;;  %v9139_v49 = vmax.bf16 %v7774_v16, %v9115_v1  ;;  %v5723_v1 = vld [vmem:[%s8826_s4 + $0x5c4] ss:$8 sps:$4 sm:$0xff]   ;;  %v8075_v59 = vsel %vm6139_vm3, %v906_v42, %v910_v9 }
  0xd6   :  { %5010 = vmatprep.mubr.msk.bf16.mxu0 %vm1061_vm2, %v9138_v32  ;;  %v8049_v2 = vsel %vm6139_vm3, %v892_v37, %v896_v11  ;;  %2421 = vmatpush1.bf16.msra.mxu1 %v5703_v23  ;;  %v9140_v12 = vld [vmem:[#allocation50_spill] sm:$0xff]  ;;  %v5063_v23 = vcombine.high %v8041_v14, %v8045_v44  ;;  %v9143_v47 = vmax.bf16 %v7812_v7, %v7750_v55 }
  0xd7   :  { %3945 = vmatpush1.bf16.msra.mxu0 %v5707_v43  ;;  %v1012_v56 = vmax.bf16 %v8041_v14, %v9139_v49  ;;  %v9141_v38 = vld [vmem:[#allocation26_spill] sm:$0xff]  ;;  %v826_v43 = vrot.slane %v824_v10, 5  ;;  %2422 = vmatprep.subr.bf16.mxu1 %v5712_v60  ;;  %v5062_v60 = vcombine.low %v8041_v14, %v8045_v44  ;;  %v4672_v49 = vld [vmem:[%s8822_s0 + $0xc8] sm:$0x11] }
  0xd8   :  { %v9142_v37 = vmax.bf16 %v9140_v12, %v9141_v38  ;;  %3946 = vmatprep.subr.bf16.mxu0 %v5715_v29  ;;  %v1020_v41 = vmax.bf16 %v8049_v2, %v9143_v47  ;;  %v8083_v29 = vrot.slane %v913_v13, 4 }
  0xd9   :  { %v1028_v11 = vunpack.c.l.bf16 %v1012_v56  ;;  %v1029_v21 = vunpack.c.h.bf16 %v1012_v56 }
  0xda   :  { %v1013_v27 = vmax.bf16 %v8045_v44, %v9142_v37 }
  0xdc   :  { %v1030_v10 = vunpack.c.l.bf16 %v1013_v27  ;;  %v1031_v32 = vunpack.c.h.bf16 %v1013_v27 }
  0xdd   :  { %15 = vsyncpa [#allocation5], 0  ;;  %v5718_v55 = vld [vmem:[%s8826_s4 + $0x2c0] ss:$8 sps:$4 sm:$0xff]   ;;  %v9144_v42 = vmax.bf16 %v7817_v36, %v7802_v50  ;;  %v1044_v13 = vunpack.c.l.bf16 %v1020_v41  ;;  %v1045_v38 = vunpack.c.h.bf16 %v1020_v41  ;;  %v5071_v56 = vcombine.high %v8049_v2, %v8075_v59  ;;  %2423 = vmatpush1.bf16.msra.mxu1 %v5710_v17  ;;  %3947 = vmatpush1.bf16.msra.mxu0 %v5713_v61  ;;  %1060 = vst [vmem:[#allocation4] sm:$0xff] %v1028_v11 }
  0xde   :  { %v5721_v37 = vld [vmem:[%s8826_s4 + $0x5c0] ss:$8 sps:$4 sm:$0xff]   ;;  %1062 = vst.msk [vmem:[#allocation4 + $0x8] sm:$0xff] %vm1061_vm2, %v1029_v21  ;;  %1063 = vst [vmem:[#allocation4 + $0x10] sm:$0xff] %v1030_v10  ;;  %v5070_v50 = vcombine.low %v8049_v2, %v8075_v59  ;;  %v8106_v27 = vsel %vm6139_vm3, %v808_v51, %v812_v31  ;;  %v821_v17 = vor.u32 %v820_v5, %v8009_v8  ;;  %v4673_v61 = vld [vmem:[%s8822_s0 + $0xd8] sm:$0x11]  ;;  %2424 = vmatprep.subr.bf16.mxu1 %v5720_v62 }
  0xdf   :  { %v1021_v9 = vmax.bf16 %v8075_v59, %v9144_v42  ;;  %1064 = vst.msk [vmem:[#allocation4 + $0x18] sm:$0xff] %vm1061_vm2, %v1031_v32  ;;  %v916_v47 = vshll.u32 %v7575_v52, 16  ;;  %3948 = vmatprep.subr.bf16.mxu0 %v5723_v1  ;;  %v5727_v41 = vld [vmem:[%s8826_s4 + $0x2d4] ss:$8 sps:$4 sm:$0xff]   ;;  %1077 = vst [vmem:[#allocation4 + $0x80] sm:$0xff] %v1044_v13  ;;  %v9145_v5 = vmax.bf16 %v7846_v26, %v7492_v34  ;;  %v922_v62 = vshll.u32 %v4672_v49, 16 }
  0xe0   :  { %v5731_v11 = vld [vmem:[%s8826_s4 + $0x5d4] ss:$8 sps:$4 sm:$0xff]   ;;  %1078 = vst.msk [vmem:[#allocation4 + $0x88] sm:$0xff] %vm1061_vm2, %v1045_v38  ;;  %v9146_v1 = vcombine.low %v7364_v20, %v7369_v15  ;;  %v9147_v21 = vcombine.low %v7502_v30, %v7516_v19  ;;  %v822_v10 = vrot.slane %v821_v17, 4  ;;  %v927_v42 = vshrl.u32 %v7580_v35, 16  ;;  %v9148_v13 = vld [vmem:[#allocation36_spill] sm:$0xff] }
  0xe1   :  { %v1046_v51 = vunpack.c.l.bf16 %v1021_v9  ;;  %v1047_v31 = vunpack.c.h.bf16 %v1021_v9  ;;  %v1014_v8 = vmax.bf16 %v8106_v27, %v9145_v5  ;;  %v918_v32 = vrot.slane %v916_v47, 5  ;;  %v9149_v38 = vld [vmem:[#allocation37_spill] sm:$0xff]  ;;  %v5725_v15 = vld [vmem:[%s8826_s4 + $0x2d0] ss:$8 sps:$4 sm:$0xff]   ;;  %2425 = vmatpush1.bf16.msra.mxu1 %v5718_v55  ;;  %3949 = vmatpush1.bf16.msra.mxu0 %v5721_v37 }
  0xe2   :  { %2096 = vmatmul.mubr.bf16.gmra.mrb[16].mxu1 %v9146_v1  ;;  %3620 = vmatmul.mubr.bf16.gmra.mrb[16].mxu0 %v9147_v21  ;;  %v930_v9 = vshll.u32 %v7580_v35, 16  ;;  %v9150_v34 = vcombine.high %v9148_v13, %v9149_v38  ;;  %v9151_v49 = vcombine.high %v7575_v52, %v7580_v35  ;;  %v924_v19 = vrot.slane %v922_v62, 5  ;;  %v5729_v47 = vld [vmem:[%s8826_s4 + $0x5d0] ss:$8 sps:$4 sm:$0xff]   ;;  %v5734_v55 = vld [vmem:[%s8826_s4 + $0x2e4] ss:$8 sps:$4 sm:$0xff]  }
  0xe3   :  { %1079 = vst [vmem:[#allocation4 + $0x90] sm:$0xff] %v1046_v51  ;;  %1080 = vst.msk [vmem:[#allocation4 + $0x98] sm:$0xff] %vm1061_vm2, %v1047_v31  ;;  %v1032_v20 = vunpack.c.l.bf16 %v1014_v8  ;;  %v1033_v30 = vunpack.c.h.bf16 %v1014_v8  ;;  %v936_v17 = vshll.u32 %v4673_v61, 16  ;;  %v8149_v5 = vsel %vm6139_vm3, %v822_v10, %v826_v43  ;;  %v4666_v31 = vld [vmem:[%s8822_s0 + $0x58] sm:$0x11]  ;;  %2426 = vmatprep.subr.bf16.mxu1 %v5727_v41  ;;  %3950 = vmatprep.subr.bf16.mxu0 %v5731_v11 }
  0xe4   :  { %4819 = vmatprep.mubr.msk.bf16.mxu1 %vm1061_vm2, %v9150_v34  ;;  %5011 = vmatprep.mubr.msk.bf16.mxu0 %vm1061_vm2, %v9151_v49  ;;  %v919_v1 = vor.u32 %v918_v32, %v8083_v29  ;;  %v929_v21 = vrot.slane %v927_v42, 4  ;;  %v932_v51 = vrot.slane %v930_v9, 5  ;;  %v5737_v37 = vld [vmem:[%s8826_s4 + $0x5e4] ss:$8 sps:$4 sm:$0xff]   ;;  %v9152_v43 = vmax.bf16 %v7864_v57, %v7526_v63  ;;  %v5732_v8 = vld [vmem:[%s8826_s4 + $0x2e0] ss:$8 sps:$4 sm:$0xff]  }
  0xe5   :  { %1065 = vst [vmem:[#allocation4 + $0x20] sm:$0xff] %v1032_v20  ;;  %1066 = vst.msk [vmem:[#allocation4 + $0x28] sm:$0xff] %vm1061_vm2, %v1033_v30  ;;  %v5065_v61 = vcombine.high %v8106_v27, %v8149_v5  ;;  %v938_v41 = vrot.slane %v936_v17, 5  ;;  %v5064_v11 = vcombine.low %v8106_v27, %v8149_v5  ;;  %v829_v63 = vshrl.u32 %v7379_v48, 16  ;;  %v5735_v42 = vld [vmem:[%s8826_s4 + $0x5e0] ss:$8 sps:$4 sm:$0xff]   ;;  %2427 = vmatpush1.bf16.msra.mxu1 %v5725_v15 }
  0xe6   :  { %v1015_v29 = vmax.bf16 %v8149_v5, %v9152_v43  ;;  %v920_v62 = vrot.slane %v919_v1, 4  ;;  %v933_v10 = vor.u32 %v932_v51, %v929_v21  ;;  %v832_v32 = vshll.u32 %v7379_v48, 16  ;;  %v4667_v49 = vld [vmem:[%s8822_s0 + $0x68] sm:$0x11]  ;;  %3951 = vmatpush1.bf16.msra.mxu0 %v5729_v47  ;;  %v5742_v17 = vld [vmem:[%s8826_s4 + $0x2f4] ss:$8 sps:$4 sm:$0xff]   ;;  %2428 = vmatprep.subr.bf16.mxu1 %v5734_v55 }
  0xe7   :  { %v838_v20 = vshll.u32 %v4666_v31, 16  ;;  %v843_v30 = vshrl.u32 %v7384_v45, 16  ;;  %v831_v21 = vrot.slane %v829_v63, 4  ;;  %3952 = vmatprep.subr.bf16.mxu0 %v5737_v37  ;;  %v5745_v31 = vld [vmem:[%s8826_s4 + $0x5f4] ss:$8 sps:$4 sm:$0xff]   ;;  %v9153_v15 = vmax.bf16 %v7959_v46, %v7823_v33 }
  0xe8   :  { %v1034_v9 = vunpack.c.l.bf16 %v1015_v29  ;;  %v1035_v34 = vunpack.c.h.bf16 %v1015_v29  ;;  %v8187_v48 = vsel %vm6139_vm3, %v920_v62, %v924_v19  ;;  %v934_v1 = vrot.slane %v933_v10, 4 }
  0xe9   :  { %v834_v51 = vrot.slane %v832_v32, 5  ;;  %v1022_v47 = vmax.bf16 %v8187_v48, %v9153_v15  ;;  %v840_v43 = vrot.slane %v838_v20, 5  ;;  %v845_v19 = vrot.slane %v843_v30, 4  ;;  %v9156_v32 = vld [vmem:[#allocation17_spill] sm:$0xff]  ;;  %2429 = vmatpush1.bf16.msra.mxu1 %v5732_v8 }
  0xea   :  { %1067 = vst [vmem:[#allocation4 + $0x30] sm:$0xff] %v1034_v9  ;;  %1068 = vst.msk [vmem:[#allocation4 + $0x38] sm:$0xff] %vm1061_vm2, %v1035_v34  ;;  %v846_v29 = vshll.u32 %v7384_v45, 16  ;;  %v9154_v55 = vcombine.low %v9148_v13, %v9149_v38  ;;  %v9155_v37 = vcombine.low %v7575_v52, %v7580_v35  ;;  %v8206_v62 = vsel %vm6139_vm3, %v934_v1, %v938_v41  ;;  %v9157_v9 = vld [vmem:[#allocation32_spill] sm:$0xff]  ;;  %v5740_v52 = vld [vmem:[%s8826_s4 + $0x2f0] ss:$8 sps:$4 sm:$0xff]  }
  0xeb   :  { %v835_v10 = vor.u32 %v834_v51, %v831_v21  ;;  %v852_v33 = vshll.u32 %v4667_v49, 16  ;;  %v941_v63 = vshrl.u32 %v7618_v24, 16  ;;  %v9158_v34 = vcombine.high %v9156_v32, %v9157_v9  ;;  %v5743_v35 = vld [vmem:[%s8826_s4 + $0x5f0] ss:$8 sps:$4 sm:$0xff]   ;;  %v4674_v30 = vld [vmem:[%s8822_s0 + $0xe8] sm:$0x11]  ;;  %3953 = vmatpush1.bf16.msra.mxu0 %v5735_v42  ;;  %2430 = vmatprep.subr.bf16.mxu1 %v5742_v17 }
  0xec   :  { %2106 = vmatmul.mubr.bf16.gmra.mrb[20].mxu1 %v9154_v55  ;;  %3630 = vmatmul.mubr.bf16.gmra.mrb[20].mxu0 %v9155_v37  ;;  %v9159_v45 = vcombine.high %v7618_v24, %v7633_v40  ;;  %v9160_v13 = vmax.bf16 %v7964_v18, %v7899_v3  ;;  %v1048_v41 = vunpack.c.l.bf16 %v1022_v47  ;;  %v1049_v49 = vunpack.c.h.bf16 %v1022_v47  ;;  %v4675_v3 = vld [vmem:[%s8822_s0 + $0xf8] sm:$0x11]  ;;  %v5752_v47 = vld [vmem:[%s8826_s4 + $0x604] ss:$8 sps:$4 sm:$0xff]  }
  0xed   :  { %4820 = vmatprep.mubr.msk.bf16.mxu1 %vm1061_vm2, %v9158_v34  ;;  %v5073_v20 = vcombine.high %v8187_v48, %v8206_v62  ;;  %v5072_v1 = vcombine.low %v8187_v48, %v8206_v62  ;;  %v836_v21 = vrot.slane %v835_v10, 4  ;;  %v848_v51 = vrot.slane %v846_v29, 5  ;;  %3954 = vmatprep.subr.bf16.mxu0 %v5745_v31  ;;  %v9161_v31 = vld [vmem:[#allocation47_spill] sm:$0xff]  ;;  %v9162_v34 = vld [vmem:[#allocation34_spill] sm:$0xff] }
  0xee   :  { %5012 = vmatprep.mubr.msk.bf16.mxu0 %vm1061_vm2, %v9159_v45  ;;  %v1023_v38 = vmax.bf16 %v8206_v62, %v9160_v13  ;;  %v854_v15 = vrot.slane %v852_v33, 5  ;;  %1081 = vst [vmem:[#allocation4 + $0xa0] sm:$0xff] %v1048_v41  ;;  %1082 = vst.msk [vmem:[#allocation4 + $0xa8] sm:$0xff] %vm1061_vm2, %v1049_v49  ;;  %v943_v8 = vrot.slane %v941_v63, 4  ;;  %v944_v42 = vshll.u32 %v7618_v24, 16  ;;  %2431 = vmatpush1.bf16.msra.mxu1 %v5740_v52 }
  0xef   :  { %v8244_v29 = vsel %vm6139_vm3, %v836_v21, %v840_v43  ;;  %v849_v10 = vor.u32 %v848_v51, %v845_v19  ;;  %v950_v33 = vshll.u32 %v4674_v30, 16  ;;  %v955_v17 = vshrl.u32 %v7633_v40, 16  ;;  %3955 = vmatpush1.bf16.msra.mxu0 %v5743_v35  ;;  %5110 = vmatprep.subr.bf16.mxu1 %v5752_v47 }
  0xf0   :  { %v1050_v55 = vunpack.c.l.bf16 %v1023_v38  ;;  %v1051_v37 = vunpack.c.h.bf16 %v1023_v38  ;;  %v9163_v45 = vmax.bf16 %v9161_v31, %v9162_v34  ;;  %v946_v38 = vrot.slane %v944_v42, 5  ;;  %4301 = vmatprep.subr.bf16.mxu0 %v5752_v47  ;;  %v4668_v42 = vld [vmem:[%s8822_s0 + $0x78] sm:$0x11] }
  0xf1   :  { %v958_v63 = vshll.u32 %v7633_v40, 16  ;;  %v964_v41 = vshll.u32 %v4675_v3, 16  ;;  %v850_v43 = vrot.slane %v849_v10, 4  ;;  %v952_v49 = vrot.slane %v950_v33, 5  ;;  %v9166_v33 = vld [vmem:[#allocation13_spill] sm:$0xff] }
  0xf2   :  { %1083 = vst [vmem:[#allocation4 + $0xb0] sm:$0xff] %v1050_v55  ;;  %1084 = vst.msk [vmem:[#allocation4 + $0xb8] sm:$0xff] %vm1061_vm2, %v1051_v37  ;;  %v1016_v13 = vmax.bf16 %v8244_v29, %v9163_v45  ;;  %v957_v19 = vrot.slane %v955_v17, 4  ;;  %v857_v30 = vshrl.u32 %v7445_v39, 16  ;;  %v947_v55 = vor.u32 %v946_v38, %v943_v8  ;;  %v9167_v17 = vld [vmem:[#allocation41_spill] sm:$0xff] }
  0xf3   :  { %v960_v37 = vrot.slane %v958_v63, 5  ;;  %v9164_v3 = vcombine.low %v9156_v32, %v9157_v9  ;;  %v9165_v52 = vcombine.low %v7618_v24, %v7633_v40  ;;  %v8265_v35 = vsel %vm6139_vm3, %v850_v43, %v854_v15  ;;  %v9169_v32 = vld [vmem:[#allocation42_spill] sm:$0xff]  ;;  %v4669_v38 = vld [vmem:[%s8822_s0 + $0x88] sm:$0x11] }
  0xf4   :  { %v1036_v21 = vunpack.c.l.bf16 %v1016_v13  ;;  %v1037_v51 = vunpack.c.h.bf16 %v1016_v13  ;;  %v966_v47 = vrot.slane %v964_v41, 5  ;;  %v859_v10 = vrot.slane %v857_v30, 4 }
  0xf5   :  { %2116 = vmatmul.mubr.bf16.gmra.mrb[24].mxu1 %v9164_v3  ;;  %3640 = vmatmul.mubr.bf16.gmra.mrb[24].mxu0 %v9165_v52  ;;  %v860_v8 = vshll.u32 %v7445_v39, 16  ;;  %v9168_v34 = vcombine.high %v9166_v33, %v9167_v17  ;;  %v9170_v9 = vcombine.high %v7713_v58, %v9169_v32  ;;  %v9171_v40 = vmax.bf16 %v7886_v6, %v7643_v25 }
  0xf6   :  { %1069 = vst [vmem:[#allocation4 + $0x40] sm:$0xff] %v1036_v21  ;;  %1070 = vst.msk [vmem:[#allocation4 + $0x48] sm:$0xff] %vm1061_vm2, %v1037_v51  ;;  %v5067_v39 = vcombine.high %v8244_v29, %v8265_v35  ;;  %v948_v15 = vrot.slane %v947_v55, 4  ;;  %v961_v45 = vor.u32 %v960_v37, %v957_v19  ;;  %v5066_v13 = vcombine.low %v8244_v29, %v8265_v35 }
  0xf7   :  { %4821 = vmatprep.mubr.msk.bf16.mxu1 %vm1061_vm2, %v9168_v34  ;;  %5013 = vmatprep.mubr.msk.bf16.mxu0 %vm1061_vm2, %v9170_v9  ;;  %v1017_v24 = vmax.bf16 %v8265_v35, %v9171_v40  ;;  %v862_v63 = vrot.slane %v860_v8, 5  ;;  %v866_v41 = vshll.u32 %v4668_v42, 16  ;;  %v871_v25 = vshrl.u32 %v7450_v54, 16 }
  0xf8   :  { %v8291_v21 = vsel %vm6139_vm3, %v948_v15, %v952_v49  ;;  %v962_v51 = vrot.slane %v961_v45, 4  ;;  %v9172_v19 = vmax.bf16 %v7970_v53, %v7940_v4  ;;  %v874_v8 = vshll.u32 %v7450_v54, 16  ;;  %v9186_v54 = vld [vmem:[#allocation59_spill] sm:$0xff] }
  0xf9   :  { %v1038_v43 = vunpack.c.l.bf16 %v1017_v24  ;;  %v1039_v30 = vunpack.c.h.bf16 %v1017_v24  ;;  %v863_v37 = vor.u32 %v862_v63, %v859_v10  ;;  %v868_v3 = vrot.slane %v866_v41, 5 }
  0xfa   :  { %v1024_v55 = vmax.bf16 %v8291_v21, %v9172_v19  ;;  %v873_v52 = vrot.slane %v871_v25, 4  ;;  %v8300_v42 = vsel %vm6139_vm3, %v962_v51, %v966_v47  ;;  %v880_v49 = vshll.u32 %v4669_v38, 16  ;;  %v4676_v47 = vld [vmem:[%s8822_s0 + $0x108] sm:$0x11]  ;;  %v9176_v19 = vld [vmem:[#allocation55_spill] sm:$0xff] }
  0xfb   :  { %1071 = vst [vmem:[#allocation4 + $0x50] sm:$0xff] %v1038_v43  ;;  %1072 = vst.msk [vmem:[#allocation4 + $0x58] sm:$0xff] %vm1061_vm2, %v1039_v30  ;;  %v969_v34 = vshrl.u32 %v7713_v58, 16  ;;  %v9173_v4 = vmax.bf16 %v7975_v0, %v7946_v28  ;;  %v5075_v24 = vcombine.high %v8291_v21, %v8300_v42  ;;  %v864_v15 = vrot.slane %v863_v37, 4  ;;  %v4677_v28 = vld [vmem:[%s8822_s0 + $0x118] sm:$0x11] }
  0xfc   :  { %v1052_v10 = vunpack.c.l.bf16 %v1024_v55  ;;  %v1053_v40 = vunpack.c.h.bf16 %v1024_v55  ;;  %v876_v45 = vrot.slane %v874_v8, 5  ;;  %v882_v38 = vrot.slane %v880_v49, 5  ;;  %v9177_v55 = vld [vmem:[#allocation56_spill] sm:$0xff] }
  0xfd   :  { %v1025_v9 = vmax.bf16 %v8300_v42, %v9173_v4  ;;  %v9174_v63 = vcombine.low %v9166_v33, %v9167_v17  ;;  %v9175_v41 = vcombine.low %v7713_v58, %v9169_v32  ;;  %v971_v30 = vrot.slane %v969_v34, 4  ;;  %v9181_v4 = vld [vmem:[#allocation14_spill] sm:$0xff] }
  0xfe   :  { %1085 = vst [vmem:[#allocation4 + $0xc0] sm:$0xff] %v1052_v10  ;;  %1086 = vst.msk [vmem:[#allocation4 + $0xc8] sm:$0xff] %vm1061_vm2, %v1053_v40  ;;  %v972_v51 = vshll.u32 %v7713_v58, 16  ;;  %v9178_v37 = vcombine.high %v9176_v19, %v9177_v55  ;;  %v9179_v33 = vcombine.high %v7774_v16, %v9140_v12  ;;  %v8336_v17 = vsel %vm6139_vm3, %v864_v15, %v868_v3  ;;  %v9180_v58 = vld [vmem:[#allocation15_spill] sm:$0xff] }
  0xff   :  { %2126 = vmatmul.mubr.bf16.gmra.mrb[28].mxu1 %v9174_v63  ;;  %3650 = vmatmul.mubr.bf16.gmra.mrb[28].mxu0 %v9175_v41  ;;  %v1054_v25 = vunpack.c.l.bf16 %v1025_v9  ;;  %v1055_v43 = vunpack.c.h.bf16 %v1025_v9  ;;  %v877_v8 = vor.u32 %v876_v45, %v873_v52  ;;  %v978_v49 = vshll.u32 %v4676_v47, 16 }
 0x100   :  { %4862 = vmatprep.mubr.msk.bf16.mxu1 %vm1061_vm2, %v9178_v37  ;;  %5054 = vmatprep.mubr.msk.bf16.mxu0 %vm1061_vm2, %v9179_v33  ;;  %v983_v34 = vshrl.u32 %v9169_v32, 16  ;;  %v9182_v9 = vmax.bf16 %v9180_v58, %v9181_v4  ;;  %v974_v40 = vrot.slane %v972_v51, 5  ;;  %v986_v63 = vshll.u32 %v9169_v32, 16  ;;  %v9183_v37 = vld [vmem:[#allocation11_spill] sm:$0xff]  ;;  %v9184_v33 = vld [vmem:[#allocation44_spill] sm:$0xff] }
 0x101   :  { %1087 = vst [vmem:[#allocation4 + $0xd0] sm:$0xff] %v1054_v25  ;;  %1088 = vst.msk [vmem:[#allocation4 + $0xd8] sm:$0xff] %vm1061_vm2, %v1055_v43  ;;  %v992_v41 = vshll.u32 %v4677_v28, 16  ;;  %v9185_v3 = vmax.bf16 %v9183_v37, %v9184_v33  ;;  %v878_v47 = vrot.slane %v877_v8, 4  ;;  %v980_v15 = vrot.slane %v978_v49, 5  ;;  %v8352_v25 = vld [vmem:[%s8823_s1 + $0x80] sm:$0xff] }
 0x102   :  { %v1018_v10 = vmax.bf16 %v8336_v17, %v9182_v9  ;;  %v985_v45 = vrot.slane %v983_v34, 4  ;;  %v975_v9 = vor.u32 %v974_v40, %v971_v30  ;;  %v988_v51 = vrot.slane %v986_v63, 5  ;;  %v5750_v28 = vld [vmem:[%s8826_s4 + $0x600] ss:$8 sps:$4 sm:$0xff]   ;;  %v5755_v49 = vld [vmem:[%s8826_s4 + $0x614] ss:$8 sps:$4 sm:$0xff]  }
 0x103   :  { %v755_v52 = vmax.bf16 %v9169_v32, %v9185_v3  ;;  %v770_v37 = vmax.bf16 %v8352_v25, %v9186_v54  ;;  %v8361_v32 = vsel %vm6139_vm3, %v878_v47, %v882_v38  ;;  %v994_v8 = vrot.slane %v992_v41, 5  ;;  %v8369_v30 = vld [vmem:[%s8823_s1 + $0x88] sm:$0xff]  ;;  %v9187_v34 = vld [vmem:[#allocation16_spill] sm:$0xff] }
 0x104   :  { %v1040_v43 = vunpack.c.l.bf16 %v1018_v10  ;;  %v1041_v4 = vunpack.c.h.bf16 %v1018_v10  ;;  %v9188_v10 = vld [vmem:[#allocation39_spill] sm:$0xff]  ;;  %v5069_v54 = vcombine.high %v8336_v17, %v8361_v32  ;;  %v976_v38 = vrot.slane %v975_v9, 4 }
 0x105   :  { %v9189_v40 = vmax.bf16 %v9187_v34, %v9188_v10  ;;  %v989_v41 = vor.u32 %v988_v51, %v985_v45  ;;  %v5017_v33 = vcombine.high %v7846_v26, %v7864_v57  ;;  %v771_v3 = vmax.bf16 %v8369_v30, %v755_v52  ;;  %v5753_v52 = vld [vmem:[%s8826_s4 + $0x610] ss:$8 sps:$4 sm:$0xff]  }
 0x106   :  { %1073 = vst [vmem:[#allocation4 + $0x60] sm:$0xff] %v1040_v43  ;;  %1074 = vst.msk [vmem:[#allocation4 + $0x68] sm:$0xff] %vm1061_vm2, %v1041_v4  ;;  %v5068_v47 = vcombine.low %v8336_v17, %v8361_v32  ;;  %v9190_v10 = vcombine.low %v9176_v19, %v9177_v55  ;;  %v9191_v43 = vcombine.low %v7774_v16, %v9140_v12  ;;  %v5762_v16 = vld [vmem:[%s8826_s4 + $0x624] ss:$8 sps:$4 sm:$0xff]   ;;  %v9192_v55 = vld [vmem:[#allocation27_spill] sm:$0xff] }
 0x107   :  { %v1019_v63 = vmax.bf16 %v8361_v32, %v9189_v40  ;;  %v8391_v45 = vsel %vm6139_vm3, %v976_v38, %v980_v15  ;;  %v990_v9 = vrot.slane %v989_v41, 4  ;;  %v9193_v15 = vld [vmem:[#allocation28_spill] sm:$0xff]  ;;  %v5016_v38 = vcombine.low %v7846_v26, %v7864_v57  ;;  %v5769_v26 = vld [vmem:[%s8826_s4 + $0x634] ss:$8 sps:$4 sm:$0xff]  }
 0x108   :  { %2441 = vmatmul.mubr.bf16.vlgmr.msra.gmra.mrb[0].mxu1 %v9190_v10  ;;  %3965 = vmatmul.mubr.bf16.vlgmr.msra.gmra.mrb[0].mxu0 %v9191_v43  ;;  %v1026_v19 = vmax.bf16 %v8391_v45, %v770_v37  ;;  %v9194_v51 = vcombine.high %v9192_v55, %v9193_v15  ;;  %v9195_v57 = vcombine.low %v9192_v55, %v9193_v15  ;;  %v5767_v10 = vld [vmem:[%s8826_s4 + $0x630] ss:$8 sps:$4 sm:$0xff]   ;;  %v9196_v43 = vld [vmem:[#allocation29_spill] sm:$0xff]  ;;  %v5779_v55 = vld [vmem:[%s8826_s4 + $0x654] ss:$8 sps:$4 sm:$0xff]  }
 0x109   :  { %v1042_v4 = vunpack.c.l.bf16 %v1019_v63  ;;  %v1043_v40 = vunpack.c.h.bf16 %v1019_v63  ;;  %4302 = vmatpush1.bf16.msra.mxu0 %v5750_v28  ;;  %5122 = vmatpush1.bf16.msra.mxu1 %v5750_v28  ;;  %v8403_v12 = vsel %vm6139_vm3, %v990_v9, %v994_v8  ;;  %v5760_v8 = vld [vmem:[%s8826_s4 + $0x620] ss:$8 sps:$4 sm:$0xff]   ;;  %v5772_v9 = vld [vmem:[%s8826_s4 + $0x644] ss:$8 sps:$4 sm:$0xff]   ;;  %v9221_v14 = vcombine.low %v8291_v21, %v8300_v42 }
 0x10a   :  { %4303 = vmatprep.subr.bf16.mxu0 %v5755_v49  ;;  %5111 = vmatprep.subr.bf16.mxu1 %v5755_v49  ;;  %v1027_v28 = vmax.bf16 %v8403_v12, %v771_v3  ;;  %v1056_v37 = vunpack.c.l.bf16 %v1026_v19  ;;  %v1057_v49 = vunpack.c.h.bf16 %v1026_v19  ;;  %v5077_v63 = vcombine.high %v8391_v45, %v8403_v12 }
 0x10b   :  { %1075 = vst [vmem:[#allocation4 + $0x70] sm:$0xff] %v1042_v4  ;;  %1076 = vst.msk [vmem:[#allocation4 + $0x78] sm:$0xff] %vm1061_vm2, %v1043_v40  ;;  %4863 = vmatprep.mubr.msk.bf16.mxu1 %vm1061_vm2, %v9194_v51  ;;  %5055 = vmatprep.mubr.msk.bf16.mxu0 %vm1061_vm2, %v5017_v33  ;;  %v5076_v22 = vcombine.low %v8391_v45, %v8403_v12  ;;  %v5019_v3 = vcombine.high %v9161_v31, %v7886_v6  ;;  %v9197_v4 = vld [vmem:[#allocation30_spill] sm:$0xff] }
 0x10c   :  { %v1058_v41 = vunpack.c.l.bf16 %v1027_v28  ;;  %v1059_v33 = vunpack.c.h.bf16 %v1027_v28  ;;  %1089 = vst [vmem:[#allocation4 + $0xe0] sm:$0xff] %v1056_v37  ;;  %1090 = vst.msk [vmem:[#allocation4 + $0xe8] sm:$0xff] %vm1061_vm2, %v1057_v49  ;;  %v9198_v40 = vcombine.high %v9196_v43, %v9197_v4  ;;  %v5021_v19 = vcombine.high %v9180_v58, %v9187_v34  ;;  %v5777_v28 = vld [vmem:[%s8826_s4 + $0x650] ss:$8 sps:$4 sm:$0xff]   ;;  %v5786_v37 = vld [vmem:[%s8826_s4 + $0x664] ss:$8 sps:$4 sm:$0xff]  }
 0x10d   :  { %4304 = vmatpush1.bf16.msra.mxu0 %v5753_v52  ;;  %5123 = vmatpush1.bf16.msra.mxu1 %v5753_v52  ;;  %v5018_v52 = vcombine.low %v9161_v31, %v7886_v6  ;;  %v9199_v15 = vcombine.low %v9196_v43, %v9197_v4  ;;  %v9200_v6 = vld [vmem:[#allocation33_spill] sm:$0xff]  ;;  %v9201_v31 = vld [vmem:[#allocation35_spill] sm:$0xff]  ;;  %v5020_v49 = vcombine.low %v9180_v58, %v9187_v34  ;;  %v9204_v58 = vld [vmem:[#allocation38_spill] sm:$0xff] }
 0x10e   :  { %4305 = vmatprep.subr.bf16.mxu0 %v5762_v16  ;;  %5112 = vmatprep.subr.bf16.mxu1 %v5762_v16  ;;  %1091 = vst [vmem:[#allocation4 + $0xf0] sm:$0xff] %v1058_v41  ;;  %1092 = vst.msk [vmem:[#allocation4 + $0xf8] sm:$0xff] %vm1061_vm2, %v1059_v33  ;;  %v5770_v16 = vld [vmem:[%s8826_s4 + $0x640] ss:$8 sps:$4 sm:$0xff]   ;;  %v9202_v51 = vcombine.high %v9200_v6, %v9201_v31  ;;  %v5789_v41 = vld [vmem:[%s8826_s4 + $0x674] ss:$8 sps:$4 sm:$0xff]   ;;  %v9203_v33 = vcombine.low %v9200_v6, %v9201_v31 }
 0x10f   :  { %v9205_v34 = vld [vmem:[#allocation40_spill] sm:$0xff]  ;;  %v5803_v4 = vld [vmem:[%s8826_s4 + $0x694] ss:$8 sps:$4 sm:$0xff]  }
 0x110   :  { %2451 = vmatmul.mubr.bf16.gmra.mrb[4].mxu1 %v9195_v57  ;;  %3975 = vmatmul.mubr.bf16.gmra.mrb[4].mxu0 %v5016_v38  ;;  %v5023_v38 = vcombine.high %v7812_v7, %v7817_v36  ;;  %v5796_v57 = vld [vmem:[%s8826_s4 + $0x684] ss:$8 sps:$4 sm:$0xff]   ;;  %v5794_v43 = vld [vmem:[%s8826_s4 + $0x680] ss:$8 sps:$4 sm:$0xff]   ;;  %v5813_v31 = vld [vmem:[%s8826_s4 + $0x6b4] ss:$8 sps:$4 sm:$0xff]  }
 0x111   :  { %4306 = vmatpush1.bf16.msra.mxu0 %v5760_v8  ;;  %5124 = vmatpush1.bf16.msra.mxu1 %v5760_v8  ;;  %v5784_v8 = vld [vmem:[%s8826_s4 + $0x660] ss:$8 sps:$4 sm:$0xff]  }
 0x112   :  { %4864 = vmatprep.mubr.msk.bf16.mxu1 %vm1061_vm2, %v9198_v40  ;;  %5056 = vmatprep.mubr.msk.bf16.mxu0 %vm1061_vm2, %v5019_v3  ;;  %v9206_v3 = vcombine.high %v9204_v58, %v9205_v34  ;;  %v9207_v40 = vcombine.low %v9204_v58, %v9205_v34  ;;  %v5804_v6 = vld [vmem:[%s8826_s4 + $0x6a0] ss:$8 sps:$4 sm:$0xff]  }
 0x113   :  { %4307 = vmatprep.subr.bf16.mxu0 %v5769_v26  ;;  %5113 = vmatprep.subr.bf16.mxu1 %v5769_v26  ;;  %v5787_v26 = vld [vmem:[%s8826_s4 + $0x670] ss:$8 sps:$4 sm:$0xff]  }
 0x115   :  { %4308 = vmatpush1.bf16.msra.mxu0 %v5767_v10  ;;  %5125 = vmatpush1.bf16.msra.mxu1 %v5767_v10  ;;  %v5025_v10 = vcombine.high %v7959_v46, %v7964_v18 }
 0x116   :  { %4309 = vmatprep.subr.bf16.mxu0 %v5772_v9  ;;  %5114 = vmatprep.subr.bf16.mxu1 %v5772_v9  ;;  %v9208_v9 = vcombine.low %v7812_v7, %v7817_v36  ;;  %v5806_v7 = vld [vmem:[%s8826_s4 + $0x6a4] ss:$8 sps:$4 sm:$0xff]   ;;  %v5024_v36 = vcombine.low %v7959_v46, %v7964_v18  ;;  %v9213_v46 = vld [vmem:[#allocation51_spill] sm:$0xff] }
 0x117   :  { %v9214_v18 = vld [vmem:[#allocation52_spill] sm:$0xff] }
 0x118   :  { %2461 = vmatmul.mubr.bf16.gmra.mrb[8].mxu1 %v9199_v15  ;;  %3985 = vmatmul.mubr.bf16.gmra.mrb[8].mxu0 %v5018_v52  ;;  %v9209_v52 = vld [vmem:[#allocation43_spill] sm:$0xff]  ;;  %v5027_v15 = vcombine.high %v7970_v53, %v7975_v0 }
 0x119   :  { %4865 = vmatprep.mubr.msk.bf16.mxu1 %vm1061_vm2, %v9202_v51  ;;  %5057 = vmatprep.mubr.msk.bf16.mxu0 %vm1061_vm2, %v5021_v19  ;;  %v9210_v19 = vld [vmem:[#allocation46_spill] sm:$0xff] }
 0x11a   :  { %4310 = vmatpush1.bf16.msra.mxu0 %v5770_v16  ;;  %5126 = vmatpush1.bf16.msra.mxu1 %v5770_v16  ;;  %v9211_v16 = vcombine.high %v9209_v52, %v9210_v19  ;;  %v9212_v51 = vcombine.low %v9209_v52, %v9210_v19 }
 0x11b   :  { %4311 = vmatprep.subr.bf16.mxu0 %v5779_v55  ;;  %5115 = vmatprep.subr.bf16.mxu1 %v5779_v55  ;;  %v5801_v55 = vld [vmem:[%s8826_s4 + $0x690] ss:$8 sps:$4 sm:$0xff]  }
 0x11e   :  { %4312 = vmatpush1.bf16.msra.mxu0 %v5777_v28  ;;  %5127 = vmatpush1.bf16.msra.mxu1 %v5777_v28  ;;  %v9215_v28 = vcombine.high %v9213_v46, %v9214_v18 }
 0x11f   :  { %4313 = vmatprep.subr.bf16.mxu0 %v5786_v37  ;;  %5116 = vmatprep.subr.bf16.mxu1 %v5786_v37  ;;  %v5811_v37 = vld [vmem:[%s8826_s4 + $0x6b0] ss:$8 sps:$4 sm:$0xff]   ;;  %s5881_s4 = smov [#allocation4]  }
 0x120   :  { %2471 = vmatmul.mubr.bf16.gmra.mrb[12].mxu1 %v9203_v33  ;;  %3995 = vmatmul.mubr.bf16.gmra.mrb[12].mxu0 %v5020_v49  ;;  %v5026_v49 = vcombine.low %v7970_v53, %v7975_v0  ;;  %v9218_v33 = vld [vmem:[#allocation58_spill] sm:$0xff]  ;;  %v5028_v53 = vcombine.low %v8352_v25, %v8369_v30  ;;  %s4615_s29 = sshll.u32 %s5881_s4, 4  ;;  %s4616_s29 = int_to_ptr.vmem [resolvable:$true] %s4615_s29 }
 0x121   :  { %4866 = vmatprep.mubr.msk.bf16.mxu1 %vm1061_vm2, %v9206_v3  ;;  %5058 = vmatprep.mubr.msk.bf16.mxu0 %vm1061_vm2, %v5023_v38  ;;  %v5029_v38 = vcombine.high %v8352_v25, %v8369_v30  ;;  %s5833_s30 = scalar_lea.vmem %s4616_s29, 4096  ;;  %p5838_p1 = scmp.lt.s32.totalorder %s4616_s29, %s4616_s29 }
 0x122   :  { %4314 = vmatpush1.bf16.msra.mxu0 %v5784_v8  ;;  %5128 = vmatpush1.bf16.msra.mxu1 %v5784_v8  ;;  %v9216_v8 = vcombine.low %v9213_v46, %v9214_v18  ;;  %p5834_p0 = scmp.ne.s32.totalorder %s4616_s29, %s5833_s30  ;;  %p5839_p2 = scmp.lt.s32.totalorder %s5833_s30, %s5833_s30 }
 0x123   :  { %4315 = vmatprep.subr.bf16.mxu0 %v5789_v41  ;;  %5117 = vmatprep.subr.bf16.mxu1 %v5789_v41  ;;  %v9217_v41 = vld [vmem:[#allocation57_spill] sm:$0xff] }
 0x124   :  { %v9219_v58 = vcombine.high %v9217_v41, %v9218_v33  ;;  %v9220_v0 = vcombine.low %v9217_v41, %v9218_v33  ;;  %p5840_p3 = por %p5839_p2, %p5838_p1 }
 0x126   :  { %4316 = vmatpush1.bf16.msra.mxu0 %v5787_v26  ;;  %5129 = vmatpush1.bf16.msra.mxu1 %v5787_v26  ;;  %p5841_p4 = pnand %p5840_p3, %p5834_p0 }
 0x127   :  { %4317 = vmatprep.subr.bf16.mxu0 %v5796_v57  ;;  %5118 = vmatprep.subr.bf16.mxu1 %v5796_v57 }
 0x128   :  { %2481 = vmatmul.mubr.bf16.gmra.mrb[16].mxu1 %v9207_v40  ;;  %4005 = vmatmul.mubr.bf16.gmra.mrb[16].mxu0 %v9208_v9 }
 0x129   :  { %4867 = vmatprep.mubr.msk.bf16.mxu1 %vm1061_vm2, %v9211_v16  ;;  %5059 = vmatprep.mubr.msk.bf16.mxu0 %vm1061_vm2, %v5025_v10 }
 0x12a   :  { %4318 = vmatpush1.bf16.msra.mxu0 %v5794_v43  ;;  %5130 = vmatpush1.bf16.msra.mxu1 %v5794_v43 }
 0x12b   :  { %4319 = vmatprep.subr.bf16.mxu0 %v5803_v4  ;;  %5119 = vmatprep.subr.bf16.mxu1 %v5803_v4 }
 0x12e   :  { %4320 = vmatpush1.bf16.msra.mxu0 %v5801_v55  ;;  %5131 = vmatpush1.bf16.msra.mxu1 %v5801_v55 }
 0x12f   :  { %4321 = vmatprep.subr.bf16.mxu0 %v5806_v7  ;;  %5120 = vmatprep.subr.bf16.mxu1 %v5806_v7 }
 0x130   :  { %2491 = vmatmul.mubr.bf16.gmra.mrb[20].mxu1 %v9212_v51  ;;  %4015 = vmatmul.mubr.bf16.gmra.mrb[20].mxu0 %v5024_v36 }
 0x131   :  { %4868 = vmatprep.mubr.msk.bf16.mxu1 %vm1061_vm2, %v9215_v28  ;;  %5060 = vmatprep.mubr.msk.bf16.mxu0 %vm1061_vm2, %v5027_v15 }
 0x132   :  { %4322 = vmatpush1.bf16.msra.mxu0 %v5804_v6  ;;  %5132 = vmatpush1.bf16.msra.mxu1 %v5804_v6 }
 0x133   :  { %4323 = vmatprep.subr.bf16.mxu0 %v5813_v31  ;;  %5121 = vmatprep.subr.bf16.mxu1 %v5813_v31 }
 0x136   :  { %4324 = vmatpush1.bf16.msra.mxu0 %v5811_v37  ;;  %5133 = vmatpush1.bf16.msra.mxu1 %v5811_v37 }
 0x138   :  { %2501 = vmatmul.mubr.bf16.gmra.mrb[24].mxu1 %v9216_v8  ;;  %4025 = vmatmul.mubr.bf16.gmra.mrb[24].mxu0 %v5026_v49 }
 0x139   :  { %4869 = vmatprep.mubr.msk.bf16.mxu1 %vm1061_vm2, %v9219_v58  ;;  %5061 = vmatprep.mubr.msk.bf16.mxu0 %vm1061_vm2, %v5029_v38 }
 0x140   :  { %2511 = vmatmul.mubr.bf16.gmra.mrb[28].mxu1 %v9220_v0  ;;  %4035 = vmatmul.mubr.bf16.gmra.mrb[28].mxu0 %v5028_v53 }
 0x141   :  { %5102 = vmatprep.mubr.msk.bf16.mxu0 %vm1061_vm2, %v5063_v23  ;;  %5106 = vmatprep.mubr.msk.bf16.mxu1 %vm1061_vm2, %v5071_v56 }
 0x148   :  { %4334 = vmatmul.mubr.bf16.vlgmr.msra.gmra.mrb[0].mxu0 %v5062_v60  ;;  %4374 = vmatmul.mubr.bf16.vlgmr.msra.gmra.mrb[32].mxu1 %v5070_v50 }
 0x149   :  { %5103 = vmatprep.mubr.msk.bf16.mxu0 %vm1061_vm2, %v5065_v61  ;;  %5107 = vmatprep.mubr.msk.bf16.mxu1 %vm1061_vm2, %v5073_v20 }
 0x150   :  { %4344 = vmatmul.mubr.bf16.gmra.mrb[4].mxu0 %v5064_v11  ;;  %4384 = vmatmul.mubr.bf16.gmra.mrb[36].mxu1 %v5072_v1 }
 0x151   :  { %5104 = vmatprep.mubr.msk.bf16.mxu0 %vm1061_vm2, %v5067_v39  ;;  %5108 = vmatprep.mubr.msk.bf16.mxu1 %vm1061_vm2, %v5075_v24 }
 0x158   :  { %4354 = vmatmul.mubr.bf16.gmra.mrb[8].mxu0 %v5066_v13  ;;  %4394 = vmatmul.mubr.bf16.gmra.mrb[40].mxu1 %v9221_v14 }
 0x159   :  { %5105 = vmatprep.mubr.msk.bf16.mxu0 %vm1061_vm2, %v5069_v54  ;;  %5109 = vmatprep.mubr.msk.bf16.mxu1 %vm1061_vm2, %v5077_v63 }
 0x160   :  { %4364 = vmatmul.mubr.bf16.gmra.mrb[12].mxu0 %v5068_v47  ;;  %4404 = vmatmul.mubr.bf16.gmra.mrb[44].mxu1 %v5076_v22 }
 0x161   :  { %5844 = shalt.err (!%p5841_p4)
}
 0x162   :  { %s5845_s10 = scalar_lea.hbm %s8830_s8, 4096 }
 0x163   :  { %p5846_p5 = scmp.ne.s32.totalorder %s8830_s8, %s5845_s10  ;;  %p5849_p6 = scmp.lt.u32.totalorder %s5845_s10, %s8830_s8 }
 0x165   :  { %p5851_p7 = pnand %p5849_p6, %p5846_p5 }
 0x167   :  { %5854 = shalt.err (!%p5851_p7)
}
 0x168   :  { %s5882_s15 = smov 256   ;;  %s5883_s1 = smov 16   ;;  %v4448_v46 = vlaneseq }
 0x169   :  { %4621 = dma.vmem_to_hbm [thread:$0]  %s4616_s29, 4096, %s8830_s8, [#allocation5], %s5882_s15, %s5882_s15, %s5883_s1  }
 0x16a   :  { %v4449_v28 = vshrl.u32 %v4448_v46, 7 }
 0x1db   :  { %v8623_v44 = vpop.f32.mrb[0].mxu1 }
 0x1dc   :  { %v8625_v2 = vpop.f32.mrb[1].mxu1 }
 0x1dd   :  { %v8627_v23 = vpop.f32.mrb[2].mxu1 }
 0x1de   :  { %v8629_v59 = vpop.f32.mrb[3].mxu1 }
 0x1e3   :  { %v8631_v60 = vpop.f32.mrb[4].mxu1 }
 0x1e4   :  { %v8633_v56 = vpop.f32.mrb[5].mxu1 }
 0x1e5   :  { %v8635_v50 = vpop.f32.mrb[6].mxu1 }
 0x1e6   :  { %v8637_v27 = vpop.f32.mrb[7].mxu1 }
 0x1eb   :  { %v8639_v5 = vpop.f32.mrb[8].mxu1 }
 0x1ec   :  { %v8641_v61 = vpop.f32.mrb[9].mxu1 }
 0x1ed   :  { %v8643_v11 = vpop.f32.mrb[10].mxu1 }
 0x1ee   :  { %v8645_v48 = vpop.f32.mrb[11].mxu1 }
 0x1f3   :  { %v8647_v62 = vpop.f32.mrb[12].mxu1 }
 0x1f4   :  { %v8649_v20 = vpop.f32.mrb[13].mxu1 }
 0x1f5   :  { %v8651_v1 = vpop.f32.mrb[14].mxu1 }
 0x1f6   :  { %v8653_v29 = vpop.f32.mrb[15].mxu1 }
 0x1fb   :  { %v2482_v35 = vpop.f32.mrb[16].mxu1  ;;  %v4006_v39 = vpop.f32.mrb[16].mxu0 }
 0x1fc   :  { %v5150_v13 = vadd.f32 %v4006_v39, %v2482_v35  ;;  %v2484_v21 = vpop.f32.mrb[17].mxu1  ;;  %v4008_v42 = vpop.f32.mrb[17].mxu0  ;;  %v4450_v39 = vsub.s32 0, %v4449_v28 }
 0x1fd   :  { %v5152_v24 = vadd.f32 %v4008_v42, %v2484_v21  ;;  %v2486_v17 = vpop.f32.mrb[18].mxu1  ;;  %v4010_v25 = vpop.f32.mrb[18].mxu0  ;;  %v4446_v42 = vld [vmem:[%s8827_s5] sm:$0x3]  ;;  %s5884_s5 = smov [#allocation2]  }
 0x1fe   :  { %v8655_v32 = vadd.f32 %v4010_v25, %v2486_v17  ;;  %v2488_v30 = vpop.f32.mrb[19].mxu1  ;;  %v4012_v54 = vpop.f32.mrb[19].mxu0  ;;  %v4454_v17 = vsub.s32 1, %v4449_v28  ;;  %v4490_v25 = vld [vmem:[%s8828_s6] sm:$0x3]  ;;  %s4603_s6 = sshll.u32 %s5884_s5, 4  ;;  %s4604_s6 = int_to_ptr.vmem [resolvable:$true] %s4603_s6 }
 0x1ff   :  { %v8657_v47 = vadd.f32 %v4012_v54, %v2488_v30  ;;  %v8689_v30 = vrot.slane %v4446_v42, %v4450_v39  ;;  %s5855_s20 = scalar_lea.vmem %s4604_s6, 4096  ;;  %p5860_p9 = scmp.lt.s32.totalorder %s4604_s6, %s4604_s6 }
 0x200   :  { %p5856_p8 = scmp.ne.s32.totalorder %s4604_s6, %s5855_s20  ;;  %p5861_p10 = scmp.lt.s32.totalorder %s5855_s20, %s5855_s20 }
 0x202   :  { %p5862_p11 = por %p5861_p10, %p5860_p9 }
 0x203   :  { %v2492_v45 = vpop.f32.mrb[20].mxu1  ;;  %v4016_v12 = vpop.f32.mrb[20].mxu0 }
 0x204   :  { %v8659_v63 = vadd.f32 %v4016_v12, %v2492_v45  ;;  %v2494_v22 = vpop.f32.mrb[21].mxu1  ;;  %v4018_v34 = vpop.f32.mrb[21].mxu0  ;;  %v8691_v12 = vrot.slane %v4446_v42, %v4454_v17  ;;  %p5863_p12 = pnand %p5862_p11, %p5856_p8 }
 0x205   :  { %v8661_v3 = vadd.f32 %v4018_v34, %v2494_v22  ;;  %v2496_v26 = vpop.f32.mrb[22].mxu1  ;;  %v4020_v57 = vpop.f32.mrb[22].mxu0  ;;  %v8694_v34 = vrot.slane %v4490_v25, %v4450_v39 }
 0x206   :  { %v8663_v10 = vadd.f32 %v4020_v57, %v2496_v26  ;;  %v2498_v43 = vpop.f32.mrb[23].mxu1  ;;  %v4022_v4 = vpop.f32.mrb[23].mxu0 }
 0x207   :  { %v8665_v40 = vadd.f32 %v4022_v4, %v2498_v43 }
 0x20b   :  { %v2502_v9 = vpop.f32.mrb[24].mxu1  ;;  %v4026_v52 = vpop.f32.mrb[24].mxu0 }
 0x20c   :  { %v8667_v19 = vadd.f32 %v4026_v52, %v2502_v9  ;;  %v2504_v16 = vpop.f32.mrb[25].mxu1  ;;  %v4028_v55 = vpop.f32.mrb[25].mxu0  ;;  %v8697_v9 = vrot.slane %v4490_v25, %v4454_v17 }
 0x20d   :  { %v8669_v7 = vadd.f32 %v4028_v55, %v2504_v16  ;;  %v2506_v36 = vpop.f32.mrb[26].mxu1  ;;  %v4030_v15 = vpop.f32.mrb[26].mxu0 }
 0x20e   :  { %v8671_v6 = vadd.f32 %v4030_v15, %v2506_v36  ;;  %v2508_v31 = vpop.f32.mrb[27].mxu1  ;;  %v4032_v51 = vpop.f32.mrb[27].mxu0 }
 0x20f   :  { %v8673_v18 = vadd.f32 %v4032_v51, %v2508_v31 }
 0x213   :  { %v2512_v37 = vpop.f32.mrb[28].mxu1  ;;  %v4036_v49 = vpop.f32.mrb[28].mxu0 }
 0x214   :  { %v8675_v38 = vadd.f32 %v4036_v49, %v2512_v37  ;;  %v2514_v8 = vpop.f32.mrb[29].mxu1  ;;  %v4038_v41 = vpop.f32.mrb[29].mxu0 }
 0x215   :  { %v8677_v33 = vadd.f32 %v4038_v41, %v2514_v8  ;;  %v2516_v58 = vpop.f32.mrb[30].mxu1  ;;  %v4040_v53 = vpop.f32.mrb[30].mxu0 }
 0x216   :  { %v8679_v0 = vadd.f32 %v4040_v53, %v2516_v58  ;;  %v2518_v14 = vpop.f32.mrb[31].mxu1  ;;  %v4042_v35 = vpop.f32.mrb[31].mxu0 }
 0x217   :  { %v8681_v21 = vadd.f32 %v4042_v35, %v2518_v14 }
 0x21b   :  { %v4335_v54 = vpop.f32.mrb[0].mxu0  ;;  %v4375_v45 = vpop.f32.mrb[32].mxu1 }
 0x21c   :  { %v5134_v22 = vadd.f32 %v4335_v54, %v8623_v44  ;;  %v5151_v26 = vadd.f32 %v5150_v13, %v4375_v45  ;;  %v4337_v57 = vpop.f32.mrb[1].mxu0  ;;  %v4377_v43 = vpop.f32.mrb[33].mxu1 }
 0x21d   :  { %v5135_v4 = vadd.f32 %v4337_v57, %v8625_v2  ;;  %v5153_v52 = vadd.f32 %v5152_v24, %v4377_v43  ;;  %v4339_v16 = vpop.f32.mrb[2].mxu0  ;;  %v4379_v55 = vpop.f32.mrb[34].mxu1 }
 0x21e   :  { %v4458_v36 = vmul.f32 %v5134_v22, %v8689_v30  ;;  %v4474_v15 = vmul.f32 %v5151_v26, %v8689_v30  ;;  %v5136_v31 = vadd.f32 %v4339_v16, %v8627_v23  ;;  %v5155_v44 = vadd.f32 %v8655_v32, %v4379_v55  ;;  %v4341_v51 = vpop.f32.mrb[3].mxu0  ;;  %v4381_v46 = vpop.f32.mrb[35].mxu1 }
 0x21f   :  { %v4459_v13 = vmul.f32 %v5135_v4, %v8691_v12  ;;  %v4475_v28 = vmul.f32 %v5153_v52, %v8691_v12  ;;  %v5137_v2 = vadd.f32 %v4341_v51, %v8629_v59  ;;  %v5157_v24 = vadd.f32 %v8657_v47, %v4381_v46 }
 0x220   :  { %v4502_v37 = vadd.f32 %v8694_v34, %v4458_v36  ;;  %v4518_v49 = vadd.f32 %v8694_v34, %v4474_v15  ;;  %v4460_v8 = vmul.f32 %v5136_v31, %v8689_v30  ;;  %v4476_v23 = vmul.f32 %v5155_v44, %v8689_v30 }
 0x221   :  { %v4503_v32 = vadd.f32 %v8697_v9, %v4459_v13  ;;  %v4519_v41 = vadd.f32 %v8697_v9, %v4475_v28  ;;  %v4461_v58 = vmul.f32 %v5137_v2, %v8691_v12  ;;  %v4477_v53 = vmul.f32 %v5157_v24, %v8691_v12 }
 0x222   :  { %v4534_v14 = vmax.f32 %v4502_v37, 0.0  ;;  %v4550_v59 = vmax.f32 %v4518_v49, 0.0  ;;  %v4504_v47 = vadd.f32 %v8694_v34, %v4460_v8  ;;  %v4520_v35 = vadd.f32 %v8694_v34, %v4476_v23 }
 0x223   :  { %v4535_v39 = vmax.f32 %v4503_v32, 0.0  ;;  %v4551_v42 = vmax.f32 %v4519_v41, 0.0  ;;  %v4505_v17 = vadd.f32 %v8697_v9, %v4461_v58  ;;  %v4521_v25 = vadd.f32 %v8697_v9, %v4477_v53  ;;  %v4345_v54 = vpop.f32.mrb[4].mxu0  ;;  %v4385_v45 = vpop.f32.mrb[36].mxu1 }
 0x224   :  { %4566 = vst [vmem:[#allocation2] sm:$0xff] %v4534_v14  ;;  %4582 = vst [vmem:[#allocation2 + $0x80] sm:$0xff] %v4550_v59  ;;  %v4536_v22 = vmax.f32 %v4504_v47, 0.0  ;;  %v4552_v26 = vmax.f32 %v4520_v35, 0.0  ;;  %v5138_v57 = vadd.f32 %v4345_v54, %v8631_v60  ;;  %v5159_v43 = vadd.f32 %v8659_v63, %v4385_v45  ;;  %v4347_v4 = vpop.f32.mrb[5].mxu0  ;;  %v4387_v52 = vpop.f32.mrb[37].mxu1 }
 0x225   :  { %4567 = vst.msk [vmem:[#allocation2 + $0x8] sm:$0xff] %vm1061_vm2, %v4535_v39  ;;  %4583 = vst.msk [vmem:[#allocation2 + $0x88] sm:$0xff] %vm1061_vm2, %v4551_v42  ;;  %v4537_v16 = vmax.f32 %v4505_v17, 0.0  ;;  %v4553_v55 = vmax.f32 %v4521_v25, 0.0  ;;  %v5139_v36 = vadd.f32 %v4347_v4, %v8633_v56  ;;  %v5161_v15 = vadd.f32 %v8661_v3, %v4387_v52  ;;  %v4349_v31 = vpop.f32.mrb[6].mxu0  ;;  %v4389_v44 = vpop.f32.mrb[38].mxu1 }
 0x226   :  { %4568 = vst [vmem:[#allocation2 + $0x10] sm:$0xff] %v4536_v22  ;;  %4584 = vst [vmem:[#allocation2 + $0x90] sm:$0xff] %v4552_v26  ;;  %v4462_v60 = vmul.f32 %v5138_v57, %v8689_v30  ;;  %v4478_v63 = vmul.f32 %v5159_v43, %v8689_v30  ;;  %v5140_v51 = vadd.f32 %v4349_v31, %v8635_v50  ;;  %v4351_v13 = vpop.f32.mrb[7].mxu0  ;;  %v4391_v28 = vpop.f32.mrb[39].mxu1 }
 0x227   :  { %v5163_v46 = vadd.f32 %v8663_v10, %v4389_v44  ;;  %4569 = vst.msk [vmem:[#allocation2 + $0x18] sm:$0xff] %vm1061_vm2, %v4537_v16  ;;  %4585 = vst.msk [vmem:[#allocation2 + $0x98] sm:$0xff] %vm1061_vm2, %v4553_v55  ;;  %v4463_v56 = vmul.f32 %v5139_v36, %v8691_v12  ;;  %v4479_v3 = vmul.f32 %v5161_v15, %v8691_v12 }
 0x228   :  { %v5141_v2 = vadd.f32 %v4351_v13, %v8637_v27  ;;  %v5165_v24 = vadd.f32 %v8665_v40, %v4391_v28  ;;  %v4506_v37 = vadd.f32 %v8694_v34, %v4462_v60  ;;  %v4522_v50 = vadd.f32 %v8694_v34, %v4478_v63 }
 0x229   :  { %v4464_v10 = vmul.f32 %v5140_v51, %v8689_v30  ;;  %v4480_v49 = vmul.f32 %v5163_v46, %v8689_v30  ;;  %v4507_v8 = vadd.f32 %v8697_v9, %v4463_v56  ;;  %v4523_v23 = vadd.f32 %v8697_v9, %v4479_v3 }
 0x22a   :  { %v4465_v32 = vmul.f32 %v5141_v2, %v8691_v12  ;;  %v4481_v41 = vmul.f32 %v5165_v24, %v8691_v12  ;;  %v4538_v58 = vmax.f32 %v4506_v37, 0.0  ;;  %v4554_v27 = vmax.f32 %v4522_v50, 0.0 }
 0x22b   :  { %v4508_v40 = vadd.f32 %v8694_v34, %v4464_v10  ;;  %v4524_v53 = vadd.f32 %v8694_v34, %v4480_v49  ;;  %v4539_v14 = vmax.f32 %v4507_v8, 0.0  ;;  %v4555_v59 = vmax.f32 %v4523_v23, 0.0  ;;  %v4355_v39 = vpop.f32.mrb[8].mxu0  ;;  %v4395_v42 = vpop.f32.mrb[40].mxu1 }
 0x22c   :  { %v4509_v47 = vadd.f32 %v8697_v9, %v4465_v32  ;;  %v4525_v35 = vadd.f32 %v8697_v9, %v4481_v41  ;;  %4570 = vst [vmem:[#allocation2 + $0x20] sm:$0xff] %v4538_v58  ;;  %4586 = vst [vmem:[#allocation2 + $0xa0] sm:$0xff] %v4554_v27  ;;  %v5142_v54 = vadd.f32 %v4355_v39, %v8639_v5  ;;  %v4357_v22 = vpop.f32.mrb[9].mxu0  ;;  %v4397_v26 = vpop.f32.mrb[41].mxu1 }
 0x22d   :  { %v4540_v17 = vmax.f32 %v4508_v40, 0.0  ;;  %v4556_v25 = vmax.f32 %v4524_v53, 0.0  ;;  %v5167_v45 = vadd.f32 %v8667_v19, %v4395_v42  ;;  %4571 = vst.msk [vmem:[#allocation2 + $0x28] sm:$0xff] %vm1061_vm2, %v4539_v14  ;;  %4587 = vst.msk [vmem:[#allocation2 + $0xa8] sm:$0xff] %vm1061_vm2, %v4555_v59  ;;  %v5143_v4 = vadd.f32 %v4357_v22, %v8641_v61  ;;  %v4359_v16 = vpop.f32.mrb[10].mxu0  ;;  %v4399_v55 = vpop.f32.mrb[42].mxu1 }
 0x22e   :  { %v4541_v57 = vmax.f32 %v4509_v47, 0.0  ;;  %v4557_v43 = vmax.f32 %v4525_v35, 0.0  ;;  %v5169_v52 = vadd.f32 %v8669_v7, %v4397_v26  ;;  %v4466_v5 = vmul.f32 %v5142_v54, %v8689_v30  ;;  %v4361_v31 = vpop.f32.mrb[11].mxu0  ;;  %v4401_v44 = vpop.f32.mrb[43].mxu1 }
 0x22f   :  { %4572 = vst [vmem:[#allocation2 + $0x30] sm:$0xff] %v4540_v17  ;;  %4588 = vst [vmem:[#allocation2 + $0xb0] sm:$0xff] %v4556_v25  ;;  %v4482_v19 = vmul.f32 %v5167_v45, %v8689_v30  ;;  %v5144_v36 = vadd.f32 %v4359_v16, %v8643_v11  ;;  %v5171_v15 = vadd.f32 %v8671_v6, %v4399_v55 }
 0x230   :  { %4573 = vst.msk [vmem:[#allocation2 + $0x38] sm:$0xff] %vm1061_vm2, %v4541_v57  ;;  %4589 = vst.msk [vmem:[#allocation2 + $0xb8] sm:$0xff] %vm1061_vm2, %v4557_v43  ;;  %v4467_v61 = vmul.f32 %v5143_v4, %v8691_v12  ;;  %v4483_v7 = vmul.f32 %v5169_v52, %v8691_v12  ;;  %v5145_v60 = vadd.f32 %v4361_v31, %v8645_v48 }
 0x231   :  { %v5173_v63 = vadd.f32 %v8673_v18, %v4401_v44  ;;  %v4510_v51 = vadd.f32 %v8694_v34, %v4466_v5  ;;  %v4526_v11 = vadd.f32 %v8694_v34, %v4482_v19  ;;  %v4468_v6 = vmul.f32 %v5144_v36, %v8689_v30 }
 0x232   :  { %v4484_v46 = vmul.f32 %v5171_v15, %v8689_v30  ;;  %v4511_v13 = vadd.f32 %v8697_v9, %v4467_v61  ;;  %v4527_v28 = vadd.f32 %v8697_v9, %v4483_v7  ;;  %v4469_v56 = vmul.f32 %v5145_v60, %v8691_v12 }
 0x233   :  { %v4485_v3 = vmul.f32 %v5173_v63, %v8691_v12  ;;  %v4542_v2 = vmax.f32 %v4510_v51, 0.0  ;;  %v4558_v48 = vmax.f32 %v4526_v11, 0.0  ;;  %v4512_v18 = vadd.f32 %v8694_v34, %v4468_v6  ;;  %v4365_v8 = vpop.f32.mrb[12].mxu0  ;;  %v4405_v23 = vpop.f32.mrb[44].mxu1 }
 0x234   :  { %v4528_v24 = vadd.f32 %v8694_v34, %v4484_v46  ;;  %v4543_v37 = vmax.f32 %v4511_v13, 0.0  ;;  %v4559_v50 = vmax.f32 %v4527_v28, 0.0  ;;  %v4513_v10 = vadd.f32 %v8697_v9, %v4469_v56  ;;  %v4367_v40 = vpop.f32.mrb[13].mxu0  ;;  %v4407_v53 = vpop.f32.mrb[45].mxu1 }
 0x235   :  { %v4529_v49 = vadd.f32 %v8697_v9, %v4485_v3  ;;  %4574 = vst [vmem:[#allocation2 + $0x40] sm:$0xff] %v4542_v2  ;;  %4590 = vst [vmem:[#allocation2 + $0xc0] sm:$0xff] %v4558_v48  ;;  %v4544_v32 = vmax.f32 %v4512_v18, 0.0  ;;  %v5146_v58 = vadd.f32 %v4365_v8, %v8647_v62  ;;  %v5175_v27 = vadd.f32 %v8675_v38, %v4405_v23  ;;  %v4369_v39 = vpop.f32.mrb[14].mxu0  ;;  %v4409_v42 = vpop.f32.mrb[46].mxu1 }
 0x236   :  { %v4560_v41 = vmax.f32 %v4528_v24, 0.0  ;;  %4575 = vst.msk [vmem:[#allocation2 + $0x48] sm:$0xff] %vm1061_vm2, %v4543_v37  ;;  %4591 = vst.msk [vmem:[#allocation2 + $0xc8] sm:$0xff] %vm1061_vm2, %v4559_v50  ;;  %v4545_v14 = vmax.f32 %v4513_v10, 0.0  ;;  %v5147_v47 = vadd.f32 %v4367_v40, %v8649_v20  ;;  %v5177_v35 = vadd.f32 %v8677_v33, %v4407_v53  ;;  %v4371_v54 = vpop.f32.mrb[15].mxu0  ;;  %v4411_v45 = vpop.f32.mrb[47].mxu1 }
 0x237   :  { %v4561_v59 = vmax.f32 %v4529_v49, 0.0  ;;  %4576 = vst [vmem:[#allocation2 + $0x50] sm:$0xff] %v4544_v32  ;;  %v4470_v62 = vmul.f32 %v5146_v58, %v8689_v30  ;;  %v4486_v38 = vmul.f32 %v5175_v27, %v8689_v30  ;;  %v5148_v17 = vadd.f32 %v4369_v39, %v8651_v1 }
 0x238   :  { %4592 = vst [vmem:[#allocation2 + $0xd0] sm:$0xff] %v4560_v41  ;;  %v5179_v25 = vadd.f32 %v8679_v0, %v4409_v42  ;;  %4577 = vst.msk [vmem:[#allocation2 + $0x58] sm:$0xff] %vm1061_vm2, %v4545_v14  ;;  %v4471_v20 = vmul.f32 %v5147_v47, %v8691_v12  ;;  %v4487_v33 = vmul.f32 %v5177_v35, %v8691_v12 }
 0x239   :  { %4593 = vst.msk [vmem:[#allocation2 + $0xd8] sm:$0xff] %vm1061_vm2, %v4561_v59  ;;  %v5149_v22 = vadd.f32 %v4371_v54, %v8653_v29  ;;  %v5181_v26 = vadd.f32 %v8681_v21, %v4411_v45  ;;  %v4514_v57 = vadd.f32 %v8694_v34, %v4470_v62  ;;  %v4530_v1 = vadd.f32 %v8694_v34, %v4486_v38 }
 0x23a   :  { %v4472_v0 = vmul.f32 %v5148_v17, %v8689_v30  ;;  %v4488_v43 = vmul.f32 %v5179_v25, %v8689_v30  ;;  %v4515_v4 = vadd.f32 %v8697_v9, %v4471_v20  ;;  %v4531_v52 = vadd.f32 %v8697_v9, %v4487_v33 }
 0x23b   :  { %v4473_v16 = vmul.f32 %v5149_v22, %v8691_v12  ;;  %v4489_v55 = vmul.f32 %v5181_v26, %v8691_v12  ;;  %v4546_v5 = vmax.f32 %v4514_v57, 0.0  ;;  %v4562_v29 = vmax.f32 %v4530_v1, 0.0 }
 0x23c   :  { %v4516_v21 = vadd.f32 %v8694_v34, %v4472_v0  ;;  %v4532_v19 = vadd.f32 %v8694_v34, %v4488_v43  ;;  %v4547_v36 = vmax.f32 %v4515_v4, 0.0  ;;  %v4563_v15 = vmax.f32 %v4531_v52, 0.0 }
 0x23d   :  { %v4517_v30 = vadd.f32 %v8697_v9, %v4473_v16  ;;  %v4533_v31 = vadd.f32 %v8697_v9, %v4489_v55  ;;  %4578 = vst [vmem:[#allocation2 + $0x60] sm:$0xff] %v4546_v5  ;;  %4594 = vst [vmem:[#allocation2 + $0xe0] sm:$0xff] %v4562_v29 }
 0x23e   :  { %v4548_v44 = vmax.f32 %v4516_v21, 0.0  ;;  %v4564_v61 = vmax.f32 %v4532_v19, 0.0  ;;  %4579 = vst.msk [vmem:[#allocation2 + $0x68] sm:$0xff] %vm1061_vm2, %v4547_v36  ;;  %4595 = vst.msk [vmem:[#allocation2 + $0xe8] sm:$0xff] %vm1061_vm2, %v4563_v15 }
 0x23f   :  { %v4549_v12 = vmax.f32 %v4517_v30, 0.0  ;;  %v4565_v7 = vmax.f32 %v4533_v31, 0.0 }
 0x240   :  { %4580 = vst [vmem:[#allocation2 + $0x70] sm:$0xff] %v4548_v44  ;;  %4596 = vst [vmem:[#allocation2 + $0xf0] sm:$0xff] %v4564_v61 }
 0x241   :  { %4581 = vst.msk [vmem:[#allocation2 + $0x78] sm:$0xff] %vm1061_vm2, %v4549_v12  ;;  %4597 = vst.msk [vmem:[#allocation2 + $0xf8] sm:$0xff] %vm1061_vm2, %v4565_v7 }
 0x242   :  { %5866 = shalt.err (!%p5863_p12)
}
 0x243   :  { %s5867_s2 = scalar_lea.hbm %s8829_s7, 4096 }
 0x244   :  { %p5868_p13 = scmp.ne.s32.totalorder %s8829_s7, %s5867_s2  ;;  %p5871_p0 = scmp.lt.u32.totalorder %s5867_s2, %s8829_s7 }
 0x246   :  { %p5873_p1 = pnand %p5871_p0, %p5868_p13 }
 0x248   :  { %5876 = shalt.err (!%p5873_p1)
}
 0x249   :  { %4609 = dma.vmem_to_hbm [thread:$0]  %s4604_s6, 4096, %s8829_s7, [#allocation3], %s5882_s15, %s5882_s15, %s5883_s1  }
 0x24a   :  { %5877 = dma.done.wait [#allocation3], 4096  }
 0x24b   :  { %5878 = vsyncadd [#allocation3], 4294963200 }
 0x24c   :  { %5879 = dma.done.wait [#allocation5], 4096  }
 0x24d   :  { %5880 = vsyncadd [#allocation5], 4294963200 }
 0x24e   :  { %4628 = vsyncpa [#allocation3], 1 }
 0x24f   :  { %4629 = vsyncpa [#allocation5], 1 }

</bundles_post_ra>
